<compile_context>
chip_gen: v6e
topology: v6e:2x2x1
jax: 0.10.0
libtpu: 0.0.40
codegen_flags: <defaults>
</compile_context>

<pallas_src>
import numpy as np
import jax
import jax.numpy as jnp
from jax import lax
from jax.experimental import pallas as pl
from jax.experimental.pallas import tpu as pltpu


_SENTINEL = float(2 ** 30)   # index sentinel; exact in f32 and > any real column id
_KBUF = 128                  # lane width of the running k-best scratch (keeps concat aligned)

# Review suggested DEFAULT precision for the MLP matmuls; at k=4 the MXU work is
# negligible, so HIGHEST is kept to preserve f32 fidelity of the folded weights.
_MLP_PRECISION = lax.Precision.HIGHEST


def _pick_tile(n, target, align=128):
    """Largest tile <= target that divides n and is align-aligned, else n (full dim)."""
    t = min(target, n)
    if t == n:
        return n
    t = (t // align) * align
    while t >= align and n % t != 0:
        t -= align
    return t if t >= align else n


# --------------------------------------------------------------------------
# Kernel 1: fused pairwise squared distance + running k-min selection.
#   grid = (batch, row tile, col tile); col axis is the reduction.
# --------------------------------------------------------------------------
def _make_knn_kernel(k):
    hi = lax.Precision.HIGHEST

    def kernel(vr_ref, vc_ref, snr_ref, snc_ref, idx_ref, bv_ref, bi_ref):
        j = pl.program_id(2)
        tc = vc_ref.shape[1]

        @pl.when(j == 0)
        def _():
            bv_ref[...] = jnp.full(bv_ref.shape, jnp.inf, jnp.float32)
            bi_ref[...] = jnp.full(bi_ref.shape, _SENTINEL, jnp.float32)

        vr = vr_ref[0]                                            # [tr, 3]
        vc = vc_ref[0]                                            # [tc, 3]
        g = lax.dot_general(vr, vc, (((1,), (1,)), ((), ())),
                            precision=hi, preferred_element_type=jnp.float32)
        d = -2.0 * g + snr_ref[0] + snc_ref[0]                    # [tr, tc]
        cols = (lax.broadcasted_iota(jnp.int32, d.shape, 1) + j * tc
                ).astype(jnp.float32)                             # global column ids

        # Merge the running k-best with this column tile.  Both lane widths are
        # multiples of 128, so the lane-axis concat stays tile-aligned.
        aug_v = jnp.concatenate([bv_ref[...], d], axis=-1)        # [tr, _KBUF + tc]
        aug_i = jnp.concatenate([bi_ref[...], cols], axis=-1)

        mins, args = [], []
        for _ in range(k):                                        # k is tiny (static unroll)
            m = jnp.min(aug_v, axis=-1, keepdims=True)            # [tr, 1]
            a = jnp.min(jnp.where(aug_v == m, aug_i, _SENTINEL),
                        axis=-1, keepdims=True)                   # smallest-index tie-break
            mins.append(m)
            args.append(a)
            aug_v = jnp.where(aug_i == a, jnp.inf, aug_v)

        # Rebuild the (ascending) running k-best via lane-mask selects.
        lane = lax.broadcasted_iota(jnp.int32, bv_ref.shape, 1)
        newv = jnp.full(bv_ref.shape, jnp.inf, jnp.float32)
        newi = jnp.full(bi_ref.shape, _SENTINEL, jnp.float32)
        for p in range(k):
            newv = jnp.where(lane == p, mins[p], newv)
            newi = jnp.where(lane == p, args[p], newi)
        bv_ref[...] = newv
        bi_ref[...] = newi

        @pl.when(j == pl.num_programs(2) - 1)
        def _():
            idx_ref[0] = newi[:, :k].astype(jnp.int32)

    return kernel


def knn_indices(k, vertices, tile_rows=256, tile_cols=512):
    """Replicates torch.topk(dist, k, dim=1, largest=False)[1].transpose(1, 2).

    dist is symmetric, so the k smallest along rows match PyTorch's column scan
    (up to fp-level tie-breaking).  Only the [B, N, k] ids ever reach HBM.
    """
    B, N, _ = vertices.shape
    assert 1 <= k <= N and k <= _KBUF, "need 1 <= k <= min(N, 128)"
    v = vertices.astype(jnp.float32)
    sn = jnp.sum(v * v, axis=-1)                                  # [B, N] shared norms

    Np = -(-N // 128) * 128
    if Np != N:
        v = jnp.pad(v, ((0, 0), (0, Np - N), (0, 0)))
        snr = jnp.pad(sn, ((0, 0), (0, Np - N)))
        # +inf column norms mask the fake points out of every selection.
        snc = jnp.pad(sn, ((0, 0), (0, Np - N)), constant_values=jnp.inf)
    else:
        snr = sn
        snc = sn
    snr = snr[:, :, None]                                         # [B, Np, 1]
    snc = snc[:, None, :]                                         # [B, 1, Np]

    tr = _pick_tile(Np, tile_rows)
    tc = _pick_tile(Np, tile_cols)
    grid = (B, Np // tr, Np // tc)

    idx = pl.pallas_call(
        _make_knn_kernel(k),
        out_shape=jax.ShapeDtypeStruct((B, Np, k), jnp.int32),
        grid=grid,
        in_specs=[
            pl.BlockSpec((1, tr, 3), lambda b, i, j: (b, i, 0)),   # row points (resident over j)
            pl.BlockSpec((1, tc, 3), lambda b, i, j: (b, j, 0)),   # col points
            pl.BlockSpec((1, tr, 1), lambda b, i, j: (b, i, 0)),   # row norms
            pl.BlockSpec((1, 1, tc), lambda b, i, j: (b, 0, j)),   # col norms
        ],
        out_specs=pl.BlockSpec((1, tr, k), lambda b, i, j: (b, i, 0)),
        scratch_shapes=[pltpu.VMEM((tr, _KBUF), jnp.float32),      # running best values
                        pltpu.VMEM((tr, _KBUF), jnp.float32)],     # running best ids (as f32)
        compiler_params=pltpu.CompilerParams(
            dimension_semantics=("parallel", "parallel", "arbitrary")),
    )(v, v, snr, snc)
    return idx[:, :N, :]                                          # [B, N, k] int32


# --------------------------------------------------------------------------
# Kernel 2: folded relative-feature MLP + neighbour reduction (transposed layout).
# --------------------------------------------------------------------------
def _param_layout_T(k):
    """8-row-aligned sections of the single packed (transposed) parameter block."""
    L = 10 * k
    entries = [('DT', 3 * k, 3 * k),   # diffT = DT @ vgT  (v0 - v_j)
               ('GT', k, 3 * k),       # per-neighbour sum of squared coords
               ('WvT', L, 3 * k),      # layer-1 xyz weights (v0 / v / diff folded)
               ('WnT', L, k),          # layer-1 ||v0 - v|| weights
               ('W2T', L, L),          # layer-2 block-diagonal weights
               ('W3T', k, L),          # layer-3 block-diagonal weights
               ('b1', L, 1), ('b2', L, 1), ('b3', k, 1)]
    sec, r = {}, 0
    for name, nrows, ncols in entries:
        sec[name] = (r, r + nrows, ncols)
        r = -(-(r + nrows) // 8) * 8
    ncols_max = max(e[2] for e in entries)
    return sec, r, max(128, -(-ncols_max // 128) * 128)


def _pack_params_T(params, k):
    """Fold the 10->10->10->1 MLP over all k neighbours into block-diagonal,
    pre-transposed weights packed into one parameter block."""
    w1, b1, w2, b2, w3, b3 = [jnp.asarray(p, jnp.float32) for p in params]
    sec, rows, Pc = _param_layout_T(k)
    Ik = jnp.eye(k, dtype=jnp.float32)
    I3 = jnp.eye(3, dtype=jnp.float32)
    E0 = jnp.zeros((k, k), jnp.float32).at[0, :].set(1.0)   # every neighbour sees v_0
    # feat = [v0, v, v0 - v, ||v0 - v||]  =>  fold v0 / diff contributions:
    W1a = w1[0:3] + w1[6:9]        # coefficient of v0
    W1b = w1[3:6] - w1[6:9]        # coefficient of v_j
    blocks = {
        'DT':  jnp.kron(E0 - Ik, I3).T,
        'GT':  jnp.kron(Ik, jnp.ones((3, 1), jnp.float32)).T,
        'WvT': (jnp.kron(Ik, W1b) + jnp.kron(E0, W1a)).T,
        'WnT': jnp.kron(Ik, w1[9:10]).T,
        'W2T': jnp.kron(Ik, w2).T,
        'W3T': jnp.kron(Ik, w3).T,
        'b1':  jnp.tile(b1, (1, k)).T,
        'b2':  jnp.tile(b2, (1, k)).T,
        'b3':  jnp.tile(b3, (1, k)).T,
    }
    packed = jnp.zeros((rows, Pc), jnp.float32)
    for name, blk in blocks.items():
        r0, r1, ncols = sec[name]
        packed = packed.at[r0:r1, :ncols].set(blk)
    return packed, sec


def _make_agg_kernel(k, C, sec, negative_slope=0.2):
    def dot(a, b):
        return jnp.dot(a, b, precision=_MLP_PRECISION,
                       preferred_element_type=jnp.float32)

    def leaky(x):
        return jnp.where(x > 0, x, negative_slope * x)

    def kernel(vg_ref, fg_ref, p_ref, o_ref):
        def cut(name):
            r0, r1, ncols = sec[name]
            return p_ref[r0:r1, :ncols]

        vgT = vg_ref[...]                                   # [3k, tm] gathered xyz (transposed)

        # geometry through the MXU: diff = v0 - v_j, nrm = ||v0 - v_j||
        diff = dot(cut('DT'), vgT)                          # [3k, tm]
        nrm = jnp.sqrt(dot(cut('GT'), diff * diff))         # [k, tm]

        # 10->10->10->1 MLP over all k neighbours at once (block-diagonal weights)
        h = leaky(dot(cut('WvT'), vgT) + dot(cut('WnT'), nrm) + cut('b1'))   # [10k, tm]
        h = leaky(dot(cut('W2T'), h) + cut('b2'))                            # [10k, tm]
        w = dot(cut('W3T'), h) + cut('b3')                                   # [k, tm]

        # weighted neighbour reduction: cheap sublane slices / sublane broadcasts
        acc = w[0:1, :] * fg_ref[0:C, :]
        for j in range(1, k):
            acc = acc + w[j:j + 1, :] * fg_ref[j * C:(j + 1) * C, :]
        o_ref[...] = acc.astype(o_ref.dtype)                # [C, tm]  lane-dense store

    return kernel


def _pick_tile_m(BN, target, bytes_per_col, vmem_budget=24 << 20, align=128):
    """Largest align-multiple divisor of BN whose double-buffered working set fits
    the VMEM budget (v7x scoped default is 32MiB), preferring >= 2 grid steps."""
    t = max(align, min(target, BN))
    while t > align and 2 * t * bytes_per_col > vmem_budget:
        t //= 2
    tm = _pick_tile(BN, t, align=align)
    if tm == BN and BN >= 2 * align:
        tm2 = _pick_tile(BN, BN // 2, align=align)
        if tm2 != BN:
            tm = tm2                                        # keep both v7x TensorCores busy
    return tm


def knn_dist_forward(params, F, vertices, k, tile_m=512, tile_rows=256, tile_cols=512):
    """Forward pass of KNN_dist: F [B,N,C], vertices [B,N,3] -> [B,N,C]."""
    B, N, C = F.shape
    idx = knn_indices(k, vertices, tile_rows=tile_rows, tile_cols=tile_cols)   # [B, N, k]

    # TODO(synk): neighbour gather left to XLA advanced indexing; an in-kernel
    # scalar-prefetch / DMA gather would remove this HBM round trip.
    b_idx = jnp.arange(B)[:, None, None]
    F_knn = F[b_idx, idx]                                   # [B, N, k, C]
    v_knn = vertices[b_idx, idx]                            # [B, N, k, 3]

    BN = B * N
    # Transposed ("feature-on-sublane, point-on-lane") layout: tiny feature dims no
    # longer pad every vreg to 128 lanes and the output store becomes lane-dense.
    fgT = jnp.transpose(F_knn, (2, 3, 0, 1)).reshape(k * C, BN).astype(jnp.float32)
    vgT = jnp.transpose(v_knn, (2, 3, 0, 1)).reshape(k * 3, BN).astype(jnp.float32)

    packed, sec = _pack_params_T(params, k)
    Pr, Pc = packed.shape

    bytes_per_col = (3 * k + k * C + C) * 4
    tm = _pick_tile_m(BN, tile_m, bytes_per_col)

    outT = pl.pallas_call(
        _make_agg_kernel(k, C, sec),
        out_shape=jax.ShapeDtypeStruct((C, BN), jnp.float32),
        grid=(BN // tm,),
        in_specs=[
            pl.BlockSpec((3 * k, tm), lambda i: (0, i)),     # gathered xyz (transposed)
            pl.BlockSpec((k * C, tm), lambda i: (0, i)),     # gathered features (transposed)
            pl.BlockSpec((Pr, Pc), lambda i: (0, 0)),        # packed params (fetched once)
        ],
        out_specs=pl.BlockSpec((C, tm), lambda i: (0, i)),
        compiler_params=pltpu.CompilerParams(dimension_semantics=("parallel",)),
    )(vgT, fgT, packed)
    return outT.T.reshape(B, N, C)


# --------------------------------------------------------------------------
# Parameter init (matches nn.Linear shapes: 10->10->10->1, [in, out] layout)
# --------------------------------------------------------------------------
def init_params(key):
    ks = jax.random.split(key, 6)

    def lin(kw, kb, n_in, n_out):
        bound = 1.0 / np.sqrt(n_in)
        w = jax.random.uniform(kw, (n_in, n_out), jnp.float32, -bound, bound)
        b = jax.random.uniform(kb, (1, n_out), jnp.float32, -bound, bound)
        return w, b

    w1, b1 = lin(ks[0], ks[1], 10, 10)
    w2, b2 = lin(ks[2], ks[3], 10, 10)
    w3, b3 = lin(ks[4], ks[5], 10, 1)
    return (w1, b1, w2, b2, w3, b3)


# --------------------------------------------------------------------------
# Pure-JAX references (correctness checks only)
# --------------------------------------------------------------------------
def sq_dist_ref(v):
    g = jnp.einsum("bnc,bmc->bnm", v, v, precision=lax.Precision.HIGHEST)
    s = jnp.sum(v * v, axis=-1)
    return -2.0 * g + s[:, :, None] + s[:, None, :]


def aggregate_ref(params, F, vertices, idx):
    w1, b1, w2, b2, w3, b3 = params
    B = F.shape[0]
    k = idx.shape[-1]
    b_idx = jnp.arange(B)[:, None, None]
    Fg = F[b_idx, idx]                                   # [B, N, k, C]
    vg = vertices[b_idx, idx]                            # [B, N, k, 3]
    v0 = jnp.repeat(vg[:, :, 0:1, :], k, axis=2)
    diff = v0 - vg
    nrm = jnp.sqrt(jnp.sum(diff * diff, axis=-1, keepdims=True))
    vF = jnp.concatenate([v0, vg, diff, nrm], axis=-1)   # [B, N, k, 10]

    def leaky(x):
        return jnp.where(x > 0, x, 0.2 * x)

    h = leaky(jnp.matmul(vF, w1, precision=lax.Precision.HIGHEST) + b1)
    h = leaky(jnp.matmul(h, w2, precision=lax.Precision.HIGHEST) + b2)
    w = jnp.matmul(h, w3, precision=lax.Precision.HIGHEST) + b3   # [B, N, k, 1]
    return jnp.sum(w * Fg, axis=-2)


def run_case(params, B, N, C, k, kf, kv, tile_rows=256, tile_cols=512, tile_m=512):
    F = jax.random.normal(kf, (B, N, C), jnp.float32)
    vertices = jax.random.uniform(kv, (B, N, 3), jnp.float32)

    fwd = jax.jit(knn_dist_forward,
                  static_argnames=("k", "tile_m", "tile_rows", "tile_cols"))
    out = jax.block_until_ready(fwd(params, F, vertices, k=k, tile_m=tile_m,
                                    tile_rows=tile_rows, tile_cols=tile_cols))
    assert out.shape == (B, N, C)

    # neighbour correctness: the fused kernel picks the k smallest distances
    idx = jax.block_until_ready(
        knn_indices(k, vertices, tile_rows=tile_rows, tile_cols=tile_cols))
    dref = sq_dist_ref(vertices)
    got = np.sort(np.asarray(jnp.take_along_axis(dref, idx, axis=-1)), axis=-1)
    ref_vals = np.asarray(-lax.top_k(-dref, k)[0])            # ascending k smallest
    np.testing.assert_allclose(got, ref_vals, rtol=1e-4, atol=1e-5)

    # full forward vs pure-JAX reference using the same neighbour ids
    ref = aggregate_ref(params, F, vertices, idx)
    np.testing.assert_allclose(np.asarray(out), np.asarray(ref), rtol=1e-3, atol=1e-3)


if __name__ == "__main__":
    key = jax.random.PRNGKey(0)
    kP, k1, k2, k3, k4 = jax.random.split(key, 5)
    params = init_params(kP)

    # multi-tile case: exercises the running k-min merge across column tiles and a
    # >= 2-step kernel-2 grid (v7x megacore).
    run_case(params, B=2, N=256, C=16, k=4, kf=k1, kv=k2, tile_rows=128, tile_cols=128)
    # realistic view-GCN size (N < 128): exercises the padded-N / masked-column path.
    run_case(params, B=2, N=20, C=16, k=4, kf=k3, kv=k4)

    print("KERNEL_OK")
</pallas_src>

<mosaic_0001>
module attributes {stable_mosaic.version = 11 : i64} {
  func.func @kernel(%arg0: i32, %arg1: i32, %arg2: i32, %arg3: memref<1x128x3xf32, #tpu.memory_space<vmem>>, %arg4: memref<1x128x3xf32, #tpu.memory_space<vmem>>, %arg5: memref<1x128x1xf32, #tpu.memory_space<vmem>>, %arg6: memref<1x1x128xf32, #tpu.memory_space<vmem>>, %arg7: memref<1x128x4xi32, #tpu.memory_space<vmem>>, %arg8: memref<128x128xf32, #tpu.memory_space<vmem>>, %arg9: memref<128x128xf32, #tpu.memory_space<vmem>>) attributes {dimension_semantics = [#tpu.dimension_semantics<parallel>, #tpu.dimension_semantics<parallel>, #tpu.dimension_semantics<arbitrary>], iteration_bounds = array<i64: 2, 2, 2>, scalar_prefetch = 0 : i64, scratch_operands = 2 : i64, tpu.core_type = #tpu.core_type<tc>, window_params = [{transform_indices = @transform_0, window_bounds = array<i64: 1, 128, 3>}, {transform_indices = @transform_1, window_bounds = array<i64: 1, 128, 3>}, {transform_indices = @transform_2, window_bounds = array<i64: 1, 128, 1>}, {transform_indices = @transform_3, window_bounds = array<i64: 1, 1, 128>}, {transform_indices = @transform_4, window_bounds = array<i64: 1, 128, 4>}]} {
    %c0_i32 = arith.constant 0 : i32
    %0 = arith.cmpi eq, %arg2, %c0_i32 : i32
    %1 = arith.extui %0 : i1 to i32
    %c0_i32_0 = arith.constant 0 : i32
    %2 = arith.cmpi ne, %1, %c0_i32_0 : i32
    scf.if %2 {
      %cst_45 = arith.constant 0x7F800000 : f32
      %119 = vector.broadcast %cst_45 : f32 to vector<128x128xf32>
      %c0_46 = arith.constant 0 : index
      %c0_47 = arith.constant 0 : index
      %120 = vector.load %arg8[%c0_46, %c0_47] : memref<128x128xf32, #tpu.memory_space<vmem>>, vector<128x128xf32>
      tpu.vector_store %arg8[%c0_46, %c0_47], %119 {strides = array<i32>} : memref<128x128xf32, #tpu.memory_space<vmem>>, vector<128x128xf32>,
      %cst_48 = arith.constant 1.07374182E+9 : f32
      %121 = vector.broadcast %cst_48 : f32 to vector<128x128xf32>
      %c0_49 = arith.constant 0 : index
      %c0_50 = arith.constant 0 : index
      %122 = vector.load %arg9[%c0_49, %c0_50] : memref<128x128xf32, #tpu.memory_space<vmem>>, vector<128x128xf32>
      tpu.vector_store %arg9[%c0_49, %c0_50], %121 {strides = array<i32>} : memref<128x128xf32, #tpu.memory_space<vmem>>, vector<128x128xf32>,
    } else {
    }
    %c0 = arith.constant 0 : index
    %c0_1 = arith.constant 0 : index
    %c0_2 = arith.constant 0 : index
    %3 = vector.load %arg3[%c0, %c0_1, %c0_2] : memref<1x128x3xf32, #tpu.memory_space<vmem>>, vector<1x128x3xf32>
    %4 = vector.shape_cast %3 : vector<1x128x3xf32> to vector<128x3xf32>
    %c0_3 = arith.constant 0 : index
    %c0_4 = arith.constant 0 : index
    %c0_5 = arith.constant 0 : index
    %5 = vector.load %arg4[%c0_3, %c0_4, %c0_5] : memref<1x128x3xf32, #tpu.memory_space<vmem>>, vector<1x128x3xf32>
    %6 = vector.shape_cast %5 : vector<1x128x3xf32> to vector<128x3xf32>
    %cst = arith.constant dense<0.000000e+00> : vector<128x128xf32>
    %7 = tpu.matmul %4, %6, %cst {dimension_numbers = #tpu.dot_dimension_numbers<[1], [1], [0], [0], [0, 0, 1, 0], [], []>, precision = #tpu.contract_precision<fp32>} : vector<128x3xf32>, vector<128x3xf32>, vector<128x128xf32> -> vector<128x128xf32>
    %cst_6 = arith.constant -2.000000e+00 : f32
    %8 = vector.broadcast %cst_6 : f32 to vector<128x128xf32>
    %9 = arith.mulf %8, %7 : vector<128x128xf32>
    %c0_7 = arith.constant 0 : index
    %c0_8 = arith.constant 0 : index
    %c0_9 = arith.constant 0 : index
    %10 = vector.load %arg5[%c0_7, %c0_8, %c0_9] : memref<1x128x1xf32, #tpu.memory_space<vmem>>, vector<1x128x1xf32>
    %11 = vector.shape_cast %10 : vector<1x128x1xf32> to vector<128x1xf32>
    %12 = vector.broadcast %11 : vector<128x1xf32> to vector<128x128xf32>
    %13 = arith.addf %9, %12 : vector<128x128xf32>
    %c0_10 = arith.constant 0 : index
    %c0_11 = arith.constant 0 : index
    %c0_12 = arith.constant 0 : index
    %14 = vector.load %arg6[%c0_10, %c0_11, %c0_12] : memref<1x1x128xf32, #tpu.memory_space<vmem>>, vector<1x1x128xf32>
    %15 = vector.shape_cast %14 : vector<1x1x128xf32> to vector<1x128xf32>
    %16 = vector.broadcast %15 : vector<1x128xf32> to vector<128x128xf32>
    %17 = arith.addf %13, %16 : vector<128x128xf32>
    %18 = tpu.iota {dimensions = array<i32: 1>} : vector<128x128xi32>
    %c128_i32 = arith.constant 128 : i32
    %19 = arith.muli %arg2, %c128_i32 : i32
    %20 = vector.broadcast %19 : i32 to vector<128x128xi32>
    %21 = arith.addi %18, %20 : vector<128x128xi32>
    %22 = arith.sitofp %21 : vector<128x128xi32> to vector<128x128xf32>
    %c0_13 = arith.constant 0 : index
    %c0_14 = arith.constant 0 : index
    %23 = vector.load %arg8[%c0_13, %c0_14] : memref<128x128xf32, #tpu.memory_space<vmem>>, vector<128x128xf32>
    %24 = tpu.concatenate %23, %17 in 1 : vector<128x128xf32>, vector<128x128xf32> -> vector<128x256xf32>
    %c0_15 = arith.constant 0 : index
    %c0_16 = arith.constant 0 : index
    %25 = vector.load %arg9[%c0_15, %c0_16] : memref<128x128xf32, #tpu.memory_space<vmem>>, vector<128x128xf32>
    %26 = tpu.concatenate %25, %22 in 1 : vector<128x128xf32>, vector<128x128xf32> -> vector<128x256xf32>
    %cst_17 = arith.constant dense<0x7F800000> : vector<128xf32>
    %27 = vector.multi_reduction <minimumf>, %24, %cst_17 [1] : vector<128x256xf32> to vector<128xf32>
    %28 = vector.shape_cast %27 : vector<128xf32> to vector<128x1xf32>
    %29 = vector.broadcast %28 : vector<128x1xf32> to vector<128x256xf32>
    %30 = arith.cmpf oeq, %24, %29 : vector<128x256xf32>
    %cst_18 = arith.constant 1.07374182E+9 : f32
    %31 = vector.broadcast %cst_18 : f32 to vector<128x256xf32>
    %32 = arith.select %30, %26, %31 : vector<128x256xi1>, vector<128x256xf32>
    %cst_19 = arith.constant dense<0x7F800000> : vector<128xf32>
    %33 = vector.multi_reduction <minimumf>, %32, %cst_19 [1] : vector<128x256xf32> to vector<128xf32>
    %34 = vector.shape_cast %33 : vector<128xf32> to vector<128x1xf32>
    %35 = vector.broadcast %34 : vector<128x1xf32> to vector<128x256xf32>
    %36 = arith.cmpf oeq, %26, %35 : vector<128x256xf32>
    %cst_20 = arith.constant 0x7F800000 : f32
    %37 = vector.broadcast %cst_20 : f32 to vector<128x256xf32>
    %38 = arith.select %36, %37, %24 : vector<128x256xi1>, vector<128x256xf32>
    %cst_21 = arith.constant dense<0x7F800000> : vector<128xf32>
    %39 = vector.multi_reduction <minimumf>, %38, %cst_21 [1] : vector<128x256xf32> to vector<128xf32>
    %40 = vector.shape_cast %39 : vector<128xf32> to vector<128x1xf32>
    %41 = vector.broadcast %40 : vector<128x1xf32> to vector<128x256xf32>
    %42 = arith.cmpf oeq, %38, %41 : vector<128x256xf32>
    %cst_22 = arith.constant 1.07374182E+9 : f32
    %43 = vector.broadcast %cst_22 : f32 to vector<128x256xf32>
    %44 = arith.select %42, %26, %43 : vector<128x256xi1>, vector<128x256xf32>
    %cst_23 = arith.constant dense<0x7F800000> : vector<128xf32>
    %45 = vector.multi_reduction <minimumf>, %44, %cst_23 [1] : vector<128x256xf32> to vector<128xf32>
    %46 = vector.shape_cast %45 : vector<128xf32> to vector<128x1xf32>
    %47 = vector.broadcast %46 : vector<128x1xf32> to vector<128x256xf32>
    %48 = arith.cmpf oeq, %26, %47 : vector<128x256xf32>
    %cst_24 = arith.constant 0x7F800000 : f32
    %49 = vector.broadcast %cst_24 : f32 to vector<128x256xf32>
    %50 = arith.select %48, %49, %38 : vector<128x256xi1>, vector<128x256xf32>
    %cst_25 = arith.constant dense<0x7F800000> : vector<128xf32>
    %51 = vector.multi_reduction <minimumf>, %50, %cst_25 [1] : vector<128x256xf32> to vector<128xf32>
    %52 = vector.shape_cast %51 : vector<128xf32> to vector<128x1xf32>
    %53 = vector.broadcast %52 : vector<128x1xf32> to vector<128x256xf32>
    %54 = arith.cmpf oeq, %50, %53 : vector<128x256xf32>
    %cst_26 = arith.constant 1.07374182E+9 : f32
    %55 = vector.broadcast %cst_26 : f32 to vector<128x256xf32>
    %56 = arith.select %54, %26, %55 : vector<128x256xi1>, vector<128x256xf32>
    %cst_27 = arith.constant dense<0x7F800000> : vector<128xf32>
    %57 = vector.multi_reduction <minimumf>, %56, %cst_27 [1] : vector<128x256xf32> to vector<128xf32>
    %58 = vector.shape_cast %57 : vector<128xf32> to vector<128x1xf32>
    %59 = vector.broadcast %58 : vector<128x1xf32> to vector<128x256xf32>
    %60 = arith.cmpf oeq, %26, %59 : vector<128x256xf32>
    %cst_28 = arith.constant 0x7F800000 : f32
    %61 = vector.broadcast %cst_28 : f32 to vector<128x256xf32>
    %62 = arith.select %60, %61, %50 : vector<128x256xi1>, vector<128x256xf32>
    %cst_29 = arith.constant dense<0x7F800000> : vector<128xf32>
    %63 = vector.multi_reduction <minimumf>, %62, %cst_29 [1] : vector<128x256xf32> to vector<128xf32>
    %64 = vector.shape_cast %63 : vector<128xf32> to vector<128x1xf32>
    %65 = vector.broadcast %64 : vector<128x1xf32> to vector<128x256xf32>
    %66 = arith.cmpf oeq, %62, %65 : vector<128x256xf32>
    %cst_30 = arith.constant 1.07374182E+9 : f32
    %67 = vector.broadcast %cst_30 : f32 to vector<128x256xf32>
    %68 = arith.select %66, %26, %67 : vector<128x256xi1>, vector<128x256xf32>
    %cst_31 = arith.constant dense<0x7F800000> : vector<128xf32>
    %69 = vector.multi_reduction <minimumf>, %68, %cst_31 [1] : vector<128x256xf32> to vector<128xf32>
    %70 = vector.shape_cast %69 : vector<128xf32> to vector<128x1xf32>
    %71 = tpu.iota {dimensions = array<i32: 1>} : vector<128x128xi32>
    %cst_32 = arith.constant 0x7F800000 : f32
    %72 = vector.broadcast %cst_32 : f32 to vector<128x128xf32>
    %cst_33 = arith.constant 1.07374182E+9 : f32
    %73 = vector.broadcast %cst_33 : f32 to vector<128x128xf32>
    %c0_i32_34 = arith.constant 0 : i32
    %74 = vector.broadcast %c0_i32_34 : i32 to vector<128x128xi32>
    %75 = arith.cmpi eq, %71, %74 : vector<128x128xi32>
    %76 = vector.shape_cast %28 : vector<128x1xf32> to vector<128x1xf32>
    %77 = vector.broadcast %76 : vector<128x1xf32> to vector<128x128xf32>
    %78 = arith.select %75, %77, %72 : vector<128x128xi1>, vector<128x128xf32>
    %c0_i32_35 = arith.constant 0 : i32
    %79 = vector.broadcast %c0_i32_35 : i32 to vector<128x128xi32>
    %80 = arith.cmpi eq, %71, %79 : vector<128x128xi32>
    %81 = vector.shape_cast %34 : vector<128x1xf32> to vector<128x1xf32>
    %82 = vector.broadcast %81 : vector<128x1xf32> to vector<128x128xf32>
    %83 = arith.select %80, %82, %73 : vector<128x128xi1>, vector<128x128xf32>
    %c1_i32 = arith.constant 1 : i32
    %84 = vector.broadcast %c1_i32 : i32 to vector<128x128xi32>
    %85 = arith.cmpi eq, %71, %84 : vector<128x128xi32>
    %86 = vector.shape_cast %40 : vector<128x1xf32> to vector<128x1xf32>
    %87 = vector.broadcast %86 : vector<128x1xf32> to vector<128x128xf32>
    %88 = arith.select %85, %87, %78 : vector<128x128xi1>, vector<128x128xf32>
    %c1_i32_36 = arith.constant 1 : i32
    %89 = vector.broadcast %c1_i32_36 : i32 to vector<128x128xi32>
    %90 = arith.cmpi eq, %71, %89 : vector<128x128xi32>
    %91 = vector.shape_cast %46 : vector<128x1xf32> to vector<128x1xf32>
    %92 = vector.broadcast %91 : vector<128x1xf32> to vector<128x128xf32>
    %93 = arith.select %90, %92, %83 : vector<128x128xi1>, vector<128x128xf32>
    %c2_i32 = arith.constant 2 : i32
    %94 = vector.broadcast %c2_i32 : i32 to vector<128x128xi32>
    %95 = arith.cmpi eq, %71, %94 : vector<128x128xi32>
    %96 = vector.shape_cast %52 : vector<128x1xf32> to vector<128x1xf32>
    %97 = vector.broadcast %96 : vector<128x1xf32> to vector<128x128xf32>
    %98 = arith.select %95, %97, %88 : vector<128x128xi1>, vector<128x128xf32>
    %c2_i32_37 = arith.constant 2 : i32
    %99 = vector.broadcast %c2_i32_37 : i32 to vector<128x128xi32>
    %100 = arith.cmpi eq, %71, %99 : vector<128x128xi32>
    %101 = vector.shape_cast %58 : vector<128x1xf32> to vector<128x1xf32>
    %102 = vector.broadcast %101 : vector<128x1xf32> to vector<128x128xf32>
    %103 = arith.select %100, %102, %93 : vector<128x128xi1>, vector<128x128xf32>
    %c3_i32 = arith.constant 3 : i32
    %104 = vector.broadcast %c3_i32 : i32 to vector<128x128xi32>
    %105 = arith.cmpi eq, %71, %104 : vector<128x128xi32>
    %106 = vector.shape_cast %64 : vector<128x1xf32> to vector<128x1xf32>
    %107 = vector.broadcast %106 : vector<128x1xf32> to vector<128x128xf32>
    %108 = arith.select %105, %107, %98 : vector<128x128xi1>, vector<128x128xf32>
    %c3_i32_38 = arith.constant 3 : i32
    %109 = vector.broadcast %c3_i32_38 : i32 to vector<128x128xi32>
    %110 = arith.cmpi eq, %71, %109 : vector<128x128xi32>
    %111 = vector.shape_cast %70 : vector<128x1xf32> to vector<128x1xf32>
    %112 = vector.broadcast %111 : vector<128x1xf32> to vector<128x128xf32>
    %113 = arith.select %110, %112, %103 : vector<128x128xi1>, vector<128x128xf32>
    %c0_39 = arith.constant 0 : index
    %c0_40 = arith.constant 0 : index
    %114 = vector.load %arg8[%c0_39, %c0_40] : memref<128x128xf32, #tpu.memory_space<vmem>>, vector<128x128xf32>
    tpu.vector_store %arg8[%c0_39, %c0_40], %108 {strides = array<i32>} : memref<128x128xf32, #tpu.memory_space<vmem>>, vector<128x128xf32>,
    %c0_41 = arith.constant 0 : index
    %c0_42 = arith.constant 0 : index
    %115 = vector.load %arg9[%c0_41, %c0_42] : memref<128x128xf32, #tpu.memory_space<vmem>>, vector<128x128xf32>
    tpu.vector_store %arg9[%c0_41, %c0_42], %113 {strides = array<i32>} : memref<128x128xf32, #tpu.memory_space<vmem>>, vector<128x128xf32>,
    %c1_i32_43 = arith.constant 1 : i32
    %116 = arith.cmpi eq, %arg2, %c1_i32_43 : i32
    %117 = arith.extui %116 : i1 to i32
    %c0_i32_44 = arith.constant 0 : i32
    %118 = arith.cmpi ne, %117, %c0_i32_44 : i32
    scf.if %118 {
      %119 = vector.extract_strided_slice %113 {offsets = [0, 0], sizes = [128, 4], strides = [1, 1]} : vector<128x128xf32> to vector<128x4xf32>
      %120 = arith.fptosi %119 : vector<128x4xf32> to vector<128x4xi32>
      %c0_45 = arith.constant 0 : index
      %c0_46 = arith.constant 0 : index
      %c0_47 = arith.constant 0 : index
      %121 = vector.load %arg7[%c0_45, %c0_46, %c0_47] : memref<1x128x4xi32, #tpu.memory_space<vmem>>, vector<1x128x4xi32>
      %122 = vector.shape_cast %121 : vector<1x128x4xi32> to vector<128x4xi32>
      %123 = vector.shape_cast %120 : vector<128x4xi32> to vector<1x128x4xi32>
      tpu.vector_store %arg7[%c0_45, %c0_46, %c0_47], %123 {strides = array<i32>} : memref<1x128x4xi32, #tpu.memory_space<vmem>>, vector<1x128x4xi32>,
    } else {
    }
    return
  }
  func.func @transform_0(%arg0: i32, %arg1: i32, %arg2: i32) -> (i32, i32, i32) {
    %c0_i32 = arith.constant 0 : i32
    %c0_i32_0 = arith.constant 0 : i32
    return %arg0, %arg1, %c0_i32 : i32, i32, i32
  }
  func.func @transform_1(%arg0: i32, %arg1: i32, %arg2: i32) -> (i32, i32, i32) {
    %c0_i32 = arith.constant 0 : i32
    %c0_i32_0 = arith.constant 0 : i32
    return %arg0, %arg2, %c0_i32 : i32, i32, i32
  }
  func.func @transform_2(%arg0: i32, %arg1: i32, %arg2: i32) -> (i32, i32, i32) {
    %c0_i32 = arith.constant 0 : i32
    %c0_i32_0 = arith.constant 0 : i32
    return %arg0, %arg1, %c0_i32 : i32, i32, i32
  }
  func.func @transform_3(%arg0: i32, %arg1: i32, %arg2: i32) -> (i32, i32, i32) {
    %c0_i32 = arith.constant 0 : i32
    %c0_i32_0 = arith.constant 0 : i32
    return %arg0, %c0_i32, %arg2 : i32, i32, i32
  }
  func.func @transform_4(%arg0: i32, %arg1: i32, %arg2: i32) -> (i32, i32, i32) {
    %c0_i32 = arith.constant 0 : i32
    %c0_i32_0 = arith.constant 0 : i32
    return %arg0, %arg1, %c0_i32 : i32, i32, i32
  }
}

module attributes {stable_mosaic.version = 11 : i64} {
  func.func @kernel(%arg0: i32, %arg1: memref<12x256xf32, #tpu.memory_space<vmem>>, %arg2: memref<64x256xf32, #tpu.memory_space<vmem>>, %arg3: memref<240x128xf32, #tpu.memory_space<vmem>>, %arg4: memref<16x256xf32, #tpu.memory_space<vmem>>) attributes {dimension_semantics = [#tpu.dimension_semantics<parallel>], iteration_bounds = array<i64: 2>, scalar_prefetch = 0 : i64, scratch_operands = 0 : i64, tpu.core_type = #tpu.core_type<tc>, window_params = [{transform_indices = @transform_0, window_bounds = array<i64: 12, 256>}, {transform_indices = @transform_1, window_bounds = array<i64: 64, 256>}, {pipeline_mode = #tpu.pipeline_mode<synchronous>, transform_indices = @transform_2, window_bounds = array<i64: 240, 128>}, {transform_indices = @transform_3, window_bounds = array<i64: 16, 256>}]} {
    %c0 = arith.constant 0 : index
    %c0_0 = arith.constant 0 : index
    %0 = vector.load %arg1[%c0, %c0_0] : memref<12x256xf32, #tpu.memory_space<vmem>>, vector<12x256xf32>
    %c0_1 = arith.constant 0 : index
    %c0_2 = arith.constant 0 : index
    %1 = vector.load %arg3[%c0_1, %c0_2] : memref<240x128xf32, #tpu.memory_space<vmem>>, vector<12x12xf32>
    %cst = arith.constant dense<0.000000e+00> : vector<12x256xf32>
    %2 = tpu.matmul %1, %0, %cst {dimension_numbers = #tpu.dot_dimension_numbers<[1], [0], [0], [1], [0, 0, 1, 1], [], []>, precision = #tpu.contract_precision<fp32>} : vector<12x12xf32>, vector<12x256xf32>, vector<12x256xf32> -> vector<12x256xf32>
    %c16 = arith.constant 16 : index
    %c0_3 = arith.constant 0 : index
    %3 = vector.load %arg3[%c16, %c0_3] : memref<240x128xf32, #tpu.memory_space<vmem>>, vector<4x12xf32>
    %4 = arith.mulf %2, %2 : vector<12x256xf32>
    %cst_4 = arith.constant dense<0.000000e+00> : vector<4x256xf32>
    %5 = tpu.matmul %3, %4, %cst_4 {dimension_numbers = #tpu.dot_dimension_numbers<[1], [0], [0], [1], [0, 0, 1, 1], [], []>, precision = #tpu.contract_precision<fp32>} : vector<4x12xf32>, vector<12x256xf32>, vector<4x256xf32> -> vector<4x256xf32>
    %6 = math.sqrt %5 : vector<4x256xf32>
    %c24 = arith.constant 24 : index
    %c0_5 = arith.constant 0 : index
    %7 = vector.load %arg3[%c24, %c0_5] : memref<240x128xf32, #tpu.memory_space<vmem>>, vector<40x12xf32>
    %cst_6 = arith.constant dense<0.000000e+00> : vector<40x256xf32>
    %8 = tpu.matmul %7, %0, %cst_6 {dimension_numbers = #tpu.dot_dimension_numbers<[1], [0], [0], [1], [0, 0, 1, 1], [], []>, precision = #tpu.contract_precision<fp32>} : vector<40x12xf32>, vector<12x256xf32>, vector<40x256xf32> -> vector<40x256xf32>
    %c64 = arith.constant 64 : index
    %c0_7 = arith.constant 0 : index
    %9 = vector.load %arg3[%c64, %c0_7] : memref<240x128xf32, #tpu.memory_space<vmem>>, vector<40x4xf32>
    %cst_8 = arith.constant dense<0.000000e+00> : vector<40x256xf32>
    %10 = tpu.matmul %9, %6, %cst_8 {dimension_numbers = #tpu.dot_dimension_numbers<[1], [0], [0], [1], [0, 0, 1, 1], [], []>, precision = #tpu.contract_precision<fp32>} : vector<40x4xf32>, vector<4x256xf32>, vector<40x256xf32> -> vector<40x256xf32>
    %11 = arith.addf %8, %10 : vector<40x256xf32>
    %c152 = arith.constant 152 : index
    %c0_9 = arith.constant 0 : index
    %12 = vector.load %arg3[%c152, %c0_9] : memref<240x128xf32, #tpu.memory_space<vmem>>, vector<40x1xf32>
    %13 = vector.broadcast %12 : vector<40x1xf32> to vector<40x256xf32>
    %14 = arith.addf %11, %13 : vector<40x256xf32>
    %cst_10 = arith.constant 0.000000e+00 : f32
    %15 = vector.broadcast %cst_10 : f32 to vector<40x256xf32>
    %16 = arith.cmpf ogt, %14, %15 : vector<40x256xf32>
    %cst_11 = arith.constant 2.000000e-01 : f32
    %17 = vector.broadcast %cst_11 : f32 to vector<40x256xf32>
    %18 = arith.mulf %17, %14 : vector<40x256xf32>
    %19 = arith.select %16, %14, %18 : vector<40x256xi1>, vector<40x256xf32>
    %c104 = arith.constant 104 : index
    %c0_12 = arith.constant 0 : index
    %20 = vector.load %arg3[%c104, %c0_12] : memref<240x128xf32, #tpu.memory_space<vmem>>, vector<40x40xf32>
    %cst_13 = arith.constant dense<0.000000e+00> : vector<40x256xf32>
    %21 = tpu.matmul %20, %19, %cst_13 {dimension_numbers = #tpu.dot_dimension_numbers<[1], [0], [0], [1], [0, 0, 1, 1], [], []>, precision = #tpu.contract_precision<fp32>} : vector<40x40xf32>, vector<40x256xf32>, vector<40x256xf32> -> vector<40x256xf32>
    %c192 = arith.constant 192 : index
    %c0_14 = arith.constant 0 : index
    %22 = vector.load %arg3[%c192, %c0_14] : memref<240x128xf32, #tpu.memory_space<vmem>>, vector<40x1xf32>
    %23 = vector.broadcast %22 : vector<40x1xf32> to vector<40x256xf32>
    %24 = arith.addf %21, %23 : vector<40x256xf32>
    %cst_15 = arith.constant 0.000000e+00 : f32
    %25 = vector.broadcast %cst_15 : f32 to vector<40x256xf32>
    %26 = arith.cmpf ogt, %24, %25 : vector<40x256xf32>
    %cst_16 = arith.constant 2.000000e-01 : f32
    %27 = vector.broadcast %cst_16 : f32 to vector<40x256xf32>
    %28 = arith.mulf %27, %24 : vector<40x256xf32>
    %29 = arith.select %26, %24, %28 : vector<40x256xi1>, vector<40x256xf32>
    %c144 = arith.constant 144 : index
    %c0_17 = arith.constant 0 : index
    %30 = vector.load %arg3[%c144, %c0_17] : memref<240x128xf32, #tpu.memory_space<vmem>>, vector<4x40xf32>
    %cst_18 = arith.constant dense<0.000000e+00> : vector<4x256xf32>
    %31 = tpu.matmul %30, %29, %cst_18 {dimension_numbers = #tpu.dot_dimension_numbers<[1], [0], [0], [1], [0, 0, 1, 1], [], []>, precision = #tpu.contract_precision<fp32>} : vector<4x40xf32>, vector<40x256xf32>, vector<4x256xf32> -> vector<4x256xf32>
    %c232 = arith.constant 232 : index
    %c0_19 = arith.constant 0 : index
    %32 = vector.load %arg3[%c232, %c0_19] : memref<240x128xf32, #tpu.memory_space<vmem>>, vector<4x1xf32>
    %33 = vector.broadcast %32 : vector<4x1xf32> to vector<4x256xf32>
    %34 = arith.addf %31, %33 : vector<4x256xf32>
    %35 = vector.extract_strided_slice %34 {offsets = [0, 0], sizes = [1, 256], strides = [1, 1]} : vector<4x256xf32> to vector<1x256xf32>
    %c0_20 = arith.constant 0 : index
    %c0_21 = arith.constant 0 : index
    %36 = vector.load %arg2[%c0_20, %c0_21] : memref<64x256xf32, #tpu.memory_space<vmem>>, vector<16x256xf32>
    %37 = vector.broadcast %35 : vector<1x256xf32> to vector<16x256xf32>
    %38 = arith.mulf %37, %36 : vector<16x256xf32>
    %39 = vector.extract_strided_slice %34 {offsets = [1, 0], sizes = [1, 256], strides = [1, 1]} : vector<4x256xf32> to vector<1x256xf32>
    %c16_22 = arith.constant 16 : index
    %c0_23 = arith.constant 0 : index
    %40 = vector.load %arg2[%c16_22, %c0_23] : memref<64x256xf32, #tpu.memory_space<vmem>>, vector<16x256xf32>
    %41 = vector.broadcast %39 : vector<1x256xf32> to vector<16x256xf32>
    %42 = arith.mulf %41, %40 : vector<16x256xf32>
    %43 = arith.addf %38, %42 : vector<16x256xf32>
    %44 = vector.extract_strided_slice %34 {offsets = [2, 0], sizes = [1, 256], strides = [1, 1]} : vector<4x256xf32> to vector<1x256xf32>
    %c32 = arith.constant 32 : index
    %c0_24 = arith.constant 0 : index
    %45 = vector.load %arg2[%c32, %c0_24] : memref<64x256xf32, #tpu.memory_space<vmem>>, vector<16x256xf32>
    %46 = vector.broadcast %44 : vector<1x256xf32> to vector<16x256xf32>
    %47 = arith.mulf %46, %45 : vector<16x256xf32>
    %48 = arith.addf %43, %47 : vector<16x256xf32>
    %49 = vector.extract_strided_slice %34 {offsets = [3, 0], sizes = [1, 256], strides = [1, 1]} : vector<4x256xf32> to vector<1x256xf32>
    %c48 = arith.constant 48 : index
    %c0_25 = arith.constant 0 : index
    %50 = vector.load %arg2[%c48, %c0_25] : memref<64x256xf32, #tpu.memory_space<vmem>>, vector<16x256xf32>
    %51 = vector.broadcast %49 : vector<1x256xf32> to vector<16x256xf32>
    %52 = arith.mulf %51, %50 : vector<16x256xf32>
    %53 = arith.addf %48, %52 : vector<16x256xf32>
    %c0_26 = arith.constant 0 : index
    %c0_27 = arith.constant 0 : index
    %54 = vector.load %arg4[%c0_26, %c0_27] : memref<16x256xf32, #tpu.memory_space<vmem>>, vector<16x256xf32>
    tpu.vector_store %arg4[%c0_26, %c0_27], %53 {strides = array<i32>} : memref<16x256xf32, #tpu.memory_space<vmem>>, vector<16x256xf32>,
    return
  }
  func.func @transform_0(%arg0: i32) -> (i32, i32) {
    %c0_i32 = arith.constant 0 : i32
    %c0_i32_0 = arith.constant 0 : i32
    return %c0_i32, %arg0 : i32, i32
  }
  func.func @transform_1(%arg0: i32) -> (i32, i32) {
    %c0_i32 = arith.constant 0 : i32
    %c0_i32_0 = arith.constant 0 : i32
    return %c0_i32, %arg0 : i32, i32
  }
  func.func @transform_2(%arg0: i32) -> (i32, i32) {
    %c0_i32 = arith.constant 0 : i32
    %c0_i32_0 = arith.constant 0 : i32
    %c0_i32_1 = arith.constant 0 : i32
    return %c0_i32, %c0_i32_0 : i32, i32
  }
  func.func @transform_3(%arg0: i32) -> (i32, i32) {
    %c0_i32 = arith.constant 0 : i32
    %c0_i32_0 = arith.constant 0 : i32
    return %c0_i32, %arg0 : i32, i32
  }
}

</mosaic_0001>

<bundles_post_ra>
// kernel: knn_dist_forward.2
= control target key start
LH: loop header
LB: loop body
LE: loop exit
PB: predicated region body
PF: predicated region fallthrough
CT: control target
= control target key end

     0   :  { %s3909_s15 = smov 0   ;;  %s3911_s16 = smov 0   ;;  %s6471_s0 = inlined_call_operand.vmem [shape: f32[2,256,3], index: 0, kind: input, shape index: {}, may-alias: {0,1}]   ;;  %s6472_s1 = inlined_call_operand.vmem [shape: f32[2,256,3], index: 1, kind: input, shape index: {}, may-alias: {0,1}]   ;;  %s6473_s2 = inlined_call_operand.vmem [shape: f32[2,256,1], index: 2, kind: input, shape index: {}]   ;;  %s6474_s3 = inlined_call_operand.vmem [shape: f32[2,1,256], index: 3, kind: input, shape index: {}]   ;;  %s6475_s4 = inlined_call_operand.vmem [shape: s32[2,256,4], index: 4, kind: output, shape index: {}]  }
   0x1   :  { %6594 = sst [smem:[#allocation64_spill]] %s6471_s0  ;;  %s3913_s17 = smov 0  }
   0x2   :  { %s3915_s18 = smov 0   ;;  %s3917_s19 = smov 0  }
   0x3   :  { %s3919_s20 = smov 0   ;;  %s3921_s21 = smov 0  }
   0x4 LB: > { %s26_s22 = sadd.s32 1, %s3867_s18  ;;  %s29_s23 = sadd.s32 1, %s3871_s19  ;;  %s3879_s21 = sphi %s3921_s21, %s14_s21   ;;  %s3875_s20 = sphi %s3919_s20, %s6872_s20   ;;  %s3871_s19 = sphi %s3917_s19, %s6871_s19   ;;  %s3867_s18 = sphi %s3915_s18, %s6870_s18   ;;  %s3863_s17 = sphi %s3913_s17, %s6869_s17   ;;  %s3859_s16 = sphi %s3911_s16, %s6868_s16   ;;  %s3855_s15 = sphi %s3909_s15, %s6867_s15  }
   0x5   : > { %p27_p0 = scmp.ge.s32.totalorder %s26_s22, 2  ;;  %p3168_p1 = scmp.ge.s32.totalorder %s3879_s21, 1 }
   0x6   : > { %p238_p2 = scmp.lt.s32.totalorder %s3879_s21, 9  ;;  %s33_s24 = sadd.s32 1, %s3875_s20 }
   0x7   : > { %s6874_s22 = smov (%p27_p0, %s26_s22), 0  ;;  %s6876_s23 = smov (!%p27_p0, %s29_s23), %s3871_s19 }
   0x8   : > { %p239_p3 = pnand %p3168_p1, %p238_p2  ;;  %p31_p4 = scmp.ge.s32.totalorder %s6876_s23, 2 }
   0xa   : > { %s6878_s23 = smov (%p31_p4, %s6876_s23), 0  ;;  %s6880_s24 = smov (!%p31_p4, %s33_s24), %s3875_s20 }
   0xb   : > { %p35_p5 = scmp.ge.s32.totalorder %s6880_s24, 2  ;;  %242 = sbr.rel (%p239_p3) target bundleno = 1638 (0x666), region = 36 }
   0xd   : > { %s6882_s24 = smov (%p35_p5, %s6880_s24), 0 }
  0x10   : > { %s3169_s25 = sshll.u32 %s3859_s16, 4  ;;  %p298_p6 = scmp.lt.s32.totalorder %s3863_s17, 1 }
  0x11   : > { %p300_p7 = scmp.lt.s32.totalorder %s3169_s25, 31  ;;  %s3172_s26 = sshll.u32 %s3855_s15, 4 }
  0x12   : > { %s6884_s17 = smov (!%p298_p6, %s3863_s17), 1  ;;  %p310_p8 = scmp.lt.s32.totalorder %s3172_s26, 31 }
  0x13   : > { %s6886_s25 = smov (!%p300_p7, %s3169_s25), 31  ;;  %s3170_s27 = sshll.u32 %s6884_s17, 5 }
  0x14   : > { %s303_s28 = sadd.s32 %s3170_s27, %s6886_s25  ;;  %p329_p9 = scmp.lt.s32.totalorder %s3855_s15, 1 }
  0x15   : > { %s3171_s29 = sshll.u32 %s303_s28, 3  ;;  %s3178_s30 = sshll.u32 %s6884_s17, 1 }
  0x16   : > { %s6595_s0 = sld [smem:[#allocation64_spill]]  ;;  %s3963_s10 = scalar_lea.vmem %s6473_s2, %s3171_s29 }
  0x17   : > { %s6888_s26 = smov (!%p310_p8, %s3172_s26), 31  ;;  %s3969_s16 = scalar_lea.vmem %s6475_s4, %s3171_s29 }
  0x18   : > { %s330_s11 = scalar_select %p329_p9, %s3855_s15, 1 }
  0x19   : > { %s313_s12 = sadd.s32 %s3170_s27, %s6888_s26  ;;  %p3182_p10 = scmp.ne.s32.totalorder %s3855_s15, 0 }
  0x1a   : > { %s3174_s25 = sshll.u32 %s313_s12, 3  ;;  %s3971_s17 = sadd.s32 %s3178_s30, %s330_s11 }
  0x1b   : > { %s3976_s6 = scalar_lea.vmem %s6472_s1, %s3174_s25  ;;  %347 = sbr.rel (%p3182_p10) target bundleno = 49 (0x31), region = 40 }
  0x1c   : > { %s3958_s7 = scalar_lea.vmem %s6595_s0, %s3171_s29  ;;  %s333_s0 = scalar_lea.vmem %s6474_s3, %s3971_s17 }
  0x20   : > { %v3881_v0 = vmov inf   ;;  %v3882_v1 = vmov 1.0737418e+09  }
  0x21   : > { %348 = vst [vmem:[#allocation2 + $0x30] sm:$0xff] %v3881_v0  ;;  %349 = vst [vmem:[#allocation2] sm:$0xff] %v3881_v0 }
  0x22   : > { %350 = vst [vmem:[#allocation2 + $0x58] sm:$0xff] %v3881_v0  ;;  %351 = vst [vmem:[#allocation2 + $0x18] sm:$0xff] %v3881_v0 }
  0x23   : > { %352 = vst [vmem:[#allocation2 + $0x50] sm:$0xff] %v3881_v0  ;;  %353 = vst [vmem:[#allocation2 + $0x68] sm:$0xff] %v3881_v0 }
  0x24   : > { %354 = vst [vmem:[#allocation2 + $0x8] sm:$0xff] %v3881_v0  ;;  %355 = vst [vmem:[#allocation2 + $0x48] sm:$0xff] %v3881_v0 }
  0x25   : > { %356 = vst [vmem:[#allocation2 + $0x40] sm:$0xff] %v3881_v0  ;;  %357 = vst [vmem:[#allocation2 + $0x20] sm:$0xff] %v3881_v0 }
  0x26   : > { %358 = vst [vmem:[#allocation2 + $0x10] sm:$0xff] %v3881_v0  ;;  %359 = vst [vmem:[#allocation2 + $0x38] sm:$0xff] %v3881_v0 }
  0x27   : > { %360 = vst [vmem:[#allocation2 + $0x60] sm:$0xff] %v3881_v0  ;;  %361 = vst [vmem:[#allocation2 + $0x70] sm:$0xff] %v3881_v0 }
  0x28   : > { %362 = vst [vmem:[#allocation2 + $0x78] sm:$0xff] %v3881_v0  ;;  %363 = vst [vmem:[#allocation2 + $0x28] sm:$0xff] %v3881_v0 }
  0x29   : > { %364 = vst [vmem:[#allocation3 + $0x28] sm:$0xff] %v3882_v1  ;;  %365 = vst [vmem:[#allocation3 + $0x68] sm:$0xff] %v3882_v1 }
  0x2a   : > { %366 = vst [vmem:[#allocation3 + $0x10] sm:$0xff] %v3882_v1  ;;  %367 = vst [vmem:[#allocation3 + $0x40] sm:$0xff] %v3882_v1 }
  0x2b   : > { %368 = vst [vmem:[#allocation3 + $0x48] sm:$0xff] %v3882_v1  ;;  %369 = vst [vmem:[#allocation3 + $0x30] sm:$0xff] %v3882_v1 }
  0x2c   : > { %370 = vst [vmem:[#allocation3 + $0x70] sm:$0xff] %v3882_v1  ;;  %371 = vst [vmem:[#allocation3 + $0x38] sm:$0xff] %v3882_v1 }
  0x2d   : > { %372 = vst [vmem:[#allocation3 + $0x20] sm:$0xff] %v3882_v1  ;;  %373 = vst [vmem:[#allocation3 + $0x78] sm:$0xff] %v3882_v1 }
  0x2e   : > { %374 = vst [vmem:[#allocation3 + $0x18] sm:$0xff] %v3882_v1  ;;  %375 = vst [vmem:[#allocation3 + $0x58] sm:$0xff] %v3882_v1 }
  0x2f   : > { %376 = vst [vmem:[#allocation3] sm:$0xff] %v3882_v1  ;;  %377 = vst [vmem:[#allocation3 + $0x8] sm:$0xff] %v3882_v1 }
  0x30   : > { %378 = vst [vmem:[#allocation3 + $0x60] sm:$0xff] %v3882_v1  ;;  %379 = vst [vmem:[#allocation3 + $0x50] sm:$0xff] %v3882_v1 }
  0x31 PF: > { %v411_v2 = vld [vmem:[%s3976_s6 + $0x78] sm:$0xff]  ;;  %vm412_vm0 = vcmask 23552   ;;  %v410_v3 = vld [vmem:[%s3976_s6 + $0x70] sm:$0xff]  ;;  %v409_v4 = vld [vmem:[%s3976_s6 + $0x68] sm:$0xff]  ;;  %p3185_p11 = scmp.ne.s32.totalorder %s3855_s15, 1 }
  0x32   : > { %v507_v5 = vsel %vm412_vm0, %v411_v2, 0  ;;  %v504_v6 = vsel %vm412_vm0, %v410_v3, 0  ;;  %v501_v7 = vsel %vm412_vm0, %v409_v4, 0  ;;  %v408_v8 = vld [vmem:[%s3976_s6 + $0x60] sm:$0xff]  ;;  %v407_v9 = vld [vmem:[%s3976_s6 + $0x58] sm:$0xff]  ;;  %v406_v14 = vld [vmem:[%s3976_s6 + $0x50] sm:$0xff] }
  0x33   : > { %v3991_v10 = vand.u32 4294901760, %v507_v5  ;;  %v3993_v11 = vand.u32 4294901760, %v504_v6  ;;  %v3995_v12 = vand.u32 4294901760, %v501_v7  ;;  %v498_v13 = vsel %vm412_vm0, %v408_v8, 0  ;;  %v405_v26 = vld [vmem:[%s3976_s6 + $0x48] sm:$0xff]  ;;  %v404_v36 = vld [vmem:[%s3976_s6 + $0x40] sm:$0xff] }
  0x34   : > { %v3999_v15 = vand.u32 4294901760, %v498_v13  ;;  %v495_v16 = vsel %vm412_vm0, %v407_v9, 0  ;;  %v492_v21 = vsel %vm412_vm0, %v406_v14, 0  ;;  %v489_v30 = vsel %vm412_vm0, %v405_v26, 0  ;;  %v403_v43 = vld [vmem:[%s3976_s6 + $0x38] sm:$0xff]  ;;  %v380_v50 = vld [vmem:[%s3958_s7] sm:$0xff] }
  0x35   : > { %3380 = vmatprep.subr.mxu0 %v3991_v10  ;;  %v4004_v17 = vsub.f32 %v507_v5, %v3991_v10  ;;  %v4007_v18 = vsub.f32 %v504_v6, %v3993_v11  ;;  %v4010_v19 = vsub.f32 %v501_v7, %v3995_v12  ;;  %v4013_v20 = vand.u32 4294901760, %v495_v16  ;;  %v402_v51 = vld [vmem:[%s3976_s6 + $0x30] sm:$0xff]  ;;  %v401_v59 = vld [vmem:[%s3976_s6 + $0x28] sm:$0xff]  ;;  %v400_v4 = vld [vmem:[%s3976_s6 + $0x20] sm:$0xff] }
  0x36   : > { %3381 = vmatpush3.xpose.msra.mxu0 %v3991_v10  ;;  %v4027_v25 = vsub.f32 %v498_v13, %v3999_v15  ;;  %v4035_v29 = vand.u32 4294901760, %v492_v21  ;;  %v4049_v37 = vand.u32 4294901760, %v489_v30  ;;  %v486_v42 = vsel %vm412_vm0, %v404_v36, 0  ;;  %v398_v36 = vld [vmem:[%s3976_s6 + $0x10] sm:$0xff] }
  0x37   : > { %3382 = vmatprep.subr.mxu0 %v3993_v11  ;;  %v4018_v22 = vand.u32 4294901760, %v4004_v17  ;;  %v4021_v23 = vand.u32 4294901760, %v4007_v18  ;;  %v4024_v24 = vand.u32 4294901760, %v4010_v19  ;;  %v4039_v31 = vsub.f32 %v495_v16, %v4013_v20 }
  0x38   : > { %v4045_v35 = vand.u32 4294901760, %v4027_v25  ;;  %v4052_v38 = vsub.f32 %v492_v21, %v4035_v29  ;;  %v4067_v45 = vsub.f32 %v489_v30, %v4049_v37  ;;  %v4072_v48 = vand.u32 4294901760, %v486_v42  ;;  %v399_v21 = vld [vmem:[%s3976_s6 + $0x18] sm:$0xff] }
  0x39   : > { %6596 = vst [vmem:[#allocation4_spill] sm:$0xff] %v4018_v22  ;;  %6597 = vst [vmem:[#allocation5_spill] sm:$0xff] %v4021_v23  ;;  %v754_v27 = vsub.f32 %v4004_v17, %v4018_v22  ;;  %v761_v28 = vsub.f32 %v4007_v18, %v4021_v23  ;;  %v768_v34 = vsub.f32 %v4010_v19, %v4024_v24  ;;  %v4058_v41 = vand.u32 4294901760, %v4039_v31 }
  0x3a   : > { %6598 = vst [vmem:[#allocation6_spill] sm:$0xff] %v4024_v24  ;;  %3383 = vmatpush3.xpose.msra.mxu0 %v3993_v11  ;;  %6599 = vst [vmem:[#allocation7_spill] sm:$0xff] %v4045_v35  ;;  %v775_v40 = vsub.f32 %v4027_v25, %v4045_v35  ;;  %v4064_v44 = vand.u32 4294901760, %v4052_v38  ;;  %v483_v49 = vsel %vm412_vm0, %v403_v43, 0  ;;  %v4083_v54 = vand.u32 4294901760, %v4067_v45  ;;  %v390_v35 = vld [vmem:[%s3958_s7 + $0x50] sm:$0xff] }
  0x3b   : > { %3384 = vmatprep.subr.mxu0 %v3995_v12  ;;  %v755_v32 = vand.u32 4294901760, %v754_v27  ;;  %v762_v33 = vand.u32 4294901760, %v761_v28  ;;  %v769_v39 = vand.u32 4294901760, %v768_v34  ;;  %6600 = vst [vmem:[#allocation8_spill] sm:$0xff] %v4058_v41  ;;  %v782_v47 = vsub.f32 %v4039_v31, %v4058_v41  ;;  %v391_v24 = vld [vmem:[%s3958_s7 + $0x58] sm:$0xff] }
  0x3c   : > { %6601 = vst [vmem:[#allocation9_spill] sm:$0xff] %v4064_v44  ;;  %v776_v46 = vand.u32 4294901760, %v775_v40  ;;  %v789_v52 = vsub.f32 %v4052_v38, %v4064_v44  ;;  %v4080_v53 = vand.u32 4294901760, %v483_v49  ;;  %6602 = vst [vmem:[#allocation10_spill] sm:$0xff] %v4083_v54  ;;  %v414_v55 = vsel %vm412_vm0, %v380_v50, 0 }
  0x3d   : > { %3436 = vmatprep.subr.mxu1 %v755_v32  ;;  %v783_v56 = vand.u32 4294901760, %v782_v47  ;;  %v480_v57 = vsel %vm412_vm0, %v402_v51, 0  ;;  %v4089_v58 = vsub.f32 %v486_v42, %v4072_v48  ;;  %v4092_v60 = vand.u32 4294901760, %v414_v55 }
  0x3e   : > { %3385 = vmatpush3.xpose.msra.mxu0 %v3995_v12  ;;  %3437 = vmatpush3.xpose.msra.mxu1 %v755_v32  ;;  %v790_v62 = vand.u32 4294901760, %v789_v52  ;;  %v4099_v63 = vand.u32 4294901760, %v480_v57  ;;  %v477_v0 = vsel %vm412_vm0, %v401_v59, 0  ;;  %v796_v1 = vsub.f32 %v4067_v45, %v4083_v54  ;;  %v381_v59 = vld [vmem:[%s3958_s7 + $0x8] sm:$0xff] }
  0x3f   : > { %3386 = vmatprep.subr.mxu0 %v3999_v15  ;;  %3438 = vmatprep.subr.mxu1 %v762_v33  ;;  %6603 = vst [vmem:[#allocation11_spill] sm:$0xff] %v4092_v60  ;;  %v4095_v61 = vsub.f32 %v414_v55, %v4092_v60  ;;  %v4106_v2 = vand.u32 4294901760, %v4089_v58  ;;  %v4109_v3 = vsub.f32 %v483_v49, %v4080_v53  ;;  %v4117_v7 = vand.u32 4294901760, %v477_v0  ;;  %v397_v49 = vld [vmem:[%s3976_s6 + $0x8] sm:$0xff] }
  0x40   : > { %3468 = vmatprep.mubr.f32.mxu1 %v4092_v60  ;;  %v474_v8 = vsel %vm412_vm0, %v400_v4, 0  ;;  %v4121_v9 = vsub.f32 %v480_v57, %v4099_v63  ;;  %v797_v13 = vand.u32 4294901760, %v796_v1  ;;  %v471_v28 = vsel %vm412_vm0, %v399_v21, 0  ;;  %v382_v4 = vld [vmem:[%s3958_s7 + $0x10] sm:$0xff]  ;;  %v383_v21 = vld [vmem:[%s3958_s7 + $0x18] sm:$0xff] }
  0x41   : > { %6604 = vst [vmem:[#allocation12_spill] sm:$0xff] %v4106_v2  ;;  %v6476_v5 = vand.u32 4294901760, %v4095_v61  ;;  %v803_v14 = vsub.f32 %v4089_v58, %v4106_v2  ;;  %v4127_v16 = vand.u32 4294901760, %v4109_v3  ;;  %v4131_v27 = vand.u32 4294901760, %v474_v8 }
  0x42   : > { %3387 = vmatpush3.xpose.msra.mxu0 %v3999_v15  ;;  %3439 = vmatpush3.xpose.msra.mxu1 %v762_v33  ;;  %v4138_v33 = vand.u32 4294901760, %v4121_v9  ;;  %v4141_v34 = vsub.f32 %v477_v0, %v4117_v7  ;;  %v468_v40 = vsel %vm412_vm0, %v398_v36, 0  ;;  %v465_v51 = vsel %vm412_vm0, %v397_v49, 0 }
  0x43   : > { %3388 = vmatprep.subr.mxu0 %v4013_v20  ;;  %3440 = vmatprep.subr.mxu1 %v769_v39  ;;  %v593_v6 = vsub.f32 %v4095_v61, %v6476_v5  ;;  %6605 = vst [vmem:[#allocation13_spill] sm:$0xff] %v4127_v16  ;;  %v804_v30 = vand.u32 4294901760, %v803_v14  ;;  %v810_v32 = vsub.f32 %v4109_v3, %v4127_v16  ;;  %v4159_v50 = vand.u32 4294901760, %v468_v40  ;;  %v388_v16 = vld [vmem:[%s3958_s7 + $0x40] sm:$0xff] }
  0x44   : > { %6606 = vst [vmem:[#allocation14_spill] sm:$0xff] %v4138_v33  ;;  %v817_v43 = vsub.f32 %v4121_v9, %v4138_v33  ;;  %v4155_v47 = vsub.f32 %v474_v8, %v4131_v27  ;;  %v4174_v0 = vand.u32 4294901760, %v465_v51  ;;  %v417_v1 = vsel %vm412_vm0, %v381_v59, 0 }
  0x45   : > { %v594_v26 = vand.u32 4294901760, %v593_v6  ;;  %v811_v42 = vand.u32 4294901760, %v810_v32  ;;  %6608 = vst [vmem:[#allocation16_spill] sm:$0xff] %v4159_v50  ;;  %v4185_v14 = vsub.f32 %v468_v40, %v4159_v50  ;;  %v384_v32 = vld [vmem:[%s3958_s7 + $0x20] sm:$0xff]  ;;  %v438_v54 = vsel %vm412_vm0, %v388_v16, 0 }
  0x46   : > { %3389 = vmatpush3.xpose.msra.mxu0 %v4013_v20  ;;  %3441 = vmatpush3.xpose.msra.mxu1 %v769_v39  ;;  %v4145_v39 = vand.u32 4294901760, %v471_v28  ;;  %v818_v52 = vand.u32 4294901760, %v817_v43  ;;  %6610 = vst [vmem:[#allocation18_spill] sm:$0xff] %v4174_v0  ;;  %v4195_v36 = vsub.f32 %v465_v51, %v4174_v0  ;;  %v385_v43 = vld [vmem:[%s3958_s7 + $0x28] sm:$0xff]  ;;  %v426_v51 = vsel %vm412_vm0, %v384_v32, 0 }
  0x47   : > { %3390 = vmatprep.subr.mxu0 %v4035_v29  ;;  %3442 = vmatprep.subr.mxu1 %v776_v46  ;;  %v4205_v59 = vand.u32 4294901760, %v4185_v14  ;;  %v444_v22 = vsel %vm412_vm0, %v390_v35, 0  ;;  %v393_v35 = vld [vmem:[%s3958_s7 + $0x68] sm:$0xff] }
  0x48   : > { %3412 = vmatprep.mubr.f32.mxu0 %v594_v26  ;;  %v4169_v57 = vsub.f32 %v471_v28, %v4145_v39  ;;  %v4189_v28 = vand.u32 4294901760, %v417_v1  ;;  %v4219_v5 = vand.u32 4294901760, %v4195_v36 }
  0x49   : > { %6613 = vst [vmem:[#allocation21_spill] sm:$0xff] %v4205_v59 }
  0x4a   : > { %3391 = vmatpush3.xpose.msra.mxu0 %v4035_v29  ;;  %3443 = vmatpush3.xpose.msra.mxu1 %v776_v46  ;;  %v4152_v46 = vand.u32 4294901760, %v4141_v34  ;;  %6615 = vst [vmem:[#allocation23_spill] sm:$0xff] %v4219_v5 }
  0x4b   : > { %3392 = vmatprep.subr.mxu0 %v4049_v37  ;;  %3444 = vmatprep.subr.mxu1 %v783_v56 }
  0x4c   : > { %6607 = vst [vmem:[#allocation15_spill] sm:$0xff] %v4152_v46  ;;  %v824_v55 = vsub.f32 %v4141_v34, %v4152_v46 }
  0x4e   : > { %3393 = vmatpush3.xpose.msra.mxu0 %v4049_v37  ;;  %3445 = vmatpush3.xpose.msra.mxu1 %v783_v56  ;;  %v4166_v56 = vand.u32 4294901760, %v4155_v47  ;;  %v825_v6 = vand.u32 4294901760, %v824_v55 }
  0x4f   : > { %3394 = vmatprep.subr.mxu0 %v4072_v48  ;;  %3446 = vmatprep.subr.mxu1 %v790_v62 }
  0x50   : > { %6609 = vst [vmem:[#allocation17_spill] sm:$0xff] %v4166_v56  ;;  %v831_v8 = vsub.f32 %v4155_v47, %v4166_v56 }
  0x52   : > { %3395 = vmatpush3.xpose.msra.mxu0 %v4072_v48  ;;  %3447 = vmatpush3.xpose.msra.mxu1 %v790_v62  ;;  %v396_v62 = vld [vmem:[%s3976_s6] sm:$0xff]  ;;  %v832_v40 = vand.u32 4294901760, %v831_v8  ;;  %v386_v8 = vld [vmem:[%s3958_s7 + $0x30] sm:$0xff] }
  0x53   : > { %3396 = vmatprep.subr.mxu0 %v4080_v53  ;;  %3448 = vmatprep.subr.mxu1 %v797_v13  ;;  %v462_v26 = vsel %vm412_vm0, %v396_v62, 0  ;;  %v4211_v62 = vsub.f32 %v417_v1, %v4189_v28  ;;  %v845_v1 = vsub.f32 %v4185_v14, %v4205_v59  ;;  %v432_v33 = vsel %vm412_vm0, %v386_v8, 0 }
  0x54   : > { %v4202_v55 = vand.u32 4294901760, %v462_v26  ;;  %v4252_v60 = vand.u32 4294901760, %v432_v33 }
  0x55   : > { %6614 = vst [vmem:[#allocation22_spill] sm:$0xff] %v4211_v62 }
  0x56   : > { %3397 = vmatpush3.xpose.msra.mxu0 %v4080_v53  ;;  %3449 = vmatpush3.xpose.msra.mxu1 %v797_v13  ;;  %v4182_v13 = vand.u32 4294901760, %v4169_v57  ;;  %6612 = vst [vmem:[#allocation20_spill] sm:$0xff] %v4202_v55  ;;  %v4226_v56 = vsub.f32 %v462_v26, %v4202_v55  ;;  %v852_v26 = vsub.f32 %v4195_v36, %v4219_v5 }
  0x57   : > { %3398 = vmatprep.subr.mxu0 %v4099_v63  ;;  %3450 = vmatprep.subr.mxu1 %v804_v30 }
  0x58   : > { %6611 = vst [vmem:[#allocation19_spill] sm:$0xff] %v4182_v13  ;;  %v838_v49 = vsub.f32 %v4169_v57, %v4182_v13  ;;  %v387_v13 = vld [vmem:[%s3958_s7 + $0x38] sm:$0xff]  ;;  %6616 = vst [vmem:[#allocation24_spill] sm:$0xff] %v4226_v56  ;;  %v4247_v8 = vand.u32 4294901760, %v4226_v56  ;;  %v853_v41 = vand.u32 4294901760, %v852_v26 }
  0x59   : > { %v435_v59 = vsel %vm412_vm0, %v387_v13, 0  ;;  %v389_v13 = vld [vmem:[%s3958_s7 + $0x48] sm:$0xff] }
  0x5a   : > { %3399 = vmatpush3.xpose.msra.mxu0 %v4099_v63  ;;  %3451 = vmatpush3.xpose.msra.mxu1 %v804_v30  ;;  %v420_v30 = vsel %vm412_vm0, %v382_v4, 0  ;;  %v839_v32 = vand.u32 4294901760, %v838_v49  ;;  %6619 = vst [vmem:[#allocation27_spill] sm:$0xff] %v4247_v8  ;;  %v4259_v5 = vand.u32 4294901760, %v435_v59  ;;  %v441_v2 = vsel %vm412_vm0, %v389_v13, 0 }
  0x5b   : > { %3400 = vmatprep.subr.mxu0 %v4117_v7  ;;  %3452 = vmatprep.subr.mxu1 %v811_v42  ;;  %v859_v16 = vsub.f32 %v4226_v56, %v4247_v8 }
  0x5c   : > { %v4284_v23 = vsub.f32 %v435_v59, %v4259_v5 }
  0x5d   : > { %v860_v59 = vand.u32 4294901760, %v859_v16  ;;  %v4308_v16 = vand.u32 4294901760, %v444_v22 }
  0x5e   : > { %3401 = vmatpush3.xpose.msra.mxu0 %v4117_v7  ;;  %3453 = vmatpush3.xpose.msra.mxu1 %v811_v42  ;;  %v423_v42 = vsel %vm412_vm0, %v383_v21, 0  ;;  %v429_v21 = vsel %vm412_vm0, %v385_v43, 0  ;;  %v4228_v43 = vand.u32 4294901760, %v426_v51 }
  0x5f   : > { %3402 = vmatprep.subr.mxu0 %v4131_v27  ;;  %3454 = vmatprep.subr.mxu1 %v818_v52  ;;  %v4213_v4 = vand.u32 4294901760, %v423_v42 }
  0x61   : > { %v4238_v49 = vsub.f32 %v423_v42, %v4213_v4  ;;  %v4250_v42 = vsub.f32 %v426_v51, %v4228_v43  ;;  %v4276_v51 = vand.u32 4294901760, %v438_v54 }
  0x62   : > { %3403 = vmatpush3.xpose.msra.mxu0 %v4131_v27  ;;  %3455 = vmatpush3.xpose.msra.mxu1 %v818_v52  ;;  %v4207_v52 = vand.u32 4294901760, %v420_v30 }
  0x63   : > { %3404 = vmatprep.subr.mxu0 %v4145_v39  ;;  %3456 = vmatprep.subr.mxu1 %v825_v6  ;;  %6618 = vst [vmem:[#allocation26_spill] sm:$0xff] %v4238_v49  ;;  %6620 = vst [vmem:[#allocation28_spill] sm:$0xff] %v4250_v42  ;;  %v6624_v8 = vand.u32 4294901760, %v4238_v49 }
  0x64   : > { %v4231_v46 = vsub.f32 %v420_v30, %v4207_v52  ;;  %v846_v30 = vand.u32 4294901760, %v845_v1  ;;  %v6622_v1 = vand.u32 4294901760, %v4211_v62 }
  0x66   : > { %3405 = vmatpush3.xpose.msra.mxu0 %v4145_v39  ;;  %3457 = vmatpush3.xpose.msra.mxu1 %v825_v6  ;;  %6617 = vst [vmem:[#allocation25_spill] sm:$0xff] %v4231_v46  ;;  %v4233_v6 = vand.u32 4294901760, %v429_v21  ;;  %v603_v44 = vsub.f32 %v4211_v62, %v6622_v1  ;;  %v4274_v1 = vsub.f32 %v432_v33, %v4252_v60  ;;  %v4289_v33 = vand.u32 4294901760, %v441_v2 }
  0x67   : > { %3406 = vmatprep.subr.mxu0 %v4159_v50  ;;  %3458 = vmatprep.subr.mxu1 %v832_v40 }
  0x68   : > { %v604_v62 = vand.u32 4294901760, %v603_v44  ;;  %v6625_v44 = vand.u32 4294901760, %v4250_v42 }
  0x6a   : > { %3407 = vmatpush3.xpose.msra.mxu0 %v4159_v50  ;;  %3459 = vmatpush3.xpose.msra.mxu1 %v832_v40  ;;  %v4257_v40 = vsub.f32 %v429_v21, %v4233_v6  ;;  %v623_v21 = vsub.f32 %v4238_v49, %v6624_v8  ;;  %v633_v13 = vsub.f32 %v4250_v42, %v6625_v44 }
  0x6b   : > { %3408 = vmatprep.subr.mxu0 %v4174_v0  ;;  %3460 = vmatprep.subr.mxu1 %v839_v32  ;;  %v4301_v49 = vsub.f32 %v438_v54, %v4276_v51  ;;  %v4311_v44 = vsub.f32 %v441_v2, %v4289_v33 }
  0x6c   : > { %6621 = vst [vmem:[#allocation29_spill] sm:$0xff] %v4257_v40  ;;  %v624_v50 = vand.u32 4294901760, %v623_v21 }
  0x6d   : > { %v672_v2 = vand.u32 4294901760, %v4301_v49 }
  0x6e   : > { %3409 = vmatpush3.xpose.msra.mxu0 %v4174_v0  ;;  %3461 = vmatpush3.xpose.msra.mxu1 %v839_v32  ;;  %v6623_v32 = vand.u32 4294901760, %v4231_v46  ;;  %v634_v0 = vand.u32 4294901760, %v633_v13  ;;  %v6529_v13 = vand.u32 4294901760, %v4311_v44 }
  0x6f   : > { %3410 = vmatprep.subr.mxu0 %v4202_v55  ;;  %3462 = vmatprep.subr.mxu1 %v846_v30 }
  0x70   : > { %v613_v26 = vsub.f32 %v4231_v46, %v6623_v32  ;;  %v447_v32 = vsel %vm412_vm0, %v391_v24, 0  ;;  %v392_v46 = vld [vmem:[%s3958_s7 + $0x60] sm:$0xff] }
  0x71   : > { %v4313_v8 = vand.u32 4294901760, %v447_v32  ;;  %v450_v54 = vsel %vm412_vm0, %v392_v46, 0  ;;  %v4329_v46 = vsub.f32 %v444_v22, %v4308_v16 }
  0x72   : > { %3411 = vmatpush3.xpose.msra.mxu0 %v4202_v55  ;;  %3463 = vmatpush3.xpose.msra.mxu1 %v846_v30  ;;  %v614_v55 = vand.u32 4294901760, %v613_v26  ;;  %v6626_v30 = vand.u32 4294901760, %v4257_v40  ;;  %v453_v26 = vsel %vm412_vm0, %v393_v35, 0  ;;  %v4331_v35 = vand.u32 4294901760, %v450_v54 }
  0x73   : > { %3464 = vmatprep.subr.mxu1 %v853_v41  ;;  %3492 = vmatprep.subr.mxu0 %v4004_v17  ;;  %v4335_v56 = vsub.f32 %v447_v32, %v4313_v8 }
  0x74   : > { %v643_v24 = vsub.f32 %v4257_v40, %v6626_v30  ;;  %v394_v30 = vld [vmem:[%s3958_s7 + $0x70] sm:$0xff]  ;;  %v395_v40 = vld [vmem:[%s3958_s7 + $0x78] sm:$0xff] }
  0x75   : > { %3413 = vmatmul.mubr.f32.vlgmr.msra.gmra.mxu0 %v604_v62  ;;  %v6627_v62 = vand.u32 4294901760, %v4274_v1 }
  0x76   : > { %3465 = vmatpush3.xpose.msra.mxu1 %v853_v41  ;;  %3493 = vmatpush3.xpose.msra.mxu0 %v4004_v17  ;;  %v644_v42 = vand.u32 4294901760, %v643_v24  ;;  %v6628_v41 = vand.u32 4294901760, %v4284_v23  ;;  %v459_v24 = vsel %vm412_vm0, %v395_v40, 0  ;;  %v6530_v40 = vand.u32 4294901760, %v4335_v56 }
  0x77   : > { %3466 = vmatprep.subr.mxu1 %v860_v59  ;;  %3494 = vmatprep.subr.mxu0 %v4007_v18  ;;  %v653_v21 = vsub.f32 %v4274_v1, %v6627_v62  ;;  %v4337_v62 = vand.u32 4294901760, %v453_v26 }
  0x78   : > { %3415 = vmatprep.mubr.f32.mxu0 %v614_v55  ;;  %v663_v17 = vsub.f32 %v4284_v23, %v6628_v41  ;;  %v456_v55 = vsel %vm412_vm0, %v394_v30, 0  ;;  %v692_v41 = vand.u32 4294901760, %v4329_v46  ;;  %v4349_v30 = vsub.f32 %v450_v54, %v4331_v35 }
  0x79   : > { %3416 = vmatmul.mubr.f32.gmra.mxu0 %v624_v50  ;;  %v654_v22 = vand.u32 4294901760, %v653_v21  ;;  %v673_v50 = vsub.f32 %v4301_v49, %v672_v2  ;;  %v4359_v21 = vsub.f32 %v453_v26, %v4337_v62 }
  0x7a   : > { %3467 = vmatpush3.xpose.msra.mxu1 %v860_v59  ;;  %3495 = vmatpush3.xpose.msra.mxu0 %v4007_v18  ;;  %v664_v32 = vand.u32 4294901760, %v663_v17  ;;  %v4351_v59 = vand.u32 4294901760, %v456_v55  ;;  %v683_v18 = vsub.f32 %v4311_v44, %v6529_v13  ;;  %v693_v54 = vsub.f32 %v4329_v46, %v692_v41 }
  0x7b   : > { %3496 = vmatprep.subr.mxu0 %v4010_v19  ;;  %3548 = vmatprep.subr.mxu1 %v3991_v10  ;;  %v712_v26 = vand.u32 4294901760, %v4349_v30  ;;  %v703_v13 = vsub.f32 %v4335_v56, %v6530_v40 }
  0x7c   : > { %3418 = vmatprep.mubr.f32.mxu0 %v634_v0  ;;  %v4361_v0 = vand.u32 4294901760, %v459_v24  ;;  %v4373_v17 = vsub.f32 %v456_v55, %v4351_v59  ;;  %v694_v55 = vand.u32 4294901760, %v693_v54 }
  0x7d   : > { %3469 = vmatmul.mubr.f32.vlgmr.msra.gmra.mxu1 %v4189_v28  ;;  %3419 = vmatmul.mubr.f32.gmra.mxu0 %v644_v42  ;;  %v674_v42 = vand.u32 4294901760, %v673_v50 }
  0x7e   : > { %3497 = vmatpush3.xpose.msra.mxu0 %v4010_v19  ;;  %3549 = vmatpush3.xpose.msra.mxu1 %v3991_v10  ;;  %v684_v19 = vand.u32 4294901760, %v683_v18  ;;  %v4381_v50 = vsub.f32 %v459_v24, %v4361_v0  ;;  %v732_v18 = vand.u32 4294901760, %v4373_v17 }
  0x7f   : > { %3498 = vmatprep.subr.mxu0 %v4027_v25  ;;  %3550 = vmatprep.subr.mxu1 %v3993_v11 }
  0x80   : > { %3471 = vmatprep.mubr.f32.mxu1 %v4207_v52  ;;  %3421 = vmatprep.mubr.f32.mxu0 %v654_v22  ;;  %v722_v22 = vand.u32 4294901760, %v4359_v21  ;;  %v742_v40 = vand.u32 4294901760, %v4381_v50 }
  0x81   : > { %3472 = vmatmul.mubr.f32.gmra.mxu1 %v4213_v4  ;;  %3422 = vmatmul.mubr.f32.gmra.mxu0 %v664_v32  ;;  %v713_v32 = vsub.f32 %v4349_v30, %v712_v26 }
  0x82   : > { %3499 = vmatpush3.xpose.msra.mxu0 %v4027_v25  ;;  %3551 = vmatpush3.xpose.msra.mxu1 %v3993_v11  ;;  %v704_v25 = vand.u32 4294901760, %v703_v13  ;;  %v723_v24 = vsub.f32 %v4359_v21, %v722_v22  ;;  %v733_v13 = vsub.f32 %v4373_v17, %v732_v18 }
  0x83   : > { %3500 = vmatprep.subr.mxu0 %v4039_v31  ;;  %3552 = vmatprep.subr.mxu1 %v3995_v12 }
  0x84   : > { %3474 = vmatprep.mubr.f32.mxu1 %v4228_v43  ;;  %3424 = vmatprep.mubr.f32.mxu0 %v674_v42  ;;  %v714_v42 = vand.u32 4294901760, %v713_v32  ;;  %v724_v54 = vand.u32 4294901760, %v723_v24  ;;  %v1816_v32 = vld [vmem:[%s3963_s10 + $0x28] sm:$0xff]  ;;  %v6631_v24 = vld [vmem:[#allocation16_spill] sm:$0xff] }
  0x85   : > { %3475 = vmatmul.mubr.f32.gmra.mxu1 %v4233_v6  ;;  %3425 = vmatmul.mubr.f32.gmra.mxu0 %v684_v19  ;;  %v734_v19 = vand.u32 4294901760, %v733_v13  ;;  %v6634_v13 = vld [vmem:[#allocation22_spill] sm:$0xff] }
  0x86   : > { %3501 = vmatpush3.xpose.msra.mxu0 %v4039_v31  ;;  %3553 = vmatpush3.xpose.msra.mxu1 %v3995_v12  ;;  %v743_v31 = vsub.f32 %v4381_v50, %v742_v40 }
  0x87   : > { %3502 = vmatprep.subr.mxu0 %v4052_v38  ;;  %3554 = vmatprep.subr.mxu1 %v3999_v15 }
  0x88   : > { %3477 = vmatprep.mubr.f32.mxu1 %v4252_v60  ;;  %3427 = vmatprep.mubr.f32.mxu0 %v694_v55  ;;  %v744_v55 = vand.u32 4294901760, %v743_v31  ;;  %v6635_v31 = vld [vmem:[#allocation25_spill] sm:$0xff] }
  0x89   : > { %3478 = vmatmul.mubr.f32.gmra.mxu1 %v4259_v5  ;;  %3428 = vmatmul.mubr.f32.gmra.mxu0 %v704_v25  ;;  %v1818_v25 = vld [vmem:[%s3963_s10 + $0x38] sm:$0xff] }
  0x8a   : > { %3503 = vmatpush3.xpose.msra.mxu0 %v4052_v38  ;;  %3555 = vmatpush3.xpose.msra.mxu1 %v3999_v15  ;;  %v1813_v38 = vld [vmem:[%s3963_s10 + $0x10] sm:$0xff] }
  0x8b   : > { %3504 = vmatprep.subr.mxu0 %v4067_v45  ;;  %3556 = vmatprep.subr.mxu1 %v4013_v20 }
  0x8c   : > { %3480 = vmatprep.mubr.f32.mxu1 %v4276_v51  ;;  %3430 = vmatprep.mubr.f32.mxu0 %v714_v42  ;;  %v6633_v42 = vld [vmem:[#allocation4_spill] sm:$0xff] }
  0x8d   : > { %3481 = vmatmul.mubr.f32.gmra.mxu1 %v4289_v33  ;;  %3431 = vmatmul.mubr.f32.gmra.mxu0 %v724_v54  ;;  %v1820_v54 = vld [vmem:[%s3963_s10 + $0x48] sm:$0xff] }
  0x8e   : > { %3505 = vmatpush3.xpose.msra.mxu0 %v4067_v45  ;;  %3557 = vmatpush3.xpose.msra.mxu1 %v4013_v20  ;;  %v6629_v45 = vand.u32 4294901760, %v4095_v61 }
  0x8f   : > { %3506 = vmatprep.subr.mxu0 %v4089_v58  ;;  %3558 = vmatprep.subr.mxu1 %v4035_v29 }
  0x90   : > { %3483 = vmatprep.mubr.f32.mxu1 %v4308_v16  ;;  %3433 = vmatprep.mubr.f32.mxu0 %v734_v19  ;;  %v6636_v19 = vld [vmem:[#allocation20_spill] sm:$0xff] }
  0x91   : > { %3484 = vmatmul.mubr.f32.gmra.mxu1 %v4313_v8  ;;  %3434 = vmatmul.mubr.f32.gmra.mxu0 %v744_v55  ;;  %v6637_v55 = vld [vmem:[#allocation5_spill] sm:$0xff] }
  0x92   : > { %3507 = vmatpush3.xpose.msra.mxu0 %v4089_v58  ;;  %3559 = vmatpush3.xpose.msra.mxu1 %v4035_v29  ;;  %v3883_v58 = vmov 0  }
  0x93   : > { %3508 = vmatprep.subr.mxu0 %v4109_v3  ;;  %3560 = vmatprep.subr.mxu1 %v4049_v37 }
  0x94   : > { %3486 = vmatprep.mubr.f32.mxu1 %v4331_v35  ;;  %3524 = vmatprep.mubr.f32.mxu0 %v4095_v61  ;;  %v1812_v61 = vld [vmem:[%s3963_s10 + $0x8] sm:$0xff] }
  0x95   : > { %3487 = vmatmul.mubr.f32.gmra.mxu1 %v4337_v62  ;;  %3808 = vset.pattern.permute.xlu1 %v3883_v58 }
  0x96   : > { %3509 = vmatpush3.xpose.msra.mxu0 %v4109_v3  ;;  %3561 = vmatpush3.xpose.msra.mxu1 %v4049_v37  ;;  %v1811_v3 = vld [vmem:[%s3963_s10] sm:$0xff] }
  0x97   : > { %3510 = vmatprep.subr.mxu0 %v4121_v9  ;;  %3562 = vmatprep.subr.mxu1 %v4072_v48 }
  0x98   : > { %3489 = vmatprep.mubr.f32.mxu1 %v4351_v59  ;;  %3807 = vset.pattern.permute.xlu0 %v3883_v58  ;;  %v6640_v58 = vld [vmem:[#allocation6_spill] sm:$0xff] }
  0x99   : > { %3490 = vmatmul.mubr.f32.gmra.mxu1 %v4361_v0  ;;  %1839 = vperm.xlu1 %3808, %v1813_v38   ;;  %v6638_v38 = vld [vmem:[#allocation26_spill] sm:$0xff] }
  0x9a   : > { %3511 = vmatpush3.xpose.msra.mxu0 %v4121_v9  ;;  %3563 = vmatpush3.xpose.msra.mxu1 %v4072_v48  ;;  %v1814_v9 = vld [vmem:[%s3963_s10 + $0x18] sm:$0xff] }
  0x9b   : > { %3512 = vmatprep.subr.mxu0 %v4141_v34  ;;  %3564 = vmatprep.subr.mxu1 %v4080_v53 }
  0x9c   : > { %3580 = vmatprep.mubr.f32.mxu1 %v6629_v45  ;;  %1829 = vperm.xlu0 %3807, %v1811_v3   ;;  %v6639_v45 = vld [vmem:[#allocation28_spill] sm:$0xff]  ;;  %v6641_v3 = vld [vmem:[#allocation29_spill] sm:$0xff] }
  0x9d   : > { %1844 = vperm.xlu1 %3808, %v1814_v9   ;;  %v6642_v9 = vand.u32 4294901760, %v6634_v13 }
  0x9e   : > { %3513 = vmatpush3.xpose.msra.mxu0 %v4141_v34  ;;  %3565 = vmatpush3.xpose.msra.mxu1 %v4080_v53  ;;  %v1815_v34 = vld [vmem:[%s3963_s10 + $0x20] sm:$0xff] }
  0x9f   : > { %3514 = vmatprep.subr.mxu0 %v4155_v47  ;;  %3566 = vmatprep.subr.mxu1 %v4099_v63 }
  0xa0   : > { %1834 = vperm.xlu0 %3807, %v1812_v61   ;;  %v6643_v61 = vand.u32 4294901760, %v6635_v31 }
  0xa1   : > { %1854 = vperm.xlu1 %3808, %v1816_v32   ;;  %v6644_v32 = vld [vmem:[#allocation7_spill] sm:$0xff] }
  0xa2   : > { %3515 = vmatpush3.xpose.msra.mxu0 %v4155_v47  ;;  %3567 = vmatpush3.xpose.msra.mxu1 %v4099_v63  ;;  %v1817_v47 = vld [vmem:[%s3963_s10 + $0x30] sm:$0xff] }
  0xa3   : > { %3516 = vmatprep.subr.mxu0 %v4169_v57  ;;  %3568 = vmatprep.subr.mxu1 %v4117_v7 }
  0xa4   : > { %1849 = vperm.xlu0 %3807, %v1815_v34   ;;  %v6645_v34 = vand.u32 4294901760, %v6638_v38 }
  0xa5   : > { %1864 = vperm.xlu1 %3808, %v1818_v25   ;;  %v6647_v25 = vld [vmem:[#allocation8_spill] sm:$0xff] }
  0xa6   : > { %3517 = vmatpush3.xpose.msra.mxu0 %v4169_v57  ;;  %3569 = vmatpush3.xpose.msra.mxu1 %v4117_v7  ;;  %v6630_v57 = vld [vmem:[#allocation24_spill] sm:$0xff] }
  0xa7   : > { %3518 = vmatprep.subr.mxu0 %v4185_v14  ;;  %3570 = vmatprep.subr.mxu1 %v4131_v27 }
  0xa8   : > { %1859 = vperm.xlu0 %3807, %v1817_v47   ;;  %v6648_v47 = vand.u32 4294901760, %v6641_v3 }
  0xa9   : > { %1874 = vperm.xlu1 %3808, %v1820_v54  }
  0xaa   : > { %3519 = vmatpush3.xpose.msra.mxu0 %v4185_v14  ;;  %3571 = vmatpush3.xpose.msra.mxu1 %v4131_v27  ;;  %v6632_v14 = vld [vmem:[#allocation18_spill] sm:$0xff] }
  0xab   : > { %3520 = vmatprep.subr.mxu0 %v4195_v36  ;;  %3572 = vmatprep.subr.mxu1 %v4145_v39 }
  0xae   : > { %3521 = vmatpush3.xpose.msra.mxu0 %v4195_v36  ;;  %3573 = vmatpush3.xpose.msra.mxu1 %v4145_v39  ;;  %v1819_v36 = vld [vmem:[%s3963_s10 + $0x40] sm:$0xff] }
  0xaf   : > { %3522 = vmatprep.subr.mxu0 %v6630_v57  ;;  %3574 = vmatprep.subr.mxu1 %v6631_v24 }
  0xb0   : > { %1869 = vperm.xlu0 %3807, %v1819_v36  }
  0xb2   : > { %3523 = vmatpush3.xpose.msra.mxu0 %v6630_v57  ;;  %3575 = vmatpush3.xpose.msra.mxu1 %v6631_v24  ;;  %v6650_v57 = vld [vmem:[#allocation9_spill] sm:$0xff] }
  0xb3   : > { %3576 = vmatprep.subr.mxu1 %v6632_v14  ;;  %3604 = vmatprep.subr.mxu0 %v6633_v42 }
  0xb5   : > { %3525 = vmatmul.mubr.f32.vlgmr.msra.gmra.mxu0 %v6634_v13 }
  0xb6   : > { %3577 = vmatpush3.xpose.msra.mxu1 %v6632_v14  ;;  %3605 = vmatpush3.xpose.msra.mxu0 %v6633_v42  ;;  %v6651_v42 = vand.u32 4294901760, %v4284_v23 }
  0xb7   : > { %3527 = vmatprep.mubr.f32.mxu0 %v6635_v31  ;;  %3578 = vmatprep.subr.mxu1 %v6636_v19 }
  0xb8   : > { %3606 = vmatprep.subr.mxu0 %v6637_v55 }
  0xb9   : > { %3528 = vmatmul.mubr.f32.gmra.mxu0 %v6638_v38 }
  0xba   : > { %3579 = vmatpush3.xpose.msra.mxu1 %v6636_v19  ;;  %3607 = vmatpush3.xpose.msra.mxu0 %v6637_v55 }
  0xbb   : > { %3530 = vmatprep.mubr.f32.mxu0 %v6639_v45  ;;  %3608 = vmatprep.subr.mxu0 %v6640_v58 }
  0xbc   : > { %3660 = vmatprep.subr.mxu1 %v3991_v10 }
  0xbd   : > { %3531 = vmatmul.mubr.f32.gmra.mxu0 %v6641_v3  ;;  %3581 = vmatmul.mubr.f32.vlgmr.msra.gmra.mxu1 %v6642_v9 }
  0xbe   : > { %3609 = vmatpush3.xpose.msra.mxu0 %v6640_v58  ;;  %3661 = vmatpush3.xpose.msra.mxu1 %v3991_v10  ;;  %v6646_v10 = vand.u32 4294901760, %v6639_v45 }
  0xbf   : > { %3533 = vmatprep.mubr.f32.mxu0 %v4274_v1  ;;  %3583 = vmatprep.mubr.f32.mxu1 %v6643_v61 }
  0xc0   : > { %3610 = vmatprep.subr.mxu0 %v6644_v32  ;;  %3662 = vmatprep.subr.mxu1 %v3993_v11 }
  0xc1   : > { %3534 = vmatmul.mubr.f32.gmra.mxu0 %v4284_v23  ;;  %3584 = vmatmul.mubr.f32.gmra.mxu1 %v6645_v34  ;;  %v6655_v23 = vand.u32 4294901760, %v4335_v56 }
  0xc2   : > { %3611 = vmatpush3.xpose.msra.mxu0 %v6644_v32  ;;  %3663 = vmatpush3.xpose.msra.mxu1 %v3993_v11  ;;  %v6649_v11 = vand.u32 4294901760, %v4274_v1  ;;  %v6653_v1 = vand.u32 4294901760, %v4311_v44 }
  0xc3   : > { %3536 = vmatprep.mubr.f32.mxu0 %v4301_v49  ;;  %3586 = vmatprep.mubr.f32.mxu1 %v6646_v10  ;;  %v6656_v49 = vld [vmem:[#allocation13_spill] sm:$0xff] }
  0xc4   : > { %3612 = vmatprep.subr.mxu0 %v6647_v25  ;;  %3664 = vmatprep.subr.mxu1 %v3995_v12 }
  0xc5   : > { %3537 = vmatmul.mubr.f32.gmra.mxu0 %v4311_v44  ;;  %3587 = vmatmul.mubr.f32.gmra.mxu1 %v6648_v47  ;;  %v6657_v44 = vld [vmem:[#allocation11_spill] sm:$0xff] }
  0xc6   : > { %3613 = vmatpush3.xpose.msra.mxu0 %v6647_v25  ;;  %3665 = vmatpush3.xpose.msra.mxu1 %v3995_v12  ;;  %v6652_v12 = vld [vmem:[#allocation10_spill] sm:$0xff] }
  0xc7   : > { %3539 = vmatprep.mubr.f32.mxu0 %v4329_v46  ;;  %3589 = vmatprep.mubr.f32.mxu1 %v6649_v11  ;;  %v1823_v46 = vld [vmem:[%s3963_s10 + $0x60] sm:$0xff] }
  0xc8   : > { %3614 = vmatprep.subr.mxu0 %v6650_v57  ;;  %3666 = vmatprep.subr.mxu1 %v3999_v15 }
  0xc9   : > { %3540 = vmatmul.mubr.f32.gmra.mxu0 %v4335_v56  ;;  %3590 = vmatmul.mubr.f32.gmra.mxu1 %v6651_v42  ;;  %v1821_v56 = vld [vmem:[%s3963_s10 + $0x50] sm:$0xff] }
  0xca   : > { %3615 = vmatpush3.xpose.msra.mxu0 %v6650_v57  ;;  %3667 = vmatpush3.xpose.msra.mxu1 %v3999_v15  ;;  %v6654_v15 = vld [vmem:[#allocation12_spill] sm:$0xff] }
  0xcb   : > { %3542 = vmatprep.mubr.f32.mxu0 %v4349_v30  ;;  %3592 = vmatprep.mubr.f32.mxu1 %v672_v2  ;;  %v6658_v2 = vld [vmem:[#allocation14_spill] sm:$0xff] }
  0xcc   : > { %3616 = vmatprep.subr.mxu0 %v6652_v12  ;;  %3668 = vmatprep.subr.mxu1 %v4013_v20  ;;  %v1825_v30 = vld [vmem:[%s3963_s10 + $0x70] sm:$0xff] }
  0xcd   : > { %3543 = vmatmul.mubr.f32.gmra.mxu0 %v4359_v21  ;;  %3593 = vmatmul.mubr.f32.gmra.mxu1 %v6653_v1  ;;  %v6662_v21 = vld [vmem:[#allocation21_spill] sm:$0xff] }
  0xce   : > { %3617 = vmatpush3.xpose.msra.mxu0 %v6652_v12  ;;  %3669 = vmatpush3.xpose.msra.mxu1 %v4013_v20  ;;  %v1822_v20 = vld [vmem:[%s3963_s10 + $0x58] sm:$0xff] }
  0xcf   : > { %3545 = vmatprep.mubr.f32.mxu0 %v4373_v17  ;;  %3595 = vmatprep.mubr.f32.mxu1 %v692_v41  ;;  %v6659_v41 = vld [vmem:[#allocation15_spill] sm:$0xff] }
  0xd0   : > { %3618 = vmatprep.subr.mxu0 %v6654_v15  ;;  %3670 = vmatprep.subr.mxu1 %v4035_v29 }
  0xd1   : > { %3546 = vmatmul.mubr.f32.gmra.mxu0 %v4381_v50  ;;  %3596 = vmatmul.mubr.f32.gmra.mxu1 %v6655_v23 }
  0xd2   : > { %3619 = vmatpush3.xpose.msra.mxu0 %v6654_v15  ;;  %3671 = vmatpush3.xpose.msra.mxu1 %v4035_v29  ;;  %v1824_v29 = vld [vmem:[%s3963_s10 + $0x68] sm:$0xff] }
  0xd3   : > { %3598 = vmatprep.mubr.f32.mxu1 %v712_v26  ;;  %3620 = vmatprep.subr.mxu0 %v6656_v49 }
  0xd4   : > { %3672 = vmatprep.subr.mxu1 %v4049_v37  ;;  %3636 = vmatprep.mubr.f32.mxu0 %v6657_v44 }
  0xd5   : > { %3599 = vmatmul.mubr.f32.gmra.mxu1 %v722_v22  ;;  %1884 = vperm.xlu1 %3808, %v1822_v20  }
  0xd6   : > { %3621 = vmatpush3.xpose.msra.mxu0 %v6656_v49  ;;  %3673 = vmatpush3.xpose.msra.mxu1 %v4049_v37  ;;  %v1826_v37 = vld [vmem:[%s3963_s10 + $0x78] sm:$0xff] }
  0xd7   : > { %3601 = vmatprep.mubr.f32.mxu1 %v732_v18  ;;  %3622 = vmatprep.subr.mxu0 %v6658_v2 }
  0xd8   : > { %3674 = vmatprep.subr.mxu1 %v4072_v48  ;;  %1879 = vperm.xlu0 %3807, %v1821_v56  }
  0xd9   : > { %3602 = vmatmul.mubr.f32.gmra.mxu1 %v742_v40  ;;  %1894 = vperm.xlu1 %3808, %v1824_v29   ;;  %v6660_v40 = vld [vmem:[#allocation17_spill] sm:$0xff] }
  0xda   : > { %3623 = vmatpush3.xpose.msra.mxu0 %v6658_v2  ;;  %3675 = vmatpush3.xpose.msra.mxu1 %v4072_v48  ;;  %v6661_v48 = vld [vmem:[#allocation19_spill] sm:$0xff] }
  0xdb   : > { %3624 = vmatprep.subr.mxu0 %v6659_v41  ;;  %3676 = vmatprep.subr.mxu1 %v4080_v53 }
  0xdc   : > { %3692 = vmatprep.mubr.f32.mxu1 %v6657_v44  ;;  %1889 = vperm.xlu0 %3807, %v1823_v46  }
  0xdd   : > { %1904 = vperm.xlu1 %3808, %v1826_v37  }
  0xde   : > { %3625 = vmatpush3.xpose.msra.mxu0 %v6659_v41  ;;  %3677 = vmatpush3.xpose.msra.mxu1 %v4080_v53  ;;  %v6663_v53 = vld [vmem:[#allocation23_spill] sm:$0xff] }
  0xdf   : > { %3626 = vmatprep.subr.mxu0 %v6660_v40  ;;  %3678 = vmatprep.subr.mxu1 %v4099_v63 }
  0xe0   : > { %1899 = vperm.xlu0 %3807, %v1825_v30  }
  0xe2   : > { %3627 = vmatpush3.xpose.msra.mxu0 %v6660_v40  ;;  %3679 = vmatpush3.xpose.msra.mxu1 %v4099_v63  ;;  %v6664_v63 = vld [vmem:[#allocation27_spill] sm:$0xff] }
  0xe3   : > { %3628 = vmatprep.subr.mxu0 %v6661_v48  ;;  %3680 = vmatprep.subr.mxu1 %v4117_v7 }
  0xe6   : > { %3629 = vmatpush3.xpose.msra.mxu0 %v6661_v48  ;;  %3681 = vmatpush3.xpose.msra.mxu1 %v4117_v7 }
  0xe7   : > { %3630 = vmatprep.subr.mxu0 %v6662_v21  ;;  %3682 = vmatprep.subr.mxu1 %v4131_v27 }
  0xea   : > { %3631 = vmatpush3.xpose.msra.mxu0 %v6662_v21  ;;  %3683 = vmatpush3.xpose.msra.mxu1 %v4131_v27 }
  0xeb   : > { %3632 = vmatprep.subr.mxu0 %v6663_v53  ;;  %3684 = vmatprep.subr.mxu1 %v4145_v39 }
  0xee   : > { %3633 = vmatpush3.xpose.msra.mxu0 %v6663_v53  ;;  %3685 = vmatpush3.xpose.msra.mxu1 %v4145_v39 }
  0xef   : > { %3634 = vmatprep.subr.mxu0 %v6664_v63  ;;  %3686 = vmatprep.subr.mxu1 %v6631_v24 }
  0xf2   : > { %3635 = vmatpush3.xpose.msra.mxu0 %v6664_v63  ;;  %3687 = vmatpush3.xpose.msra.mxu1 %v6631_v24 }
  0xf3   : > { %3688 = vmatprep.subr.mxu1 %v6632_v14 }
  0xf5   : > { %3637 = vmatmul.mubr.f32.vlgmr.msra.gmra.mxu0 %v4189_v28 }
  0xf6   : > { %3689 = vmatpush3.xpose.msra.mxu1 %v6632_v14  ;;  %3639 = vmatprep.mubr.f32.mxu0 %v4207_v52 }
  0xf7   : > { %3690 = vmatprep.subr.mxu1 %v6636_v19 }
  0xf9   : > { %3640 = vmatmul.mubr.f32.gmra.mxu0 %v4213_v4 }
  0xfa   : > { %3691 = vmatpush3.xpose.msra.mxu1 %v6636_v19  ;;  %3642 = vmatprep.mubr.f32.mxu0 %v4228_v43 }
  0xfd   : > { %3643 = vmatmul.mubr.f32.gmra.mxu0 %v4233_v6  ;;  %3693 = vmatmul.mubr.f32.vlgmr.msra.gmra.mxu1 %v4189_v28 }
  0xfe   : > { %3645 = vmatprep.mubr.f32.mxu0 %v4252_v60  ;;  %3695 = vmatprep.mubr.f32.mxu1 %v4207_v52 }
 0x101   : > { %3646 = vmatmul.mubr.f32.gmra.mxu0 %v4259_v5  ;;  %3696 = vmatmul.mubr.f32.gmra.mxu1 %v4213_v4 }
 0x102   : > { %3648 = vmatprep.mubr.f32.mxu0 %v4276_v51  ;;  %3698 = vmatprep.mubr.f32.mxu1 %v4228_v43 }
 0x105   : > { %3649 = vmatmul.mubr.f32.gmra.mxu0 %v4289_v33  ;;  %3699 = vmatmul.mubr.f32.gmra.mxu1 %v4233_v6 }
 0x106   : > { %3651 = vmatprep.mubr.f32.mxu0 %v4308_v16  ;;  %3701 = vmatprep.mubr.f32.mxu1 %v4252_v60 }
 0x109   : > { %3652 = vmatmul.mubr.f32.gmra.mxu0 %v4313_v8  ;;  %3702 = vmatmul.mubr.f32.gmra.mxu1 %v4259_v5 }
 0x10a   : > { %3654 = vmatprep.mubr.f32.mxu0 %v4331_v35  ;;  %3704 = vmatprep.mubr.f32.mxu1 %v4276_v51 }
 0x10d   : > { %3655 = vmatmul.mubr.f32.gmra.mxu0 %v4337_v62  ;;  %3705 = vmatmul.mubr.f32.gmra.mxu1 %v4289_v33 }
 0x10e   : > { %3657 = vmatprep.mubr.f32.mxu0 %v4351_v59  ;;  %3707 = vmatprep.mubr.f32.mxu1 %v4308_v16 }
 0x111   : > { %3658 = vmatmul.mubr.f32.gmra.mxu0 %v4361_v0  ;;  %3708 = vmatmul.mubr.f32.gmra.mxu1 %v4313_v8 }
 0x112   : > { %3710 = vmatprep.mubr.f32.mxu1 %v4331_v35 }
 0x115   : > { %3711 = vmatmul.mubr.f32.gmra.mxu1 %v4337_v62 }
 0x116   : > { %3713 = vmatprep.mubr.f32.mxu1 %v4351_v59 }
 0x117   : > { %v1830_v53 = vpop.permute.xlu0 %1829 }
 0x119   : > { %3714 = vmatmul.mubr.f32.gmra.mxu1 %v4361_v0 }
 0x135   : > { %v4623_v60 = vpop.f32.mrf.mxu0 }
 0x137   : > { %v4625_v5 = vpop.f32.mrf.mxu0 }
 0x139   : > { %v4627_v7 = vpop.f32.mrf.mxu0 }
 0x13b   : > { %v4629_v39 = vpop.f32.mrf.mxu0 }
 0x13d   : > { %v3470_v27 = vpop.f32.mrf.mxu1  ;;  %v4633_v52 = vpop.f32.mrf.mxu0 }
 0x13f   : > { %v4631_v28 = vpop.f32.mrf.mxu1  ;;  %v4637_v43 = vpop.f32.mrf.mxu0 }
 0x141   : > { %v4635_v4 = vpop.f32.mrf.mxu1  ;;  %v4641_v51 = vpop.f32.mrf.mxu0 }
 0x143   : > { %v4639_v6 = vpop.f32.mrf.mxu1  ;;  %v4645_v8 = vpop.f32.mrf.mxu0 }
 0x145   : > { %v4643_v33 = vpop.f32.mrf.mxu1  ;;  %v4649_v35 = vpop.f32.mrf.mxu0 }
 0x147   : > { %v4647_v16 = vpop.f32.mrf.mxu1  ;;  %v4653_v59 = vpop.f32.mrf.mxu0 }
 0x149   : > { %v4651_v62 = vpop.f32.mrf.mxu1  ;;  %v4657_v26 = vpop.f32.mrf.mxu0 }
 0x14b   : > { %v4655_v0 = vpop.f32.mrf.mxu1  ;;  %v4661_v22 = vpop.f32.mrf.mxu0 }
 0x14d   : > { %v4659_v17 = vpop.f32.mrf.mxu1  ;;  %v4665_v18 = vpop.f32.mrf.mxu0 }
 0x14f   : > { %v4663_v50 = vpop.f32.mrf.mxu1  ;;  %v4669_v14 = vpop.f32.mrf.mxu0 }
 0x151   : > { %v4667_v24 = vpop.f32.mrf.mxu1  ;;  %v4673_v54 = vpop.f32.mrf.mxu0 }
 0x153   : > { %v4671_v13 = vpop.f32.mrf.mxu1  ;;  %v4677_v31 = vpop.f32.mrf.mxu0 }
 0x155   : > { %v4675_v36 = vpop.f32.mrf.mxu1 }
 0x157   : > { %v4679_v19 = vpop.f32.mrf.mxu1 }
 0x159   : > { %v4681_v38 = vpop.f32.mrf.mxu1 }
 0x15b   : > { %v4683_v58 = vpop.f32.mrf.mxu1 }
 0x175   : > { %v3526_v55 = vpop.f32.mrf.mxu0 }
 0x177   : > { %v1091_v45 = vpop.f32.mrf.mxu0 }
 0x179   : > { %v3529_v3 = vpop.f32.mrf.mxu0 }
 0x17b   : > { %v1105_v61 = vpop.f32.mrf.mxu0 }
 0x17d   : > { %v3582_v9 = vpop.f32.mrf.mxu1  ;;  %v3532_v34 = vpop.f32.mrf.mxu0 }
 0x17f   : > { %v1285_v32 = vpop.f32.mrf.mxu1  ;;  %v4685_v25 = vpop.f32.mrf.mxu0 }
 0x181   : > { %v3585_v10 = vpop.f32.mrf.mxu1  ;;  %v4689_v11 = vpop.f32.mrf.mxu0 }
 0x183   : > { %v4687_v47 = vpop.f32.mrf.mxu1  ;;  %v4693_v42 = vpop.f32.mrf.mxu0 }
 0x185   : > { %v4691_v57 = vpop.f32.mrf.mxu1  ;;  %v4697_v1 = vpop.f32.mrf.mxu0 }
 0x187   : > { %v4695_v12 = vpop.f32.mrf.mxu1  ;;  %v4701_v23 = vpop.f32.mrf.mxu0 }
 0x188   : > { %6665 = vst [vmem:[#allocation24_spill] sm:$0xff] %v4701_v23 }
 0x189   : > { %v4699_v15 = vpop.f32.mrf.mxu1  ;;  %v4705_v49 = vpop.f32.mrf.mxu0 }
 0x18a   : > { %6667 = vst [vmem:[#allocation18_spill] sm:$0xff] %v4705_v49 }
 0x18b   : > { %v4703_v20 = vpop.f32.mrf.mxu1  ;;  %v4709_v56 = vpop.f32.mrf.mxu0 }
 0x18c   : > { %6666 = vst [vmem:[#allocation16_spill] sm:$0xff] %v4703_v20  ;;  %6669 = vst [vmem:[#allocation22_spill] sm:$0xff] %v4709_v56  ;;  %v4730_v56 = vpop.permute.xlu1 %1839 }
 0x18d   : > { %v4707_v44 = vpop.f32.mrf.mxu1  ;;  %v4713_v2 = vpop.f32.mrf.mxu0  ;;  %6679 = vst [vmem:[#allocation9_spill] sm:$0xff] %v4730_v56 }
 0x18e   : > { %6668 = vst [vmem:[#allocation4_spill] sm:$0xff] %v4707_v44  ;;  %6671 = vst [vmem:[#allocation20_spill] sm:$0xff] %v4713_v2 }
 0x18f   : > { %v4711_v29 = vpop.f32.mrf.mxu1  ;;  %v4717_v37 = vpop.f32.mrf.mxu0 }
 0x190   : > { %6670 = vst [vmem:[#allocation25_spill] sm:$0xff] %v4711_v29  ;;  %6673 = vst [vmem:[#allocation26_spill] sm:$0xff] %v4717_v37  ;;  %v904_v29 = vadd.f32 %v3470_v27, %v4623_v60  ;;  %v1845_v56 = vpop.permute.xlu1 %1844 }
 0x191   : > { %v4715_v46 = vpop.f32.mrf.mxu1  ;;  %v4721_v30 = vpop.f32.mrf.mxu0 }
 0x192   : > { %6672 = vst [vmem:[#allocation5_spill] sm:$0xff] %v4715_v46  ;;  %6675 = vst [vmem:[#allocation6_spill] sm:$0xff] %v4721_v30  ;;  %v1099_v37 = vadd.f32 %v3526_v55, %v904_v29  ;;  %v940_v55 = vadd.f32 %v4651_v62, %v4641_v51 }
 0x193   : > { %v4719_v41 = vpop.f32.mrf.mxu1  ;;  %v4725_v48 = vpop.f32.mrf.mxu0 }
 0x194   : > { %6674 = vst [vmem:[#allocation28_spill] sm:$0xff] %v4719_v41  ;;  %6677 = vst [vmem:[#allocation7_spill] sm:$0xff] %v4725_v48  ;;  %v898_v41 = vadd.f32 %v4631_v28, %v4625_v5  ;;  %v1294_v49 = vadd.f32 %v3582_v9, %v1099_v37  ;;  %v928_v5 = vadd.f32 %v4643_v33, %v4633_v52 }
 0x195   : > { %v4723_v40 = vpop.f32.mrf.mxu1  ;;  %v922_v28 = vadd.f32 %v4647_v16, %v4637_v43  ;;  %v946_v52 = vadd.f32 %v4663_v50, %v4653_v59  ;;  %v4767_v59 = vld [vmem:[%s333_s0] ss:$0 sm:$0xff]  ;;  %s3184_s0 = sshll.u32 %s3855_s15, 7 }
 0x196   : > { %6676 = vst [vmem:[#allocation29_spill] sm:$0xff] %v4723_v40  ;;  %v916_v40 = vadd.f32 %v4635_v4, %v4627_v7  ;;  %v1092_v48 = vadd.f32 %v1091_v45, %v898_v41  ;;  %v1127_v16 = vadd.f32 %v3532_v34, %v928_v5  ;;  %v1855_v34 = vpop.permute.xlu1 %1854  ;;  %v4789_v5 = vld [vmem:[#allocation2 + $0x30] sm:$0xff] }
 0x197   : > { %v4727_v21 = vpop.f32.mrf.mxu1 }
 0x198   : > { %6678 = vst [vmem:[#allocation8_spill] sm:$0xff] %v4727_v21  ;;  %v1835_v21 = vpop.permute.xlu0 %1834  ;;  %v1113_v60 = vadd.f32 %v3529_v3, %v916_v40  ;;  %v1286_v27 = vadd.f32 %v1285_v32, %v1092_v48  ;;  %v934_v32 = vadd.f32 %v4655_v0, %v4645_v8  ;;  %v958_v8 = vadd.f32 %v4671_v13, %v4661_v22  ;;  %v4777_v40 = vld [vmem:[#allocation2] sm:$0xff] }
 0x199   : > { %v4732_v2 = vpop.f32.mrf.mxu1  ;;  %v976_v22 = vadd.f32 %v4675_v36, %v4665_v18  ;;  %v1141_v13 = vadd.f32 %v4689_v11, %v940_v55  ;;  %v970_v48 = vadd.f32 %v4679_v19, %v4669_v14  ;;  %v988_v18 = vadd.f32 %v4681_v38, %v4673_v54 }
 0x19a   : > { %6680 = vst [vmem:[#allocation10_spill] sm:$0xff] %v4732_v2  ;;  %v910_v2 = vadd.f32 %v4639_v6, %v4629_v39  ;;  %v1310_v45 = vadd.f32 %v3585_v10, %v1113_v60  ;;  %v952_v39 = vadd.f32 %v4659_v17, %v4649_v35  ;;  %v1120_v35 = vadd.f32 %v4685_v25, %v922_v28 }
 0x19b   : > { %v4738_v44 = vpop.f32.mrf.mxu1  ;;  %v1342_v36 = vadd.f32 %v4699_v15, %v1141_v13  ;;  %v4793_v14 = vadd.f32 %v4683_v58, %v4677_v31  ;;  %v1134_v54 = vadd.f32 %v4693_v42, %v934_v32  ;;  %v6682_v31 = vld [vmem:[#allocation9_spill] sm:$0xff] }
 0x19c   : > { %v1106_v6 = vadd.f32 %v1105_v61, %v910_v2  ;;  %v1326_v61 = vadd.f32 %v4691_v57, %v1127_v16  ;;  %v1318_v25 = vadd.f32 %v4695_v12, %v1120_v35  ;;  %v6685_v35 = vld [vmem:[#allocation18_spill] sm:$0xff] }
 0x19e   : > { %v1302_v0 = vadd.f32 %v4687_v47, %v1106_v6 }
 0x1b5   : > { %v3638_v63 = vpop.f32.mrf.mxu0 }
 0x1b6   : > { %v1531_v20 = vadd.f32 %v3638_v63, %v1294_v49  ;;  %v4754_v49 = vpop.permute.xlu0 %1849 }
 0x1b7   : > { %v1524_v46 = vpop.f32.mrf.mxu0 }
 0x1b8   : > { %v1525_v9 = vadd.f32 %v1524_v46, %v1286_v27 }
 0x1b9   : > { %v3641_v30 = vpop.f32.mrf.mxu0 }
 0x1ba   : > { %v1543_v51 = vadd.f32 %v3641_v30, %v1310_v45 }
 0x1bb   : > { %v1536_v23 = vpop.f32.mrf.mxu0 }
 0x1bc   : > { %v1537_v47 = vadd.f32 %v1536_v23, %v1302_v0 }
 0x1bd   : > { %v3644_v7 = vpop.f32.mrf.mxu0  ;;  %v3694_v4 = vpop.f32.mrf.mxu1 }
 0x1be   : > { %v1708_v3 = vadd.f32 %v3694_v4, %v1531_v20  ;;  %v964_v20 = vadd.f32 %v4667_v24, %v4657_v26  ;;  %v1555_v37 = vadd.f32 %v3644_v7, %v1326_v61  ;;  %v1155_v7 = vadd.f32 %v4697_v1, %v952_v39  ;;  %v1865_v4 = vpop.permute.xlu1 %1864  ;;  %v6684_v1 = vld [vmem:[#allocation4_spill] sm:$0xff] }
 0x1bf   : > { %v1548_v43 = vpop.f32.mrf.mxu0  ;;  %v1701_v33 = vpop.f32.mrf.mxu1  ;;  %v6687_v61 = vld [vmem:[#allocation20_spill] sm:$0xff] }
 0x1c0   : > { %v1796_v62 = vmul.f32 -2.0, %v1708_v3  ;;  %v1702_v10 = vadd.f32 %v1701_v33, %v1525_v9  ;;  %v1549_v63 = vadd.f32 %v1548_v43, %v1318_v25  ;;  %v6681_v9 = vld [vmem:[#allocation16_spill] sm:$0xff]  ;;  %v1358_v39 = vadd.f32 %v6684_v1, %v1155_v7  ;;  %v6688_v25 = vld [vmem:[#allocation25_spill] sm:$0xff]  ;;  %v6693_v1 = vld [vmem:[#allocation7_spill] sm:$0xff] }
 0x1c1   : > { %v3647_v17 = vpop.f32.mrf.mxu0  ;;  %v3697_v50 = vpop.f32.mrf.mxu1  ;;  %v1334_v3 = vadd.f32 %v6681_v9, %v1134_v54  ;;  %v6683_v33 = vld [vmem:[#allocation24_spill] sm:$0xff]  ;;  %v1169_v0 = vadd.f32 %v6685_v35, %v964_v20  ;;  %v6690_v54 = vld [vmem:[#allocation26_spill] sm:$0xff] }
 0x1c2   : > { %v1908_v29 = vadd.f32 %v1835_v21, %v1796_v62  ;;  %v1795_v26 = vmul.f32 -2.0, %v1702_v10  ;;  %v1720_v24 = vadd.f32 %v3697_v50, %v1543_v51  ;;  %v4784_v21 = vpop.permute.xlu0 %1859  ;;  %v1567_v55 = vadd.f32 %v3647_v17, %v1342_v36  ;;  %v4808_v10 = vld [vmem:[#allocation2 + $0x18] sm:$0xff]  ;;  %v6686_v17 = vld [vmem:[#allocation22_spill] sm:$0xff]  ;;  %v6692_v7 = vld [vmem:[#allocation28_spill] sm:$0xff] }
 0x1c3   : > { %v1560_v2 = vpop.f32.mrf.mxu0  ;;  %v1713_v46 = vpop.f32.mrf.mxu1  ;;  %v1148_v16 = vadd.f32 %v6683_v33, %v946_v52  ;;  %v1162_v50 = vadd.f32 %v6686_v17, %v958_v8 }
 0x1c4   : > { %v4775_v41 = vadd.f32 %v4767_v59, %v1908_v29  ;;  %v1907_v30 = vadd.f32 %v1830_v53, %v1795_v26  ;;  %v1798_v57 = vmul.f32 -2.0, %v1720_v24  ;;  %v1714_v11 = vadd.f32 %v1713_v46, %v1537_v47 }
 0x1c5   : > { %v3650_v12 = vpop.f32.mrf.mxu0  ;;  %v3700_v23 = vpop.f32.mrf.mxu1  ;;  %v1183_v29 = vadd.f32 %v6687_v61, %v976_v22  ;;  %v1561_v26 = vadd.f32 %v1560_v2, %v1334_v3  ;;  %v1350_v47 = vadd.f32 %v6688_v25, %v1148_v16  ;;  %v6689_v2 = vld [vmem:[#allocation5_spill] sm:$0xff] }
 0x1c6   : > { %v4787_v60 = vadd.f32 %v4767_v59, %v1907_v30  ;;  %v1910_v53 = vadd.f32 %v1845_v56, %v1798_v57  ;;  %v1732_v27 = vadd.f32 %v3700_v23, %v1555_v37  ;;  %v1797_v19 = vmul.f32 -2.0, %v1714_v11  ;;  %v1870_v46 = vpop.permute.xlu0 %1869  ;;  %v4839_v16 = vld [vmem:[#allocation2 + $0x68] sm:$0xff] }
 0x1c7   : > { %v1572_v38 = vpop.f32.mrf.mxu0  ;;  %v1725_v15 = vpop.f32.mrf.mxu1  ;;  %v1987_v28 = vmin.f32 %v4777_v40, %v4775_v41  ;;  %v1579_v52 = vadd.f32 %v3650_v12, %v1358_v39  ;;  %v1374_v23 = vadd.f32 %v6689_v2, %v1169_v0  ;;  %v4824_v12 = vld [vmem:[#allocation2 + $0x50] sm:$0xff]  ;;  %v1190_v39 = vadd.f32 %v6693_v1, %v4793_v14 }
 0x1c8   : > { %v1800_v56 = vmul.f32 -2.0, %v1732_v27  ;;  %v1726_v45 = vadd.f32 %v1725_v15, %v1549_v63  ;;  %v4801_v6 = vadd.f32 %v4767_v59, %v1910_v53  ;;  %v1909_v58 = vadd.f32 %v6682_v31, %v1797_v19  ;;  %v1875_v63 = vpop.permute.xlu1 %1874  ;;  %v6691_v15 = vld [vmem:[#allocation6_spill] sm:$0xff] }
 0x1c9   : > { %1988 = vmin.xlane.f32.xlu1 %v1987_v28  ;;  %v3653_v42 = vpop.f32.mrf.mxu0  ;;  %v3703_v32 = vpop.f32.mrf.mxu1  ;;  %v1984_v43 = vmin.f32 %v4789_v5, %v4787_v60  ;;  %v1573_v53 = vadd.f32 %v1572_v38, %v1350_v47  ;;  %v1176_v19 = vadd.f32 %v6690_v54, %v970_v48  ;;  %v1197_v28 = vadd.f32 %v6691_v15, %v988_v18 }
 0x1ca   : > { %v1799_v51 = vmul.f32 -2.0, %v1726_v45  ;;  %v1744_v62 = vadd.f32 %v3703_v32, %v1567_v55  ;;  %v1912_v37 = vadd.f32 %v1855_v34, %v1800_v56  ;;  %v4816_v57 = vadd.f32 %v4767_v59, %v1909_v58 }
 0x1cb   : > { %1985 = vmin.xlane.f32.xlu0 %v1984_v43  ;;  %v1584_v24 = vpop.f32.mrf.mxu0  ;;  %v1737_v13 = vpop.f32.mrf.mxu1  ;;  %v1993_v22 = vmin.f32 %v4808_v10, %v4801_v6  ;;  %v1366_v55 = vadd.f32 %v6692_v7, %v1162_v50  ;;  %v1591_v3 = vadd.f32 %v3653_v42, %v1374_v23 }
 0x1cc   : > { %v1911_v30 = vadd.f32 %v4754_v49, %v1799_v51  ;;  %v1802_v36 = vmul.f32 -2.0, %v1744_v62  ;;  %v1738_v20 = vadd.f32 %v1737_v13, %v1561_v26  ;;  %v4826_v49 = vld [vmem:[#allocation2 + $0x58] sm:$0xff]  ;;  %v4832_v38 = vadd.f32 %v4767_v59, %v1912_v37  ;;  %v6694_v51 = vld [vmem:[#allocation29_spill] sm:$0xff]  ;;  %v1880_v42 = vpop.permute.xlu0 %1879  ;;  %v1885_v25 = vpop.permute.xlu1 %1884 }
 0x1cd   : > { %v3656_v11 = vpop.f32.mrf.mxu0  ;;  %v3706_v8 = vpop.f32.mrf.mxu1  ;;  %v1990_v18 = vmin.f32 %v4826_v49, %v4816_v57  ;;  %v1390_v62 = vadd.f32 %v6694_v51, %v1183_v29  ;;  %v1585_v50 = vadd.f32 %v1584_v24, %v1366_v55 }
 0x1ce   : > { %v4822_v27 = vadd.f32 %v4767_v59, %v1911_v30  ;;  %v1756_v34 = vadd.f32 %v3706_v8, %v1579_v52  ;;  %v1801_v56 = vmul.f32 -2.0, %v1738_v20  ;;  %v1914_v32 = vadd.f32 %v1865_v4, %v1802_v36  ;;  %v4844_v4 = vld [vmem:[#allocation2 + $0x8] sm:$0xff]  ;;  %v4857_v8 = vld [vmem:[#allocation2 + $0x40] sm:$0xff] }
 0x1cf   : > { %1994 = vmin.xlane.f32.xlu0 %v1993_v22  ;;  %v1596_v45 = vpop.f32.mrf.mxu0  ;;  %v1749_v9 = vpop.f32.mrf.mxu1  ;;  %v1603_v47 = vadd.f32 %v3656_v11, %v1390_v62  ;;  %v1999_v29 = vmin.f32 %v4839_v16, %v4832_v38  ;;  %v6696_v22 = vld [vmem:[#allocation10_spill] sm:$0xff] }
 0x1d0   : > { %v1804_v31 = vmul.f32 -2.0, %v1756_v34  ;;  %v1750_v58 = vadd.f32 %v1749_v9, %v1573_v53  ;;  %v1913_v43 = vadd.f32 %v4784_v21, %v1801_v56  ;;  %v1996_v48 = vmin.f32 %v4824_v12, %v4822_v27  ;;  %v6695_v21 = vld [vmem:[#allocation8_spill] sm:$0xff]  ;;  %v1890_v56 = vpop.permute.xlu0 %1889 }
 0x1d1   : > { %v3709_v33 = vpop.f32.mrf.mxu1  ;;  %v1382_v17 = vadd.f32 %v6695_v21, %v1176_v19  ;;  %v3659_v26 = vpop.f32.mrf.mxu0  ;;  %v4853_v37 = vadd.f32 %v4767_v59, %v1914_v32  ;;  %v1406_v2 = vadd.f32 %v6696_v22, %v1197_v28  ;;  %v1398_v53 = vadd.f32 %v4738_v44, %v1190_v39 }
 0x1d2   : > { %v1803_v35 = vmul.f32 -2.0, %v1750_v58  ;;  %v1768_v0 = vadd.f32 %v3709_v33, %v1591_v3  ;;  %v4848_v61 = vadd.f32 %v4767_v59, %v1913_v43  ;;  %1997 = vmin.xlane.f32.xlu1 %v1996_v48  ;;  %v1916_v14 = vadd.f32 %v1875_v63, %v1804_v31  ;;  %v4863_v63 = vld [vmem:[#allocation2 + $0x48] sm:$0xff]  ;;  %v4873_v58 = vld [vmem:[#allocation2 + $0x20] sm:$0xff]  ;;  %v1895_v32 = vpop.permute.xlu1 %1894 }
 0x1d3   : > { %1991 = vmin.xlane.f32.xlu0 %v1990_v18  ;;  %v1761_v13 = vpop.f32.mrf.mxu1  ;;  %v1597_v23 = vadd.f32 %v1596_v45, %v1382_v17  ;;  %v1608_v34 = vpop.f32.mrf.mxu0  ;;  %v1615_v7 = vadd.f32 %v3659_v26, %v1406_v2  ;;  %v2005_v44 = vmin.f32 %v4863_v63, %v4853_v37  ;;  %v4875_v18 = vld [vmem:[#allocation2 + $0x10] sm:$0xff] }
 0x1d4   : > { %v1915_v52 = vadd.f32 %v1870_v46, %v1803_v35  ;;  %v1806_v30 = vmul.f32 -2.0, %v1768_v0  ;;  %v1762_v36 = vadd.f32 %v1761_v13, %v1585_v50  ;;  %v2002_v20 = vmin.f32 %v4844_v4, %v4848_v61  ;;  %v4887_v50 = vld [vmem:[#allocation2 + $0x60] sm:$0xff]  ;;  %v4906_v2 = vld [vmem:[#allocation2 + $0x70] sm:$0xff] }
 0x1d5   : > { %v3712_v24 = vpop.f32.mrf.mxu1  ;;  %v4867_v15 = vadd.f32 %v4767_v59, %v1916_v14  ;;  %v1609_v43 = vadd.f32 %v1608_v34, %v1398_v53  ;;  %v4915_v34 = vld [vmem:[#allocation2 + $0x28] sm:$0xff] }
 0x1d6   : > { %v4861_v11 = vadd.f32 %v4767_v59, %v1915_v52  ;;  %v1780_v46 = vadd.f32 %v3712_v24, %v1603_v47  ;;  %v1805_v54 = vmul.f32 -2.0, %v1762_v36  ;;  %2003 = vmin.xlane.f32.xlu1 %v2002_v20  ;;  %v1918_v45 = vadd.f32 %v1885_v25, %v1806_v30  ;;  %v4892_v25 = vld [vmem:[#allocation2 + $0x38] sm:$0xff]  ;;  %v1900_v47 = vpop.permute.xlu0 %1899  ;;  %v1905_v14 = vpop.permute.xlu1 %1904 }
 0x1d7   : > { %2000 = vmin.xlane.f32.xlu0 %v1999_v29  ;;  %v1773_v19 = vpop.f32.mrf.mxu1  ;;  %v4901_v20 = vld [vmem:[#allocation2 + $0x78] sm:$0xff] }
 0x1d8   : > { %v1774_v55 = vadd.f32 %v1773_v19, %v1597_v23  ;;  %v2008_v28 = vmin.f32 %v4857_v8, %v4861_v11  ;;  %v1917_v9 = vadd.f32 %v1880_v42, %v1805_v54  ;;  %v1808_v3 = vmul.f32 -2.0, %v1780_v46 }
 0x1d9   : > { %v3715_v31 = vpop.f32.mrf.mxu1  ;;  %v2011_v42 = vmin.f32 %v4873_v58, %v4867_v15  ;;  %v4883_v35 = vadd.f32 %v4767_v59, %v1918_v45  ;;  %v1946_v19 = vlaneseq }
 0x1da   : > { %v1807_v33 = vmul.f32 -2.0, %v1774_v55  ;;  %v1792_v48 = vadd.f32 %v3715_v31, %v1615_v7  ;;  %v4878_v1 = vadd.f32 %v4767_v59, %v1917_v9  ;;  %2009 = vmin.xlane.f32.xlu1 %v2008_v28  ;;  %v1920_v0 = vadd.f32 %v1895_v32, %v1808_v3  ;;  %v4933_v9 = vld [vmem:[#allocation3 + $0x28] sm:$0xff] }
 0x1db   : > { %2006 = vmin.xlane.f32.xlu0 %v2005_v44  ;;  %v1785_v39 = vpop.f32.mrf.mxu1  ;;  %v2017_v24 = vmin.f32 %v4892_v25, %v4883_v35  ;;  %v4920_v7 = vand.u32 127, %v1946_v19  ;;  %v1949_v55 = vstv %s3184_s0  ;;  %v4985_v19 = vld [vmem:[#allocation3 + $0x70] sm:$0xff] }
 0x1dc   : > { %v1919_v51 = vadd.f32 %v1890_v56, %v1807_v33  ;;  %v1786_v62 = vadd.f32 %v1785_v39, %v1609_v43  ;;  %v1810_v21 = vmul.f32 -2.0, %v1792_v48  ;;  %v2014_v17 = vmin.f32 %v4875_v18, %v4878_v1  ;;  %v4925_v56 = vld [vmem:[#allocation3 + $0x68] sm:$0xff]  ;;  %v4945_v39 = vld [vmem:[#allocation3 + $0x40] sm:$0xff] }
 0x1dd   : > { %v4897_v30 = vadd.f32 %v4767_v59, %v1920_v0  ;;  %v1950_v28 = vadd.s32 %v1949_v55, %v4920_v7 }
 0x1de   : > { %v4890_v26 = vadd.f32 %v4767_v59, %v1919_v51  ;;  %v1809_v13 = vmul.f32 -2.0, %v1786_v62  ;;  %2015 = vmin.xlane.f32.xlu1 %v2014_v17  ;;  %v1922_v36 = vadd.f32 %v1905_v14, %v1810_v21  ;;  %v4955_v21 = vld [vmem:[#allocation3 + $0x10] sm:$0xff] }
 0x1df   : > { %2012 = vmin.xlane.f32.xlu0 %v2011_v42  ;;  %v2023_v53 = vmin.f32 %v4906_v2, %v4897_v30 }
 0x1e0   : > { %v1921_v52 = vadd.f32 %v1900_v47, %v1809_v13  ;;  %v2020_v29 = vmin.f32 %v4887_v50, %v4890_v26  ;;  %v4911_v46 = vadd.f32 %v4767_v59, %v1922_v36  ;;  %v4965_v47 = vld [vmem:[#allocation3 + $0x48] sm:$0xff]  ;;  %v4973_v36 = vld [vmem:[#allocation3 + $0x30] sm:$0xff] }
 0x1e2   : > { %v4904_v22 = vadd.f32 %v4767_v59, %v1921_v52  ;;  %2021 = vmin.xlane.f32.xlu1 %v2020_v29  ;;  %v2029_v54 = vmin.f32 %v4915_v34, %v4911_v46  ;;  %v4923_v59 = vcvt.s32.f32 %v1950_v28 }
 0x1e3   : > { %2018 = vmin.xlane.f32.xlu0 %v2017_v24 }
 0x1e4   : > { %v2026_v23 = vmin.f32 %v4901_v20, %v4904_v22 }
 0x1e6   : > { %2027 = vmin.xlane.f32.xlu1 %v2026_v23 }
 0x1e7   : > { %2024 = vmin.xlane.f32.xlu0 %v2023_v53 }
 0x1eb   : > { %2030 = vmin.xlane.f32.xlu0 %v2029_v54 }
 0x252   : > { %v4927_v45 = vpop.xlane.xlu1 %1988 }
 0x253   : > { %vm2034_vm1 = vcmp.eq.f32.partialorder %v4777_v40, %v4927_v45  ;;  %vm2035_vm2 = vcmp.eq.f32.partialorder %v4775_v41, %v4927_v45 }
 0x254   : > { %v4935_v3 = vpop.xlane.xlu0 %1985  ;;  %v2066_v31 = vsel %vm2034_vm1, %v4925_v56, 1.0737418e+09  ;;  %v2067_v44 = vsel %vm2035_vm2, %v4923_v59, 1.0737418e+09 }
 0x255   : > { %v2099_v32 = vmin.f32 %v2066_v31, %v2067_v44  ;;  %vm2032_vm3 = vcmp.eq.f32.partialorder %v4789_v5, %v4935_v3  ;;  %vm2033_vm4 = vcmp.eq.f32.partialorder %v4787_v60, %v4935_v3 }
 0x256   : > { %v2064_v43 = vsel %vm2032_vm3, %v4933_v9, 1.0737418e+09  ;;  %v2065_v33 = vsel %vm2033_vm4, %v4923_v59, 1.0737418e+09 }
 0x257   : > { %2100 = vmin.xlane.f32.xlu0 %v2099_v32  ;;  %v2096_v48 = vmin.f32 %v2064_v43, %v2065_v33  ;;  %v4993_v32 = vld [vmem:[#allocation3 + $0x38] sm:$0xff] }
 0x258   : > { %v4947_v51 = vpop.xlane.xlu0 %1994 }
 0x259   : > { %6697 = vst [vmem:[#allocation12_spill] sm:$0xff] %v4947_v51  ;;  %2097 = vmin.xlane.f32.xlu1 %v2096_v48  ;;  %vm2038_vm5 = vcmp.eq.f32.partialorder %v4808_v10, %v4947_v51  ;;  %vm2039_vm6 = vcmp.eq.f32.partialorder %v4801_v6, %v4947_v51 }
 0x25a   : > { %v2070_v62 = vsel %vm2038_vm5, %v4945_v39, 1.0737418e+09  ;;  %v2071_v42 = vsel %vm2039_vm6, %v4923_v59, 1.0737418e+09 }
 0x25b   : > { %v2105_v0 = vmin.f32 %v2070_v62, %v2071_v42  ;;  %v4957_v17 = vpop.xlane.xlu1 %1997  ;;  %v5005_v42 = vld [vmem:[#allocation3 + $0x20] sm:$0xff] }
 0x25c   : > { %6698 = vst [vmem:[#allocation13_spill] sm:$0xff] %v4957_v17  ;;  %v4959_v13 = vpop.xlane.xlu0 %1991  ;;  %vm2040_vm9 = vcmp.eq.f32.partialorder %v4824_v12, %v4957_v17  ;;  %vm2041_vm10 = vcmp.eq.f32.partialorder %v4822_v27, %v4957_v17 }
 0x25d   : > { %6699 = vst [vmem:[#allocation11_spill] sm:$0xff] %v4959_v13  ;;  %2106 = vmin.xlane.f32.xlu0 %v2105_v0  ;;  %vm2036_vm7 = vcmp.eq.f32.partialorder %v4826_v49, %v4959_v13  ;;  %vm2037_vm8 = vcmp.eq.f32.partialorder %v4816_v57, %v4959_v13  ;;  %v2072_v53 = vsel %vm2040_vm9, %v4965_v47, 1.0737418e+09  ;;  %v2073_v54 = vsel %vm2041_vm10, %v4923_v59, 1.0737418e+09 }
 0x25e   : > { %v2068_v14 = vsel %vm2036_vm7, %v4955_v21, 1.0737418e+09  ;;  %v2069_v52 = vsel %vm2037_vm8, %v4923_v59, 1.0737418e+09  ;;  %v2108_v44 = vmin.f32 %v2072_v53, %v2073_v54  ;;  %v5013_v53 = vld [vmem:[#allocation3 + $0x78] sm:$0xff] }
 0x25f   : > { %v2102_v29 = vmin.f32 %v2068_v14, %v2069_v52  ;;  %v4975_v24 = vpop.xlane.xlu1 %2003 }
 0x260   : > { %6700 = vst [vmem:[#allocation14_spill] sm:$0xff] %v4975_v24  ;;  %v4977_v23 = vpop.xlane.xlu0 %2000  ;;  %vm2044_vm13 = vcmp.eq.f32.partialorder %v4844_v4, %v4975_v24  ;;  %vm2045_vm14 = vcmp.eq.f32.partialorder %v4848_v61, %v4975_v24 }
 0x261   : > { %6701 = vst [vmem:[#allocation15_spill] sm:$0xff] %v4977_v23  ;;  %2103 = vmin.xlane.f32.xlu1 %v2102_v29  ;;  %vm2042_vm11 = vcmp.eq.f32.partialorder %v4839_v16, %v4977_v23  ;;  %vm2043_vm12 = vcmp.eq.f32.partialorder %v4832_v38, %v4977_v23  ;;  %v2076_v48 = vsel %vm2044_vm13, %v4985_v19, 1.0737418e+09  ;;  %v2077_v62 = vsel %vm2045_vm14, %v4923_v59, 1.0737418e+09 }
 0x262   : > { %v2074_v55 = vsel %vm2042_vm11, %v4973_v36, 1.0737418e+09  ;;  %v2075_v28 = vsel %vm2043_vm12, %v4923_v59, 1.0737418e+09  ;;  %v2114_v29 = vmin.f32 %v2076_v48, %v2077_v62 }
 0x263   : > { %v2111_v31 = vmin.f32 %v2074_v55, %v2075_v28  ;;  %v4995_v43 = vpop.xlane.xlu1 %2009 }
 0x264   : > { %6702 = vst [vmem:[#allocation17_spill] sm:$0xff] %v4995_v43  ;;  %v4997_v33 = vpop.xlane.xlu0 %2006  ;;  %vm2048_vm1 = vcmp.eq.f32.partialorder %v4857_v8, %v4995_v43  ;;  %vm2049_vm2 = vcmp.eq.f32.partialorder %v4861_v11, %v4995_v43 }
 0x265   : > { %6703 = vst [vmem:[#allocation19_spill] sm:$0xff] %v4997_v33  ;;  %2112 = vmin.xlane.f32.xlu0 %v2111_v31  ;;  %2109 = vmin.xlane.f32.xlu1 %v2108_v44  ;;  %vm2046_vm15 = vcmp.eq.f32.partialorder %v4863_v63, %v4997_v33  ;;  %vm2047_vm0 = vcmp.eq.f32.partialorder %v4853_v37, %v4997_v33  ;;  %v2080_v28 = vsel %vm2048_vm1, %v5005_v42, 1.0737418e+09  ;;  %v2081_v31 = vsel %vm2049_vm2, %v4923_v59, 1.0737418e+09  ;;  %v5025_v44 = vld [vmem:[#allocation3 + $0x18] sm:$0xff] }
 0x266   : > { %v2078_v0 = vsel %vm2046_vm15, %v4993_v32, 1.0737418e+09  ;;  %v2079_v14 = vsel %vm2047_vm0, %v4923_v59, 1.0737418e+09 }
 0x267   : > { %v2117_v52 = vmin.f32 %v2078_v0, %v2079_v14  ;;  %v5015_v54 = vpop.xlane.xlu1 %2015  ;;  %v2120_v14 = vmin.f32 %v2080_v28, %v2081_v31 }
 0x268   : > { %6704 = vst [vmem:[#allocation21_spill] sm:$0xff] %v5015_v54  ;;  %v5017_v55 = vpop.xlane.xlu0 %2012  ;;  %vm2052_vm5 = vcmp.eq.f32.partialorder %v4875_v18, %v5015_v54  ;;  %vm2053_vm6 = vcmp.eq.f32.partialorder %v4878_v1, %v5015_v54 }
 0x269   : > { %6705 = vst [vmem:[#allocation23_spill] sm:$0xff] %v5017_v55  ;;  %2118 = vmin.xlane.f32.xlu0 %v2117_v52  ;;  %2115 = vmin.xlane.f32.xlu1 %v2114_v29  ;;  %vm2050_vm3 = vcmp.eq.f32.partialorder %v4873_v58, %v5017_v55  ;;  %vm2051_vm4 = vcmp.eq.f32.partialorder %v4867_v15, %v5017_v55  ;;  %v5033_v52 = vld [vmem:[#allocation3 + $0x58] sm:$0xff]  ;;  %v2084_v55 = vsel %vm2052_vm5, %v5025_v44, 1.0737418e+09  ;;  %v2085_v24 = vsel %vm2053_vm6, %v4923_v59, 1.0737418e+09 }
 0x26a   : > { %v2082_v48 = vsel %vm2050_vm3, %v5013_v53, 1.0737418e+09  ;;  %v2083_v62 = vsel %vm2051_vm4, %v4923_v59, 1.0737418e+09 }
 0x26b   : > { %v2123_v0 = vmin.f32 %v2082_v48, %v2083_v62  ;;  %v5035_v29 = vpop.xlane.xlu1 %2021  ;;  %v5045_v48 = vld [vmem:[#allocation3] sm:$0xff] }
 0x26c   : > { %6706 = vst [vmem:[#allocation27_spill] sm:$0xff] %v5035_v29  ;;  %v5037_v43 = vpop.xlane.xlu0 %2018  ;;  %vm2056_vm9 = vcmp.eq.f32.partialorder %v4887_v50, %v5035_v29  ;;  %vm2057_vm10 = vcmp.eq.f32.partialorder %v4890_v26, %v5035_v29 }
 0x26d   : > { %6707 = vst [vmem:[#allocation16_spill] sm:$0xff] %v5037_v43  ;;  %2124 = vmin.xlane.f32.xlu0 %v2123_v0  ;;  %2121 = vmin.xlane.f32.xlu1 %v2120_v14  ;;  %vm2054_vm7 = vcmp.eq.f32.partialorder %v4892_v25, %v5037_v43  ;;  %vm2055_vm8 = vcmp.eq.f32.partialorder %v4883_v35, %v5037_v43  ;;  %v5053_v14 = vld [vmem:[#allocation3 + $0x8] sm:$0xff]  ;;  %v2088_v43 = vsel %vm2056_vm9, %v5045_v48, 1.0737418e+09  ;;  %v2089_v17 = vsel %vm2057_vm10, %v4923_v59, 1.0737418e+09 }
 0x26e   : > { %v2086_v28 = vsel %vm2054_vm7, %v5033_v52, 1.0737418e+09  ;;  %v2087_v31 = vsel %vm2055_vm8, %v4923_v59, 1.0737418e+09  ;;  %v2126_v0 = vmin.f32 %v2084_v55, %v2085_v24 }
 0x26f   : > { %v2129_v62 = vmin.f32 %v2086_v28, %v2087_v31  ;;  %v5057_v33 = vpop.xlane.xlu1 %2027  ;;  %v5065_v28 = vld [vmem:[#allocation3 + $0x60] sm:$0xff] }
 0x270   : > { %v5055_v54 = vpop.xlane.xlu0 %2024  ;;  %6709 = vst [vmem:[#allocation24_spill] sm:$0xff] %v5057_v33  ;;  %vm2060_vm13 = vcmp.eq.f32.partialorder %v4901_v20, %v5057_v33  ;;  %vm2061_vm14 = vcmp.eq.f32.partialorder %v4904_v22, %v5057_v33 }
 0x271   : > { %6708 = vst [vmem:[#allocation9_spill] sm:$0xff] %v5055_v54  ;;  %2130 = vmin.xlane.f32.xlu0 %v2129_v62  ;;  %2127 = vmin.xlane.f32.xlu1 %v2126_v0  ;;  %vm2058_vm11 = vcmp.eq.f32.partialorder %v4906_v2, %v5055_v54  ;;  %vm2059_vm12 = vcmp.eq.f32.partialorder %v4897_v30, %v5055_v54  ;;  %v5073_v0 = vld [vmem:[#allocation3 + $0x50] sm:$0xff]  ;;  %v2092_v54 = vsel %vm2060_vm13, %v5065_v28, 1.0737418e+09  ;;  %v2093_v23 = vsel %vm2061_vm14, %v4923_v59, 1.0737418e+09 }
 0x272   : > { %v2090_v24 = vsel %vm2058_vm11, %v5053_v14, 1.0737418e+09  ;;  %v2091_v55 = vsel %vm2059_vm12, %v4923_v59, 1.0737418e+09  ;;  %v2132_v62 = vmin.f32 %v2088_v43, %v2089_v17 }
 0x273   : > { %v2135_v31 = vmin.f32 %v2090_v24, %v2091_v55  ;;  %v2138_v24 = vmin.f32 %v2092_v54, %v2093_v23 }
 0x274   : > { %v5075_v29 = vpop.xlane.xlu0 %2030 }
 0x275   : > { %6710 = vst [vmem:[#allocation4_spill] sm:$0xff] %v5075_v29  ;;  %2136 = vmin.xlane.f32.xlu0 %v2135_v31  ;;  %2133 = vmin.xlane.f32.xlu1 %v2132_v62  ;;  %vm2062_vm15 = vcmp.eq.f32.partialorder %v4915_v34, %v5075_v29  ;;  %vm2063_vm0 = vcmp.eq.f32.partialorder %v4911_v46, %v5075_v29 }
 0x276   : > { %v2094_v33 = vsel %vm2062_vm15, %v5073_v0, 1.0737418e+09  ;;  %v2095_v17 = vsel %vm2063_vm0, %v4923_v59, 1.0737418e+09 }
 0x277   : > { %v2141_v43 = vmin.f32 %v2094_v33, %v2095_v17 }
 0x279   : > { %2142 = vmin.xlane.f32.xlu0 %v2141_v43  ;;  %2139 = vmin.xlane.f32.xlu1 %v2138_v24 }
 0x2e0   : > { %v5085_v55 = vpop.xlane.xlu0 %2100 }
 0x2e1   : > { %6711 = vst [vmem:[#allocation18_spill] sm:$0xff] %v5085_v55  ;;  %vm2146_vm1 = vcmp.eq.f32.partialorder %v4925_v56, %v5085_v55  ;;  %vm2147_vm2 = vcmp.eq.f32.partialorder %v4923_v59, %v5085_v55 }
 0x2e2   : > { %v5091_v31 = vpop.xlane.xlu1 %2097  ;;  %v5094_v62 = vsel %vm2146_vm1, inf, %v4777_v40  ;;  %v5097_v29 = vsel %vm2147_vm2, inf, %v4775_v41 }
 0x2e3   : > { %6712 = vst [vmem:[#allocation22_spill] sm:$0xff] %v5091_v31  ;;  %v2211_v23 = vmin.f32 %v5094_v62, %v5097_v29  ;;  %vm2144_vm3 = vcmp.eq.f32.partialorder %v4933_v9, %v5091_v31  ;;  %vm2145_vm4 = vcmp.eq.f32.partialorder %v4923_v59, %v5091_v31 }
 0x2e4   : > { %v5106_v33 = vsel %vm2144_vm3, inf, %v4789_v5  ;;  %v5109_v54 = vsel %vm2145_vm4, inf, %v4787_v60 }
 0x2e5   : > { %2212 = vmin.xlane.f32.xlu0 %v2211_v23  ;;  %v2208_v41 = vmin.f32 %v5106_v33, %v5109_v54 }
 0x2e6   : > { %v5113_v40 = vpop.xlane.xlu0 %2106 }
 0x2e7   : > { %6713 = vst [vmem:[#allocation20_spill] sm:$0xff] %v5113_v40  ;;  %2209 = vmin.xlane.f32.xlu1 %v2208_v41  ;;  %vm2150_vm5 = vcmp.eq.f32.partialorder %v4945_v39, %v5113_v40  ;;  %vm2151_vm6 = vcmp.eq.f32.partialorder %v4923_v59, %v5113_v40 }
 0x2e8   : > { %v5120_v17 = vsel %vm2150_vm5, inf, %v4808_v10  ;;  %v5123_v5 = vsel %vm2151_vm6, inf, %v4801_v6 }
 0x2e9   : > { %v2217_v60 = vmin.f32 %v5120_v17, %v5123_v5 }
 0x2ea   : > { %v5127_v43 = vpop.xlane.xlu1 %2103 }
 0x2eb   : > { %6714 = vst [vmem:[#allocation25_spill] sm:$0xff] %v5127_v43  ;;  %2218 = vmin.xlane.f32.xlu0 %v2217_v60  ;;  %vm2148_vm7 = vcmp.eq.f32.partialorder %v4955_v21, %v5127_v43  ;;  %vm2149_vm8 = vcmp.eq.f32.partialorder %v4923_v59, %v5127_v43 }
 0x2ec   : > { %v5134_v24 = vsel %vm2148_vm7, inf, %v4826_v49  ;;  %v5137_v10 = vsel %vm2149_vm8, inf, %v4816_v57 }
 0x2ed   : > { %v2214_v6 = vmin.f32 %v5134_v24, %v5137_v10 }
 0x2ee   : > { %v5141_v23 = vpop.xlane.xlu0 %2112  ;;  %v5143_v41 = vpop.xlane.xlu1 %2109 }
 0x2ef   : > { %6715 = vst [vmem:[#allocation5_spill] sm:$0xff] %v5141_v23  ;;  %6716 = vst [vmem:[#allocation26_spill] sm:$0xff] %v5143_v41  ;;  %2215 = vmin.xlane.f32.xlu1 %v2214_v6  ;;  %vm2154_vm9 = vcmp.eq.f32.partialorder %v4973_v36, %v5141_v23  ;;  %vm2155_vm10 = vcmp.eq.f32.partialorder %v4923_v59, %v5141_v23  ;;  %vm2152_vm11 = vcmp.eq.f32.partialorder %v4965_v47, %v5143_v41 }
 0x2f0   : > { %vm2153_vm12 = vcmp.eq.f32.partialorder %v4923_v59, %v5143_v41  ;;  %v5154_v57 = vsel %vm2154_vm9, inf, %v4839_v16  ;;  %v5157_v49 = vsel %vm2155_vm10, inf, %v4832_v38  ;;  %v5160_v60 = vsel %vm2152_vm11, inf, %v4824_v12 }
 0x2f1   : > { %v5163_v6 = vsel %vm2153_vm12, inf, %v4822_v27  ;;  %v2223_v23 = vmin.f32 %v5154_v57, %v5157_v49 }
 0x2f2   : > { %v2220_v43 = vmin.f32 %v5160_v60, %v5163_v6  ;;  %v5169_v40 = vpop.xlane.xlu0 %2118  ;;  %v5171_v41 = vpop.xlane.xlu1 %2115 }
 0x2f3   : > { %6717 = vst [vmem:[#allocation6_spill] sm:$0xff] %v5169_v40  ;;  %6718 = vst [vmem:[#allocation28_spill] sm:$0xff] %v5171_v41  ;;  %2224 = vmin.xlane.f32.xlu0 %v2223_v23  ;;  %vm2158_vm13 = vcmp.eq.f32.partialorder %v4993_v32, %v5169_v40  ;;  %vm2159_vm14 = vcmp.eq.f32.partialorder %v4923_v59, %v5169_v40  ;;  %vm2156_vm15 = vcmp.eq.f32.partialorder %v4985_v19, %v5171_v41 }
 0x2f4   : > { %2221 = vmin.xlane.f32.xlu1 %v2220_v43  ;;  %v5180_v27 = vsel %vm2158_vm13, inf, %v4863_v63  ;;  %v5183_v12 = vsel %vm2159_vm14, inf, %v4853_v37  ;;  %vm2157_vm0 = vcmp.eq.f32.partialorder %v4923_v59, %v5171_v41  ;;  %v5188_v38 = vsel %vm2156_vm15, inf, %v4844_v4 }
 0x2f5   : > { %v2229_v16 = vmin.f32 %v5180_v27, %v5183_v12  ;;  %v5193_v43 = vsel %vm2157_vm0, inf, %v4848_v61 }
 0x2f6   : > { %v5195_v23 = vpop.xlane.xlu0 %2124  ;;  %v5197_v40 = vpop.xlane.xlu1 %2121  ;;  %v2226_v37 = vmin.f32 %v5188_v38, %v5193_v43 }
 0x2f7   : > { %6719 = vst [vmem:[#allocation7_spill] sm:$0xff] %v5195_v23  ;;  %6720 = vst [vmem:[#allocation29_spill] sm:$0xff] %v5197_v40  ;;  %2230 = vmin.xlane.f32.xlu0 %v2229_v16  ;;  %vm2162_vm1 = vcmp.eq.f32.partialorder %v5013_v53, %v5195_v23  ;;  %vm2163_vm2 = vcmp.eq.f32.partialorder %v4923_v59, %v5195_v23  ;;  %vm2160_vm3 = vcmp.eq.f32.partialorder %v5005_v42, %v5197_v40 }
 0x2f8   : > { %vm2161_vm4 = vcmp.eq.f32.partialorder %v4923_v59, %v5197_v40  ;;  %2227 = vmin.xlane.f32.xlu1 %v2226_v37  ;;  %v5210_v4 = vsel %vm2162_vm1, inf, %v4873_v58  ;;  %v5213_v61 = vsel %vm2163_vm2, inf, %v4867_v15  ;;  %v5216_v63 = vsel %vm2160_vm3, inf, %v4857_v8 }
 0x2f9   : > { %v5219_v16 = vsel %vm2161_vm4, inf, %v4861_v11  ;;  %v2235_v23 = vmin.f32 %v5210_v4, %v5213_v61 }
 0x2fa   : > { %v2232_v41 = vmin.f32 %v5216_v63, %v5219_v16  ;;  %v5225_v40 = vpop.xlane.xlu0 %2130  ;;  %v5227_v37 = vpop.xlane.xlu1 %2127 }
 0x2fb   : > { %6721 = vst [vmem:[#allocation8_spill] sm:$0xff] %v5225_v40  ;;  %6722 = vst [vmem:[#allocation10_spill] sm:$0xff] %v5227_v37  ;;  %2236 = vmin.xlane.f32.xlu0 %v2235_v23  ;;  %vm2166_vm5 = vcmp.eq.f32.partialorder %v5033_v52, %v5225_v40  ;;  %vm2167_vm6 = vcmp.eq.f32.partialorder %v4923_v59, %v5225_v40  ;;  %vm2164_vm7 = vcmp.eq.f32.partialorder %v5025_v44, %v5227_v37 }
 0x2fc   : > { %vm2165_vm8 = vcmp.eq.f32.partialorder %v4923_v59, %v5227_v37  ;;  %2233 = vmin.xlane.f32.xlu1 %v2232_v41  ;;  %v5238_v8 = vsel %vm2166_vm5, inf, %v4892_v25  ;;  %v5241_v11 = vsel %vm2167_vm6, inf, %v4883_v35  ;;  %v5244_v15 = vsel %vm2164_vm7, inf, %v4875_v18 }
 0x2fd   : > { %v5247_v58 = vsel %vm2165_vm8, inf, %v4878_v1  ;;  %v2241_v23 = vmin.f32 %v5238_v8, %v5241_v11 }
 0x2fe   : > { %v2238_v40 = vmin.f32 %v5244_v15, %v5247_v58  ;;  %v5253_v37 = vpop.xlane.xlu0 %2136  ;;  %v5255_v41 = vpop.xlane.xlu1 %2133 }
 0x2ff   : > { %6723 = vst [vmem:[#allocation30_spill] sm:$0xff] %v5253_v37  ;;  %6724 = vst [vmem:[#allocation31_spill] sm:$0xff] %v5255_v41  ;;  %2242 = vmin.xlane.f32.xlu0 %v2241_v23  ;;  %vm2170_vm9 = vcmp.eq.f32.partialorder %v5053_v14, %v5253_v37  ;;  %vm2171_vm10 = vcmp.eq.f32.partialorder %v4923_v59, %v5253_v37  ;;  %vm2168_vm11 = vcmp.eq.f32.partialorder %v5045_v48, %v5255_v41 }
 0x300   : > { %vm2169_vm12 = vcmp.eq.f32.partialorder %v4923_v59, %v5255_v41  ;;  %2239 = vmin.xlane.f32.xlu1 %v2238_v40  ;;  %v5266_v18 = vsel %vm2170_vm9, inf, %v4906_v2  ;;  %v5269_v1 = vsel %vm2171_vm10, inf, %v4897_v30  ;;  %v5272_v35 = vsel %vm2168_vm11, inf, %v4887_v50 }
 0x301   : > { %v5275_v25 = vsel %vm2169_vm12, inf, %v4890_v26  ;;  %v2247_v23 = vmin.f32 %v5266_v18, %v5269_v1 }
 0x302   : > { %v2244_v37 = vmin.f32 %v5272_v35, %v5275_v25  ;;  %v5281_v41 = vpop.xlane.xlu0 %2142  ;;  %v5283_v40 = vpop.xlane.xlu1 %2139 }
 0x303   : > { %6725 = vst [vmem:[#allocation32_spill] sm:$0xff] %v5281_v41  ;;  %6726 = vst [vmem:[#allocation33_spill] sm:$0xff] %v5283_v40  ;;  %vm2174_vm13 = vcmp.eq.f32.partialorder %v5073_v0, %v5281_v41  ;;  %vm2175_vm14 = vcmp.eq.f32.partialorder %v4923_v59, %v5281_v41  ;;  %vm2172_vm15 = vcmp.eq.f32.partialorder %v5065_v28, %v5283_v40  ;;  %2248 = vmin.xlane.f32.xlu0 %v2247_v23 }
 0x304   : > { %vm2173_vm0 = vcmp.eq.f32.partialorder %v4923_v59, %v5283_v40  ;;  %2245 = vmin.xlane.f32.xlu1 %v2244_v37  ;;  %v5294_v50 = vsel %vm2174_vm13, inf, %v4915_v34  ;;  %v5297_v26 = vsel %vm2175_vm14, inf, %v4911_v46  ;;  %v5302_v2 = vsel %vm2172_vm15, inf, %v4901_v20 }
 0x305   : > { %v2253_v30 = vmin.f32 %v5294_v50, %v5297_v26  ;;  %v5305_v41 = vsel %vm2173_vm0, inf, %v4904_v22 }
 0x306   : > { %v2250_v23 = vmin.f32 %v5302_v2, %v5305_v41 }
 0x307   : > { %2254 = vmin.xlane.f32.xlu0 %v2253_v30 }
 0x308   : > { %2251 = vmin.xlane.f32.xlu1 %v2250_v23 }
 0x36e   : > { %v5309_v37 = vpop.xlane.xlu0 %2212 }
 0x36f   : > { %vm2258_vm1 = vcmp.eq.f32.partialorder %v5094_v62, %v5309_v37  ;;  %vm2259_vm2 = vcmp.eq.f32.partialorder %v5097_v29, %v5309_v37 }
 0x370   : > { %v5315_v46 = vpop.xlane.xlu1 %2209  ;;  %v2290_v20 = vsel %vm2258_vm1, %v4925_v56, 1.0737418e+09  ;;  %v2291_v22 = vsel %vm2259_vm2, %v4923_v59, 1.0737418e+09 }
 0x371   : > { %v2323_v34 = vmin.f32 %v2290_v20, %v2291_v22  ;;  %vm2256_vm3 = vcmp.eq.f32.partialorder %v5106_v33, %v5315_v46  ;;  %vm2257_vm4 = vcmp.eq.f32.partialorder %v5109_v54, %v5315_v46 }
 0x372   : > { %v2288_v30 = vsel %vm2256_vm3, %v4933_v9, 1.0737418e+09  ;;  %v2289_v23 = vsel %vm2257_vm4, %v4923_v59, 1.0737418e+09 }
 0x373   : > { %2324 = vmin.xlane.f32.xlu0 %v2323_v34  ;;  %v2320_v40 = vmin.f32 %v2288_v30, %v2289_v23 }
 0x374   : > { %v5325_v31 = vpop.xlane.xlu0 %2218 }
 0x375   : > { %6727 = vst [vmem:[#allocation34_spill] sm:$0xff] %v5325_v31  ;;  %2321 = vmin.xlane.f32.xlu1 %v2320_v40  ;;  %vm2262_vm5 = vcmp.eq.f32.partialorder %v5120_v17, %v5325_v31  ;;  %vm2263_vm6 = vcmp.eq.f32.partialorder %v5123_v5, %v5325_v31 }
 0x376   : > { %v2294_v20 = vsel %vm2262_vm5, %v4945_v39, 1.0737418e+09  ;;  %v2295_v22 = vsel %vm2263_vm6, %v4923_v59, 1.0737418e+09 }
 0x377   : > { %v2329_v55 = vmin.f32 %v2294_v20, %v2295_v22 }
 0x378   : > { %v5333_v13 = vpop.xlane.xlu1 %2215 }
 0x379   : > { %6728 = vst [vmem:[#allocation35_spill] sm:$0xff] %v5333_v13  ;;  %2330 = vmin.xlane.f32.xlu0 %v2329_v55  ;;  %vm2260_vm7 = vcmp.eq.f32.partialorder %v5134_v24, %v5333_v13  ;;  %vm2261_vm8 = vcmp.eq.f32.partialorder %v5137_v10, %v5333_v13 }
 0x37a   : > { %v2292_v40 = vsel %vm2260_vm7, %v4955_v21, 1.0737418e+09  ;;  %v2293_v34 = vsel %vm2261_vm8, %v4923_v59, 1.0737418e+09 }
 0x37b   : > { %v2326_v30 = vmin.f32 %v2292_v40, %v2293_v34 }
 0x37c   : > { %v5341_v23 = vpop.xlane.xlu0 %2224 }
 0x37d   : > { %6729 = vst [vmem:[#allocation36_spill] sm:$0xff] %v5341_v23  ;;  %v5343_v31 = vpop.xlane.xlu1 %2221  ;;  %2327 = vmin.xlane.f32.xlu1 %v2326_v30  ;;  %vm2266_vm9 = vcmp.eq.f32.partialorder %v5154_v57, %v5341_v23  ;;  %vm2267_vm10 = vcmp.eq.f32.partialorder %v5157_v49, %v5341_v23 }
 0x37e   : > { %6730 = vst [vmem:[#allocation37_spill] sm:$0xff] %v5343_v31  ;;  %v2298_v55 = vsel %vm2266_vm9, %v4973_v36, 1.0737418e+09  ;;  %v2299_v20 = vsel %vm2267_vm10, %v4923_v59, 1.0737418e+09  ;;  %vm2264_vm11 = vcmp.eq.f32.partialorder %v5160_v60, %v5343_v31  ;;  %vm2265_vm12 = vcmp.eq.f32.partialorder %v5163_v6, %v5343_v31 }
 0x37f   : > { %v2335_v22 = vmin.f32 %v2298_v55, %v2299_v20  ;;  %v2296_v40 = vsel %vm2264_vm11, %v4965_v47, 1.0737418e+09  ;;  %v2297_v34 = vsel %vm2265_vm12, %v4923_v59, 1.0737418e+09 }
 0x380   : > { %v5357_v30 = vpop.xlane.xlu0 %2230  ;;  %v2332_v13 = vmin.f32 %v2296_v40, %v2297_v34 }
 0x381   : > { %6731 = vst [vmem:[#allocation38_spill] sm:$0xff] %v5357_v30  ;;  %v5359_v51 = vpop.xlane.xlu1 %2227  ;;  %2336 = vmin.xlane.f32.xlu0 %v2335_v22  ;;  %vm2270_vm13 = vcmp.eq.f32.partialorder %v5180_v27, %v5357_v30  ;;  %vm2271_vm14 = vcmp.eq.f32.partialorder %v5183_v12, %v5357_v30 }
 0x382   : > { %6732 = vst [vmem:[#allocation39_spill] sm:$0xff] %v5359_v51  ;;  %2333 = vmin.xlane.f32.xlu1 %v2332_v13  ;;  %v2302_v31 = vsel %vm2270_vm13, %v4993_v32, 1.0737418e+09  ;;  %v2303_v55 = vsel %vm2271_vm14, %v4923_v59, 1.0737418e+09  ;;  %vm2268_vm15 = vcmp.eq.f32.partialorder %v5188_v38, %v5359_v51  ;;  %vm2269_vm0 = vcmp.eq.f32.partialorder %v5193_v43, %v5359_v51 }
 0x383   : > { %v2341_v20 = vmin.f32 %v2302_v31, %v2303_v55  ;;  %v2300_v22 = vsel %vm2268_vm15, %v4985_v19, 1.0737418e+09  ;;  %v2301_v34 = vsel %vm2269_vm0, %v4923_v59, 1.0737418e+09 }
 0x384   : > { %v5372_v40 = vpop.xlane.xlu0 %2236  ;;  %v2338_v13 = vmin.f32 %v2300_v22, %v2301_v34 }
 0x385   : > { %6733 = vst [vmem:[#allocation40_spill] sm:$0xff] %v5372_v40  ;;  %v5375_v23 = vpop.xlane.xlu1 %2233  ;;  %2342 = vmin.xlane.f32.xlu0 %v2341_v20  ;;  %vm2274_vm1 = vcmp.eq.f32.partialorder %v5210_v4, %v5372_v40  ;;  %vm2275_vm2 = vcmp.eq.f32.partialorder %v5213_v61, %v5372_v40 }
 0x386   : > { %6734 = vst [vmem:[#allocation41_spill] sm:$0xff] %v5375_v23  ;;  %v2306_v31 = vsel %vm2274_vm1, %v5013_v53, 1.0737418e+09  ;;  %v2307_v55 = vsel %vm2275_vm2, %v4923_v59, 1.0737418e+09  ;;  %vm2272_vm3 = vcmp.eq.f32.partialorder %v5216_v63, %v5375_v23  ;;  %2339 = vmin.xlane.f32.xlu1 %v2338_v13  ;;  %vm2273_vm4 = vcmp.eq.f32.partialorder %v5219_v16, %v5375_v23 }
 0x387   : > { %v2347_v51 = vmin.f32 %v2306_v31, %v2307_v55  ;;  %v2304_v20 = vsel %vm2272_vm3, %v5005_v42, 1.0737418e+09  ;;  %v2305_v34 = vsel %vm2273_vm4, %v4923_v59, 1.0737418e+09 }
 0x388   : > { %v5388_v22 = vpop.xlane.xlu0 %2242  ;;  %v2344_v40 = vmin.f32 %v2304_v20, %v2305_v34 }
 0x389   : > { %6735 = vst [vmem:[#allocation42_spill] sm:$0xff] %v5388_v22  ;;  %v5391_v30 = vpop.xlane.xlu1 %2239  ;;  %2348 = vmin.xlane.f32.xlu0 %v2347_v51  ;;  %vm2278_vm5 = vcmp.eq.f32.partialorder %v5238_v8, %v5388_v22  ;;  %vm2279_vm6 = vcmp.eq.f32.partialorder %v5241_v11, %v5388_v22 }
 0x38a   : > { %6736 = vst [vmem:[#allocation43_spill] sm:$0xff] %v5391_v30  ;;  %v2310_v13 = vsel %vm2278_vm5, %v5033_v52, 1.0737418e+09  ;;  %v2311_v31 = vsel %vm2279_vm6, %v4923_v59, 1.0737418e+09  ;;  %vm2276_vm7 = vcmp.eq.f32.partialorder %v5244_v15, %v5391_v30  ;;  %2345 = vmin.xlane.f32.xlu1 %v2344_v40  ;;  %vm2277_vm8 = vcmp.eq.f32.partialorder %v5247_v58, %v5391_v30 }
 0x38b   : > { %v2353_v55 = vmin.f32 %v2310_v13, %v2311_v31  ;;  %v2308_v51 = vsel %vm2276_vm7, %v5025_v44, 1.0737418e+09  ;;  %v2309_v34 = vsel %vm2277_vm8, %v4923_v59, 1.0737418e+09 }
 0x38c   : > { %v5404_v20 = vpop.xlane.xlu0 %2248  ;;  %v2350_v22 = vmin.f32 %v2308_v51, %v2309_v34 }
 0x38d   : > { %6737 = vst [vmem:[#allocation44_spill] sm:$0xff] %v5404_v20  ;;  %v5407_v23 = vpop.xlane.xlu1 %2245  ;;  %2354 = vmin.xlane.f32.xlu0 %v2353_v55  ;;  %vm2282_vm9 = vcmp.eq.f32.partialorder %v5266_v18, %v5404_v20  ;;  %vm2283_vm10 = vcmp.eq.f32.partialorder %v5269_v1, %v5404_v20 }
 0x38e   : > { %v2314_v40 = vsel %vm2282_vm9, %v5053_v14, 1.0737418e+09  ;;  %v2315_v13 = vsel %vm2283_vm10, %v4923_v59, 1.0737418e+09  ;;  %vm2280_vm11 = vcmp.eq.f32.partialorder %v5272_v35, %v5407_v23  ;;  %2351 = vmin.xlane.f32.xlu1 %v2350_v22  ;;  %vm2281_vm12 = vcmp.eq.f32.partialorder %v5275_v25, %v5407_v23 }
 0x38f   : > { %v2359_v31 = vmin.f32 %v2314_v40, %v2315_v13  ;;  %v2312_v55 = vsel %vm2280_vm11, %v5045_v48, 1.0737418e+09  ;;  %v2313_v34 = vsel %vm2281_vm12, %v4923_v59, 1.0737418e+09 }
 0x390   : > { %v5420_v51 = vpop.xlane.xlu0 %2254  ;;  %v2356_v20 = vmin.f32 %v2312_v55, %v2313_v34 }
 0x391   : > { %6738 = vst [vmem:[#allocation45_spill] sm:$0xff] %v5420_v51  ;;  %v5423_v30 = vpop.xlane.xlu1 %2251  ;;  %2360 = vmin.xlane.f32.xlu0 %v2359_v31  ;;  %vm2286_vm13 = vcmp.eq.f32.partialorder %v5294_v50, %v5420_v51  ;;  %vm2287_vm14 = vcmp.eq.f32.partialorder %v5297_v26, %v5420_v51 }
 0x392   : > { %6739 = vst [vmem:[#allocation46_spill] sm:$0xff] %v5423_v30  ;;  %v2318_v22 = vsel %vm2286_vm13, %v5073_v0, 1.0737418e+09  ;;  %v2319_v40 = vsel %vm2287_vm14, %v4923_v59, 1.0737418e+09  ;;  %vm2284_vm15 = vcmp.eq.f32.partialorder %v5302_v2, %v5423_v30  ;;  %2357 = vmin.xlane.f32.xlu1 %v2356_v20  ;;  %vm2285_vm0 = vcmp.eq.f32.partialorder %v5305_v41, %v5423_v30 }
 0x393   : > { %v2365_v13 = vmin.f32 %v2318_v22, %v2319_v40  ;;  %v2316_v31 = vsel %vm2284_vm15, %v5065_v28, 1.0737418e+09  ;;  %v2317_v55 = vsel %vm2285_vm0, %v4923_v59, 1.0737418e+09 }
 0x394   : > { %v2362_v34 = vmin.f32 %v2316_v31, %v2317_v55 }
 0x395   : > { %2366 = vmin.xlane.f32.xlu0 %v2365_v13 }
 0x396   : > { %2363 = vmin.xlane.f32.xlu1 %v2362_v34 }
 0x3fc   : > { %v5437_v51 = vpop.xlane.xlu0 %2324 }
 0x3fd   : > { %vm2370_vm1 = vcmp.eq.f32.partialorder %v4925_v56, %v5437_v51  ;;  %vm2371_vm2 = vcmp.eq.f32.partialorder %v4923_v59, %v5437_v51 }
 0x3fe   : > { %v5443_v20 = vpop.xlane.xlu1 %2321  ;;  %v5446_v22 = vsel %vm2370_vm1, inf, %v5094_v62  ;;  %v5449_v40 = vsel %vm2371_vm2, inf, %v5097_v29 }
 0x3ff   : > { %vm2368_vm3 = vcmp.eq.f32.partialorder %v4933_v9, %v5443_v20  ;;  %vm2369_vm4 = vcmp.eq.f32.partialorder %v4923_v59, %v5443_v20  ;;  %v2435_v13 = vmin.f32 %v5446_v22, %v5449_v40 }
 0x400   : > { %v5458_v31 = vsel %vm2368_vm3, inf, %v5106_v33  ;;  %v5461_v55 = vsel %vm2369_vm4, inf, %v5109_v54 }
 0x401   : > { %2436 = vmin.xlane.f32.xlu0 %v2435_v13  ;;  %v2432_v29 = vmin.f32 %v5458_v31, %v5461_v55 }
 0x402   : > { %v5465_v62 = vpop.xlane.xlu0 %2330 }
 0x403   : > { %6740 = vst [vmem:[#allocation47_spill] sm:$0xff] %v5465_v62  ;;  %vm2374_vm5 = vcmp.eq.f32.partialorder %v4945_v39, %v5465_v62  ;;  %vm2375_vm6 = vcmp.eq.f32.partialorder %v4923_v59, %v5465_v62  ;;  %2433 = vmin.xlane.f32.xlu1 %v2432_v29 }
 0x404   : > { %v5472_v34 = vsel %vm2374_vm5, inf, %v5120_v17  ;;  %v5475_v33 = vsel %vm2375_vm6, inf, %v5123_v5 }
 0x405   : > { %v2441_v54 = vmin.f32 %v5472_v34, %v5475_v33 }
 0x406   : > { %v5479_v13 = vpop.xlane.xlu1 %2327 }
 0x407   : > { %6741 = vst [vmem:[#allocation48_spill] sm:$0xff] %v5479_v13  ;;  %vm2372_vm7 = vcmp.eq.f32.partialorder %v4955_v21, %v5479_v13  ;;  %vm2373_vm8 = vcmp.eq.f32.partialorder %v4923_v59, %v5479_v13  ;;  %2442 = vmin.xlane.f32.xlu0 %v2441_v54 }
 0x408   : > { %v5486_v29 = vsel %vm2372_vm7, inf, %v5134_v24  ;;  %v5489_v17 = vsel %vm2373_vm8, inf, %v5137_v10 }
 0x409   : > { %v2438_v5 = vmin.f32 %v5486_v29, %v5489_v17 }
 0x40a   : > { %v5493_v30 = vpop.xlane.xlu0 %2336 }
 0x40b   : > { %6742 = vst [vmem:[#allocation49_spill] sm:$0xff] %v5493_v30  ;;  %vm2378_vm9 = vcmp.eq.f32.partialorder %v4973_v36, %v5493_v30  ;;  %vm2379_vm10 = vcmp.eq.f32.partialorder %v4923_v59, %v5493_v30  ;;  %v5499_v62 = vpop.xlane.xlu1 %2333  ;;  %2439 = vmin.xlane.f32.xlu1 %v2438_v5 }
 0x40c   : > { %6743 = vst [vmem:[#allocation50_spill] sm:$0xff] %v5499_v62  ;;  %vm2376_vm11 = vcmp.eq.f32.partialorder %v4965_v47, %v5499_v62  ;;  %vm2377_vm12 = vcmp.eq.f32.partialorder %v4923_v59, %v5499_v62  ;;  %v5506_v24 = vsel %vm2378_vm9, inf, %v5154_v57  ;;  %v5509_v10 = vsel %vm2379_vm10, inf, %v5157_v49 }
 0x40d   : > { %v5512_v54 = vsel %vm2376_vm11, inf, %v5160_v60  ;;  %v5515_v30 = vsel %vm2377_vm12, inf, %v5163_v6  ;;  %v2447_v5 = vmin.f32 %v5506_v24, %v5509_v10 }
 0x40e   : > { %6744 = vst [vmem:[#allocation51_spill] sm:$0xff] %v5515_v30  ;;  %v5517_v13 = vpop.xlane.xlu0 %2342  ;;  %v2444_v62 = vmin.f32 %v5512_v54, %v5515_v30 }
 0x40f   : > { %6745 = vst [vmem:[#allocation52_spill] sm:$0xff] %v5517_v13  ;;  %vm2382_vm13 = vcmp.eq.f32.partialorder %v4993_v32, %v5517_v13  ;;  %vm2383_vm14 = vcmp.eq.f32.partialorder %v4923_v59, %v5517_v13  ;;  %v5527_v57 = vpop.xlane.xlu1 %2339  ;;  %2448 = vmin.xlane.f32.xlu0 %v2447_v5 }
 0x410   : > { %6746 = vst [vmem:[#allocation53_spill] sm:$0xff] %v5527_v57  ;;  %2445 = vmin.xlane.f32.xlu1 %v2444_v62  ;;  %v5530_v49 = vsel %vm2382_vm13, inf, %v5180_v27  ;;  %v5533_v60 = vsel %vm2383_vm14, inf, %v5183_v12  ;;  %vm2380_vm15 = vcmp.eq.f32.partialorder %v4985_v19, %v5527_v57  ;;  %vm2381_vm0 = vcmp.eq.f32.partialorder %v4923_v59, %v5527_v57 }
 0x411   : > { %v2453_v6 = vmin.f32 %v5530_v49, %v5533_v60  ;;  %v5544_v5 = vsel %vm2380_vm15, inf, %v5188_v38  ;;  %v5547_v27 = vsel %vm2381_vm0, inf, %v5193_v43 }
 0x412   : > { %v5541_v13 = vpop.xlane.xlu0 %2348  ;;  %v2450_v12 = vmin.f32 %v5544_v5, %v5547_v27 }
 0x413   : > { %6747 = vst [vmem:[#allocation54_spill] sm:$0xff] %v5541_v13  ;;  %vm2386_vm1 = vcmp.eq.f32.partialorder %v5013_v53, %v5541_v13  ;;  %vm2387_vm2 = vcmp.eq.f32.partialorder %v4923_v59, %v5541_v13  ;;  %v5555_v62 = vpop.xlane.xlu1 %2345  ;;  %2454 = vmin.xlane.f32.xlu0 %v2453_v6 }
 0x414   : > { %6748 = vst [vmem:[#allocation55_spill] sm:$0xff] %v5555_v62  ;;  %v5558_v57 = vsel %vm2386_vm1, inf, %v5210_v4  ;;  %v5561_v38 = vsel %vm2387_vm2, inf, %v5213_v61  ;;  %vm2384_vm3 = vcmp.eq.f32.partialorder %v5005_v42, %v5555_v62  ;;  %vm2385_vm4 = vcmp.eq.f32.partialorder %v4923_v59, %v5555_v62  ;;  %2451 = vmin.xlane.f32.xlu1 %v2450_v12 }
 0x415   : > { %v2459_v43 = vmin.f32 %v5558_v57, %v5561_v38  ;;  %v5572_v6 = vsel %vm2384_vm3, inf, %v5216_v63  ;;  %v5575_v4 = vsel %vm2385_vm4, inf, %v5219_v16  ;;  %vm2816_vm1 = vcmp.eq.s32.totalorder %v4920_v7, 0 }
 0x416   : > { %v5569_v13 = vpop.xlane.xlu0 %2354  ;;  %v2456_v61 = vmin.f32 %v5572_v6, %v5575_v4  ;;  %vm2849_vm2 = vcmp.eq.s32.totalorder %v4920_v7, 1  ;;  %vm2882_vm3 = vcmp.eq.s32.totalorder %v4920_v7, 2 }
 0x417   : > { %6749 = vst [vmem:[#allocation56_spill] sm:$0xff] %v5569_v13  ;;  %vm2390_vm5 = vcmp.eq.f32.partialorder %v5033_v52, %v5569_v13  ;;  %vm2391_vm6 = vcmp.eq.f32.partialorder %v4923_v59, %v5569_v13  ;;  %v5583_v12 = vpop.xlane.xlu1 %2351  ;;  %2460 = vmin.xlane.f32.xlu0 %v2459_v43 }
 0x418   : > { %6750 = vst [vmem:[#allocation57_spill] sm:$0xff] %v5583_v12  ;;  %v5586_v62 = vsel %vm2390_vm5, inf, %v5238_v8  ;;  %v5589_v63 = vsel %vm2391_vm6, inf, %v5241_v11  ;;  %vm2388_vm7 = vcmp.eq.f32.partialorder %v5025_v44, %v5583_v12  ;;  %vm2389_vm8 = vcmp.eq.f32.partialorder %v4923_v59, %v5583_v12  ;;  %2457 = vmin.xlane.f32.xlu1 %v2456_v61 }
 0x419   : > { %v2465_v16 = vmin.f32 %v5586_v62, %v5589_v63  ;;  %v5600_v43 = vsel %vm2388_vm7, inf, %v5244_v15  ;;  %v5603_v8 = vsel %vm2389_vm8, inf, %v5247_v58 }
 0x41a   : > { %v5597_v13 = vpop.xlane.xlu0 %2360  ;;  %v2462_v11 = vmin.f32 %v5600_v43, %v5603_v8 }
 0x41b   : > { %6751 = vst [vmem:[#allocation58_spill] sm:$0xff] %v5597_v13  ;;  %vm2394_vm9 = vcmp.eq.f32.partialorder %v5053_v14, %v5597_v13  ;;  %vm2395_vm10 = vcmp.eq.f32.partialorder %v4923_v59, %v5597_v13  ;;  %v5611_v61 = vpop.xlane.xlu1 %2357  ;;  %2466 = vmin.xlane.f32.xlu0 %v2465_v16 }
 0x41c   : > { %6752 = vst [vmem:[#allocation59_spill] sm:$0xff] %v5611_v61  ;;  %v5614_v12 = vsel %vm2394_vm9, inf, %v5266_v18  ;;  %v5617_v15 = vsel %vm2395_vm10, inf, %v5269_v1  ;;  %vm2392_vm11 = vcmp.eq.f32.partialorder %v5045_v48, %v5611_v61  ;;  %vm2393_vm12 = vcmp.eq.f32.partialorder %v4923_v59, %v5611_v61  ;;  %2463 = vmin.xlane.f32.xlu1 %v2462_v11 }
 0x41d   : > { %v2471_v58 = vmin.f32 %v5614_v12, %v5617_v15  ;;  %v5628_v16 = vsel %vm2392_vm11, inf, %v5272_v35  ;;  %v5631_v18 = vsel %vm2393_vm12, inf, %v5275_v25 }
 0x41e   : > { %v5625_v13 = vpop.xlane.xlu0 %2366  ;;  %v2468_v1 = vmin.f32 %v5628_v16, %v5631_v18 }
 0x41f   : > { %6753 = vst [vmem:[#allocation60_spill] sm:$0xff] %v5625_v13  ;;  %vm2398_vm13 = vcmp.eq.f32.partialorder %v5073_v0, %v5625_v13  ;;  %vm2399_vm14 = vcmp.eq.f32.partialorder %v4923_v59, %v5625_v13  ;;  %v5639_v11 = vpop.xlane.xlu1 %2363  ;;  %2472 = vmin.xlane.f32.xlu0 %v2471_v58 }
 0x420   : > { %6754 = vst [vmem:[#allocation61_spill] sm:$0xff] %v5639_v11  ;;  %v5642_v61 = vsel %vm2398_vm13, inf, %v5294_v50  ;;  %v5645_v35 = vsel %vm2399_vm14, inf, %v5297_v26  ;;  %vm2396_vm15 = vcmp.eq.f32.partialorder %v5065_v28, %v5639_v11  ;;  %vm2397_vm0 = vcmp.eq.f32.partialorder %v4923_v59, %v5639_v11  ;;  %2469 = vmin.xlane.f32.xlu1 %v2468_v1 }
 0x421   : > { %v2477_v25 = vmin.f32 %v5642_v61, %v5645_v35  ;;  %v5654_v13 = vsel %vm2396_vm15, inf, %v5302_v2  ;;  %v5657_v58 = vsel %vm2397_vm0, inf, %v5305_v41  ;;  %v2818_v26 = vsel %vm2816_vm1, %v4927_v45, inf }
 0x422   : > { %v2474_v50 = vmin.f32 %v5654_v13, %v5657_v58  ;;  %v2851_v41 = vsel %vm2849_vm2, %v5309_v37, %v2818_v26  ;;  %v2817_v1 = vsel %vm2816_vm1, %v4935_v3, inf }
 0x423   : > { %2478 = vmin.xlane.f32.xlu0 %v2477_v25  ;;  %v2850_v45 = vsel %vm2849_vm2, %v5315_v46, %v2817_v1  ;;  %v6758_v1 = vld [vmem:[#allocation34_spill] sm:$0xff] }
 0x424   : > { %2475 = vmin.xlane.f32.xlu1 %v2474_v50 }
 0x48a   : > { %v2437_v2 = vpop.xlane.xlu0 %2436 }
 0x48b   : > { %vm2482_vm4 = vcmp.eq.f32.partialorder %v5446_v22, %v2437_v2  ;;  %vm2483_vm5 = vcmp.eq.f32.partialorder %v5449_v40, %v2437_v2  ;;  %v5677_v25 = vsel %vm2882_vm3, %v2437_v2, %v2851_v41 }
 0x48c   : > { %6755 = vst [vmem:[#allocation62_spill] sm:$0xff] %v5677_v25  ;;  %v2514_v50 = vsel %vm2482_vm4, %v4925_v56, 1.0737418e+09  ;;  %v2515_v37 = vsel %vm2483_vm5, %v4923_v59, 1.0737418e+09  ;;  %v2434_v26 = vpop.xlane.xlu1 %2433  ;;  %v6757_v25 = vld [vmem:[#allocation12_spill] sm:$0xff] }
 0x48d   : > { %v5686_v3 = vsel %vm2882_vm3, %v2434_v26, %v2850_v45  ;;  %v2547_v11 = vmin.f32 %v2514_v50, %v2515_v37  ;;  %vm2480_vm6 = vcmp.eq.f32.partialorder %v5458_v31, %v2434_v26  ;;  %vm2481_vm7 = vcmp.eq.f32.partialorder %v5461_v55, %v2434_v26 }
 0x48e   : > { %6756 = vst [vmem:[#allocation63_spill] sm:$0xff] %v5686_v3  ;;  %v2512_v41 = vsel %vm2480_vm6, %v4933_v9, 1.0737418e+09  ;;  %v2513_v2 = vsel %vm2481_vm7, %v4923_v59, 1.0737418e+09  ;;  %v2820_v56 = vsel %vm2816_vm1, %v6757_v25, inf }
 0x48f   : > { %2548 = vmin.xlane.f32.xlu0 %v2547_v11  ;;  %v2544_v46 = vmin.f32 %v2512_v41, %v2513_v2  ;;  %v2853_v45 = vsel %vm2849_vm2, %v6758_v1, %v2820_v56  ;;  %v6760_v11 = vld [vmem:[#allocation11_spill] sm:$0xff] }
 0x490   : > { %v2443_v3 = vpop.xlane.xlu0 %2442  ;;  %v2819_v37 = vsel %vm2816_vm1, %v6760_v11, inf  ;;  %v6761_v41 = vld [vmem:[#allocation35_spill] sm:$0xff] }
 0x491   : > { %vm2486_vm8 = vcmp.eq.f32.partialorder %v5472_v34, %v2443_v3  ;;  %vm2487_vm9 = vcmp.eq.f32.partialorder %v5475_v33, %v2443_v3  ;;  %v5702_v9 = vsel %vm2882_vm3, %v2443_v3, %v2853_v45  ;;  %2545 = vmin.xlane.f32.xlu1 %v2544_v46  ;;  %v2852_v2 = vsel %vm2849_vm2, %v6761_v41, %v2819_v37  ;;  %v6763_v45 = vld [vmem:[#allocation15_spill] sm:$0xff]  ;;  %v6765_v37 = vld [vmem:[#allocation36_spill] sm:$0xff]  ;;  %v6766_v41 = vld [vmem:[#allocation37_spill] sm:$0xff] }
 0x492   : > { %6759 = vst [vmem:[#allocation12_spill] sm:$0xff] %v5702_v9  ;;  %v2518_v50 = vsel %vm2486_vm8, %v4945_v39, 1.0737418e+09  ;;  %v2519_v25 = vsel %vm2487_vm9, %v4923_v59, 1.0737418e+09 }
 0x493   : > { %v2553_v26 = vmin.f32 %v2518_v50, %v2519_v25  ;;  %v2822_v50 = vsel %vm2816_vm1, %v6763_v45, inf  ;;  %v6764_v25 = vld [vmem:[#allocation13_spill] sm:$0xff] }
 0x494   : > { %v2440_v56 = vpop.xlane.xlu1 %2439  ;;  %v2821_v11 = vsel %vm2816_vm1, %v6764_v25, inf  ;;  %v6768_v25 = vld [vmem:[#allocation19_spill] sm:$0xff] }
 0x495   : > { %v5714_v1 = vsel %vm2882_vm3, %v2440_v56, %v2852_v2  ;;  %2554 = vmin.xlane.f32.xlu0 %v2553_v26  ;;  %vm2484_vm10 = vcmp.eq.f32.partialorder %v5486_v29, %v2440_v56  ;;  %vm2485_vm11 = vcmp.eq.f32.partialorder %v5489_v17, %v2440_v56  ;;  %v2855_v26 = vsel %vm2849_vm2, %v6765_v37, %v2822_v50 }
 0x496   : > { %6762 = vst [vmem:[#allocation34_spill] sm:$0xff] %v5714_v1  ;;  %v2516_v39 = vsel %vm2484_vm10, %v4955_v21, 1.0737418e+09  ;;  %v2517_v3 = vsel %vm2485_vm11, %v4923_v59, 1.0737418e+09  ;;  %v2854_v2 = vsel %vm2849_vm2, %v6766_v41, %v2821_v11  ;;  %v6769_v41 = vld [vmem:[#allocation38_spill] sm:$0xff] }
 0x497   : > { %v2550_v46 = vmin.f32 %v2516_v39, %v2517_v3 }
 0x498   : > { %v2449_v21 = vpop.xlane.xlu0 %2448 }
 0x499   : > { %v2446_v56 = vpop.xlane.xlu1 %2445  ;;  %2551 = vmin.xlane.f32.xlu1 %v2550_v46  ;;  %vm2490_vm12 = vcmp.eq.f32.partialorder %v5506_v24, %v2449_v21  ;;  %vm2491_vm13 = vcmp.eq.f32.partialorder %v5509_v10, %v2449_v21  ;;  %v5736_v39 = vsel %vm2882_vm3, %v2449_v21, %v2855_v26  ;;  %v2824_v46 = vsel %vm2816_vm1, %v6768_v25, inf  ;;  %v6770_v21 = vld [vmem:[#allocation14_spill] sm:$0xff] }
 0x49a   : > { %6767 = vst [vmem:[#allocation11_spill] sm:$0xff] %v5736_v39  ;;  %vm2488_vm14 = vcmp.eq.f32.partialorder %v5512_v54, %v2446_v56  ;;  %v2522_v3 = vsel %vm2490_vm12, %v4973_v36, 1.0737418e+09  ;;  %v2523_v45 = vsel %vm2491_vm13, %v4923_v59, 1.0737418e+09  ;;  %vm2489_vm15 = vcmp.eq.f32.partialorder %v5515_v30, %v2446_v56  ;;  %v6772_v30 = vld [vmem:[#allocation39_spill] sm:$0xff] }
 0x49b   : > { %v2520_v50 = vsel %vm2488_vm14, %v4965_v47, 1.0737418e+09  ;;  %v2521_v11 = vsel %vm2489_vm15, %v4923_v59, 1.0737418e+09  ;;  %v5749_v37 = vsel %vm2882_vm3, %v2446_v56, %v2854_v2  ;;  %v2559_v26 = vmin.f32 %v2522_v3, %v2523_v45  ;;  %v6771_v47 = vld [vmem:[#allocation23_spill] sm:$0xff] }
 0x49c   : > { %v2857_v36 = vsel %vm2849_vm2, %v6769_v41, %v2824_v46  ;;  %v2823_v39 = vsel %vm2816_vm1, %v6770_v21, inf  ;;  %v2826_v1 = vsel %vm2816_vm1, %v6771_v47, inf  ;;  %v2455_v25 = vpop.xlane.xlu0 %2454  ;;  %v2556_v9 = vmin.f32 %v2520_v50, %v2521_v11  ;;  %v6773_v41 = vld [vmem:[#allocation40_spill] sm:$0xff] }
 0x49d   : > { %v2856_v2 = vsel %vm2849_vm2, %v6772_v30, %v2823_v39  ;;  %vm2494_vm0 = vcmp.eq.f32.partialorder %v5530_v49, %v2455_v25  ;;  %vm2495_vm4 = vcmp.eq.f32.partialorder %v5533_v60, %v2455_v25  ;;  %v5767_v56 = vsel %vm2882_vm3, %v2455_v25, %v2857_v36  ;;  %v2452_v3 = vpop.xlane.xlu1 %2451  ;;  %2560 = vmin.xlane.f32.xlu0 %v2559_v26  ;;  %v6774_v26 = vld [vmem:[#allocation17_spill] sm:$0xff]  ;;  %v6775_v21 = vld [vmem:[#allocation16_spill] sm:$0xff] }
 0x49e   : > { %v2526_v45 = vsel %vm2494_vm0, %v4993_v32, 1.0737418e+09  ;;  %v2527_v46 = vsel %vm2495_vm4, %v4923_v59, 1.0737418e+09  ;;  %vm2492_vm5 = vcmp.eq.f32.partialorder %v5544_v5, %v2452_v3  ;;  %vm2493_vm6 = vcmp.eq.f32.partialorder %v5547_v27, %v2452_v3  ;;  %2557 = vmin.xlane.f32.xlu1 %v2556_v9  ;;  %v6776_v25 = vld [vmem:[#allocation41_spill] sm:$0xff] }
 0x49f   : > { %v2524_v30 = vsel %vm2492_vm5, %v4985_v19, 1.0737418e+09  ;;  %v2525_v39 = vsel %vm2493_vm6, %v4923_v59, 1.0737418e+09  ;;  %v5777_v50 = vsel %vm2882_vm3, %v2452_v3, %v2856_v2  ;;  %v2565_v11 = vmin.f32 %v2526_v45, %v2527_v46 }
 0x4a0   : > { %v2859_v32 = vsel %vm2849_vm2, %v6773_v41, %v2826_v1  ;;  %v2825_v36 = vsel %vm2816_vm1, %v6774_v26, inf  ;;  %v2828_v9 = vsel %vm2816_vm1, %v6775_v21, inf  ;;  %v2461_v19 = vpop.xlane.xlu0 %2460  ;;  %v2562_v47 = vmin.f32 %v2524_v30, %v2525_v39  ;;  %v6777_v26 = vld [vmem:[#allocation42_spill] sm:$0xff]  ;;  %v6779_v21 = vld [vmem:[#allocation9_spill] sm:$0xff] }
 0x4a1   : > { %v2858_v2 = vsel %vm2849_vm2, %v6776_v25, %v2825_v36  ;;  %vm2498_vm7 = vcmp.eq.f32.partialorder %v5558_v57, %v2461_v19  ;;  %vm2499_vm8 = vcmp.eq.f32.partialorder %v5561_v38, %v2461_v19  ;;  %v5795_v1 = vsel %vm2882_vm3, %v2461_v19, %v2859_v32  ;;  %v2458_v3 = vpop.xlane.xlu1 %2457  ;;  %2566 = vmin.xlane.f32.xlu0 %v2565_v11  ;;  %v6778_v11 = vld [vmem:[#allocation21_spill] sm:$0xff]  ;;  %v6780_v25 = vld [vmem:[#allocation43_spill] sm:$0xff] }
 0x4a2   : > { %v2530_v45 = vsel %vm2498_vm7, %v5013_v53, 1.0737418e+09  ;;  %v2531_v46 = vsel %vm2499_vm8, %v4923_v59, 1.0737418e+09  ;;  %vm2496_vm9 = vcmp.eq.f32.partialorder %v5572_v6, %v2458_v3  ;;  %vm2497_vm10 = vcmp.eq.f32.partialorder %v5575_v4, %v2458_v3  ;;  %2563 = vmin.xlane.f32.xlu1 %v2562_v47 }
 0x4a3   : > { %v2528_v30 = vsel %vm2496_vm9, %v5005_v42, 1.0737418e+09  ;;  %v2529_v39 = vsel %vm2497_vm10, %v4923_v59, 1.0737418e+09  ;;  %v5805_v41 = vsel %vm2882_vm3, %v2458_v3, %v2858_v2  ;;  %v2571_v32 = vmin.f32 %v2530_v45, %v2531_v46 }
 0x4a4   : > { %v2861_v53 = vsel %vm2849_vm2, %v6777_v26, %v2828_v9  ;;  %v2827_v36 = vsel %vm2816_vm1, %v6778_v11, inf  ;;  %v2830_v19 = vsel %vm2816_vm1, %v6779_v21, inf  ;;  %v2467_v42 = vpop.xlane.xlu0 %2466  ;;  %v2568_v47 = vmin.f32 %v2528_v30, %v2529_v39  ;;  %v6782_v11 = vld [vmem:[#allocation44_spill] sm:$0xff] }
 0x4a5   : > { %v2860_v2 = vsel %vm2849_vm2, %v6780_v25, %v2827_v36  ;;  %vm2502_vm11 = vcmp.eq.f32.partialorder %v5586_v62, %v2467_v42  ;;  %vm2503_vm12 = vcmp.eq.f32.partialorder %v5589_v63, %v2467_v42  ;;  %v5823_v9 = vsel %vm2882_vm3, %v2467_v42, %v2861_v53  ;;  %v2464_v3 = vpop.xlane.xlu1 %2463  ;;  %2572 = vmin.xlane.f32.xlu0 %v2571_v32  ;;  %v6783_v32 = vld [vmem:[#allocation27_spill] sm:$0xff] }
 0x4a6   : > { %v2534_v45 = vsel %vm2502_vm11, %v5033_v52, 1.0737418e+09  ;;  %v2535_v46 = vsel %vm2503_vm12, %v4923_v59, 1.0737418e+09  ;;  %vm2500_vm13 = vcmp.eq.f32.partialorder %v5600_v43, %v2464_v3  ;;  %vm2501_vm14 = vcmp.eq.f32.partialorder %v5603_v8, %v2464_v3  ;;  %2569 = vmin.xlane.f32.xlu1 %v2568_v47 }
 0x4a7   : > { %v2532_v30 = vsel %vm2500_vm13, %v5025_v44, 1.0737418e+09  ;;  %v2533_v39 = vsel %vm2501_vm14, %v4923_v59, 1.0737418e+09  ;;  %v5833_v26 = vsel %vm2882_vm3, %v2464_v3, %v2860_v2  ;;  %v2577_v53 = vmin.f32 %v2534_v45, %v2535_v46 }
 0x4a8   : > { %6781 = vst [vmem:[#allocation35_spill] sm:$0xff] %v5833_v26  ;;  %v2863_v52 = vsel %vm2849_vm2, %v6782_v11, %v2830_v19  ;;  %v2829_v36 = vsel %vm2816_vm1, %v6783_v32, inf  ;;  %v2473_v21 = vpop.xlane.xlu0 %2472  ;;  %v2574_v42 = vmin.f32 %v2532_v30, %v2533_v39  ;;  %v6125_v26 = vld [vmem:[#allocation3 + $0x18] sm:$0xff] }
 0x4a9   : > { %v2862_v44 = vsel %vm2849_vm2, %v5407_v23, %v2829_v36  ;;  %vm2506_vm15 = vcmp.eq.f32.partialorder %v5614_v12, %v2473_v21  ;;  %vm2507_vm0 = vcmp.eq.f32.partialorder %v5617_v15, %v2473_v21  ;;  %v5848_v47 = vsel %vm2882_vm3, %v2473_v21, %v2863_v52  ;;  %v2470_v25 = vpop.xlane.xlu1 %2469  ;;  %2578 = vmin.xlane.f32.xlu0 %v2577_v53  ;;  %v6788_v21 = vld [vmem:[#allocation18_spill] sm:$0xff] }
 0x4aa   : > { %6784 = vst [vmem:[#allocation15_spill] sm:$0xff] %v5848_v47  ;;  %v2538_v19 = vsel %vm2506_vm15, %v5053_v14, 1.0737418e+09  ;;  %v2539_v2 = vsel %vm2507_vm0, %v4923_v59, 1.0737418e+09  ;;  %vm2504_vm4 = vcmp.eq.f32.partialorder %v5628_v16, %v2470_v25  ;;  %vm2505_vm5 = vcmp.eq.f32.partialorder %v5631_v18, %v2470_v25  ;;  %2575 = vmin.xlane.f32.xlu1 %v2574_v42  ;;  %v6111_v47 = vld [vmem:[#allocation3 + $0x58] sm:$0xff]  ;;  %6823 = vst [vmem:[#allocation9_spill] sm:$0xff] %v6125_v26 }
 0x4ab   : > { %v2536_v23 = vsel %vm2504_vm4, %v5045_v48, 1.0737418e+09  ;;  %v2537_v3 = vsel %vm2505_vm5, %v4923_v59, 1.0737418e+09  ;;  %v5858_v45 = vsel %vm2882_vm3, %v2470_v25, %v2862_v44  ;;  %v2583_v46 = vmin.f32 %v2538_v19, %v2539_v2  ;;  %v6789_v25 = vld [vmem:[#allocation22_spill] sm:$0xff] }
 0x4ac   : > { %6785 = vst [vmem:[#allocation13_spill] sm:$0xff] %v5858_v45  ;;  %v5860_v30 = vpop.xlane.xlu0 %2478  ;;  %v2580_v39 = vmin.f32 %v2536_v23, %v2537_v3  ;;  %v2833_v19 = vsel %vm2816_vm1, %v6789_v25, 1.0737418e+09  ;;  %v6081_v45 = vld [vmem:[#allocation3 + $0x20] sm:$0xff] }
 0x4ad   : > { %6786 = vst [vmem:[#allocation36_spill] sm:$0xff] %v5860_v30  ;;  %vm2510_vm6 = vcmp.eq.f32.partialorder %v5642_v61, %v5860_v30  ;;  %vm2511_vm7 = vcmp.eq.f32.partialorder %v5645_v35, %v5860_v30  ;;  %v5866_v14 = vpop.xlane.xlu1 %2475  ;;  %2584 = vmin.xlane.f32.xlu0 %v2583_v46  ;;  %v2866_v23 = vsel %vm2849_vm2, %v5443_v20, %v2833_v19  ;;  %v6067_v30 = vld [vmem:[#allocation3 + $0x78] sm:$0xff] }
 0x4ae   : > { %6787 = vst [vmem:[#allocation37_spill] sm:$0xff] %v5866_v14  ;;  %v2542_v48 = vsel %vm2510_vm6, %v5073_v0, 1.0737418e+09  ;;  %v2543_v53 = vsel %vm2511_vm7, %v4923_v59, 1.0737418e+09  ;;  %vm2508_vm8 = vcmp.eq.f32.partialorder %v5654_v13, %v5866_v14  ;;  %vm2509_vm9 = vcmp.eq.f32.partialorder %v5657_v58, %v5866_v14  ;;  %2581 = vmin.xlane.f32.xlu1 %v2580_v39  ;;  %v5902_v39 = vld [vmem:[#allocation3 + $0x28] sm:$0xff]  ;;  %v6037_v14 = vld [vmem:[#allocation3 + $0x70] sm:$0xff] }
 0x4af   : > { %v2540_v11 = vsel %vm2508_vm8, %v5065_v28, 1.0737418e+09  ;;  %v2541_v52 = vsel %vm2509_vm9, %v4923_v59, 1.0737418e+09  ;;  %v2589_v32 = vmin.f32 %v2542_v48, %v2543_v53  ;;  %v2834_v0 = vsel %vm2816_vm1, %v6788_v21, 1.0737418e+09  ;;  %v5885_v28 = vld [vmem:[#allocation3 + $0x68] sm:$0xff]  ;;  %v6792_v53 = vld [vmem:[#allocation20_spill] sm:$0xff] }
 0x4b0   : > { %v2586_v36 = vmin.f32 %v2540_v11, %v2541_v52  ;;  %v2867_v42 = vsel %vm2849_vm2, %v5437_v51, %v2834_v0  ;;  %v2836_v11 = vsel %vm2816_vm1, %v6792_v53, 1.0737418e+09  ;;  %v5926_v0 = vld [vmem:[#allocation3 + $0x40] sm:$0xff]  ;;  %v5948_v53 = vld [vmem:[#allocation3 + $0x10] sm:$0xff] }
 0x4b1   : > { %2590 = vmin.xlane.f32.xlu0 %v2589_v32  ;;  %v6793_v32 = vld [vmem:[#allocation47_spill] sm:$0xff] }
 0x4b2   : > { %2587 = vmin.xlane.f32.xlu1 %v2586_v36  ;;  %v2869_v36 = vsel %vm2849_vm2, %v6793_v32, %v2836_v11  ;;  %v6798_v32 = vld [vmem:[#allocation5_spill] sm:$0xff] }
 0x518   : > { %v2549_v44 = vpop.xlane.xlu0 %2548 }
 0x519   : > { %vm2594_vm10 = vcmp.eq.f32.partialorder %v5885_v28, %v2549_v44  ;;  %vm2595_vm11 = vcmp.eq.f32.partialorder %v4923_v59, %v2549_v44  ;;  %v5891_v2 = vsel %vm2882_vm3, %v2549_v44, %v2867_v42  ;;  %v6795_v44 = vld [vmem:[#allocation25_spill] sm:$0xff] }
 0x51a   : > { %6790 = vst [vmem:[#allocation19_spill] sm:$0xff] %v5891_v2  ;;  %v5897_v51 = vsel %vm2594_vm10, inf, %v5446_v22  ;;  %v5900_v3 = vsel %vm2595_vm11, inf, %v5449_v40  ;;  %v2546_v46 = vpop.xlane.xlu1 %2545  ;;  %v2835_v25 = vsel %vm2816_vm1, %v6795_v44, 1.0737418e+09  ;;  %v6023_v2 = vld [vmem:[#allocation3 + $0x38] sm:$0xff] }
 0x51b   : > { %vm2592_vm12 = vcmp.eq.f32.partialorder %v5902_v39, %v2546_v46  ;;  %vm2593_vm13 = vcmp.eq.f32.partialorder %v4923_v59, %v2546_v46  ;;  %v5908_v48 = vsel %vm2882_vm3, %v2546_v46, %v2866_v23  ;;  %v2659_v20 = vmin.f32 %v5897_v51, %v5900_v3  ;;  %v6796_v23 = vld [vmem:[#allocation48_spill] sm:$0xff] }
 0x51c   : > { %6791 = vst [vmem:[#allocation38_spill] sm:$0xff] %v5908_v48  ;;  %v5913_v22 = vsel %vm2592_vm12, inf, %v5458_v31  ;;  %v5916_v40 = vsel %vm2593_vm13, inf, %v5461_v55  ;;  %v2868_v46 = vsel %vm2849_vm2, %v6796_v23, %v2835_v25  ;;  %v6800_v25 = vld [vmem:[#allocation26_spill] sm:$0xff] }
 0x51d   : > { %2660 = vmin.xlane.f32.xlu0 %v2659_v20  ;;  %v2656_v52 = vmin.f32 %v5913_v22, %v5916_v40 }
 0x51e   : > { %v2555_v21 = vpop.xlane.xlu0 %2554 }
 0x51f   : > { %vm2598_vm14 = vcmp.eq.f32.partialorder %v5926_v0, %v2555_v21  ;;  %vm2599_vm15 = vcmp.eq.f32.partialorder %v4923_v59, %v2555_v21  ;;  %v5932_v31 = vsel %vm2882_vm3, %v2555_v21, %v2869_v36  ;;  %2657 = vmin.xlane.f32.xlu1 %v2656_v52  ;;  %v2838_v36 = vsel %vm2816_vm1, %v6798_v32, 1.0737418e+09  ;;  %v6799_v21 = vld [vmem:[#allocation49_spill] sm:$0xff] }
 0x520   : > { %6794 = vst [vmem:[#allocation14_spill] sm:$0xff] %v5932_v31  ;;  %v5935_v55 = vsel %vm2598_vm14, inf, %v5472_v34  ;;  %v5938_v42 = vsel %vm2599_vm15, inf, %v5475_v33  ;;  %v2871_v44 = vsel %vm2849_vm2, %v6799_v21, %v2838_v36 }
 0x521   : > { %v2665_v19 = vmin.f32 %v5935_v55, %v5938_v42 }
 0x522   : > { %v2552_v20 = vpop.xlane.xlu1 %2551 }
 0x523   : > { %vm2596_vm0 = vcmp.eq.f32.partialorder %v5948_v53, %v2552_v20  ;;  %vm2597_vm4 = vcmp.eq.f32.partialorder %v4923_v59, %v2552_v20  ;;  %v5954_v34 = vsel %vm2882_vm3, %v2552_v20, %v2868_v46  ;;  %2666 = vmin.xlane.f32.xlu0 %v2665_v19  ;;  %v2837_v19 = vsel %vm2816_vm1, %v6800_v25, 1.0737418e+09  ;;  %v6802_v46 = vld [vmem:[#allocation50_spill] sm:$0xff]  ;;  %v5993_v25 = vld [vmem:[#allocation3 + $0x48] sm:$0xff] }
 0x524   : > { %6797 = vst [vmem:[#allocation23_spill] sm:$0xff] %v5954_v34  ;;  %v5957_v33 = vsel %vm2596_vm0, inf, %v5486_v29  ;;  %v5960_v11 = vsel %vm2597_vm4, inf, %v5489_v17  ;;  %v6801_v29 = vld [vmem:[#allocation6_spill] sm:$0xff]  ;;  %v2870_v20 = vsel %vm2849_vm2, %v6802_v46, %v2837_v19 }
 0x525   : > { %v2662_v52 = vmin.f32 %v5957_v33, %v5960_v11  ;;  %v2840_v17 = vsel %vm2816_vm1, %v6801_v29, 1.0737418e+09  ;;  %v5979_v34 = vld [vmem:[#allocation3 + $0x30] sm:$0xff]  ;;  %v6804_v29 = vld [vmem:[#allocation51_spill] sm:$0xff] }
 0x526   : > { %v2561_v23 = vpop.xlane.xlu0 %2560 }
 0x527   : > { %2663 = vmin.xlane.f32.xlu1 %v2662_v52  ;;  %vm2602_vm5 = vcmp.eq.f32.partialorder %v5979_v34, %v2561_v23  ;;  %vm2603_vm6 = vcmp.eq.f32.partialorder %v4923_v59, %v2561_v23  ;;  %v5985_v32 = vsel %vm2882_vm3, %v2561_v23, %v2871_v44  ;;  %v2558_v36 = vpop.xlane.xlu1 %2557 }
 0x528   : > { %6803 = vst [vmem:[#allocation39_spill] sm:$0xff] %v5985_v32  ;;  %v5988_v21 = vsel %vm2602_vm5, inf, %v5506_v24  ;;  %v5991_v52 = vsel %vm2603_vm6, inf, %v5509_v10  ;;  %vm2600_vm7 = vcmp.eq.f32.partialorder %v5993_v25, %v2558_v36  ;;  %vm2601_vm8 = vcmp.eq.f32.partialorder %v4923_v59, %v2558_v36  ;;  %v6806_v10 = vld [vmem:[#allocation52_spill] sm:$0xff] }
 0x529   : > { %v5998_v19 = vsel %vm2600_vm7, inf, %v5512_v54  ;;  %v6001_v46 = vsel %vm2601_vm8, inf, %v6804_v29  ;;  %v6005_v44 = vsel %vm2882_vm3, %v2558_v36, %v2870_v20  ;;  %v2671_v24 = vmin.f32 %v5988_v21, %v5991_v52  ;;  %v6807_v32 = vld [vmem:[#allocation28_spill] sm:$0xff]  ;;  %v6808_v54 = vld [vmem:[#allocation7_spill] sm:$0xff]  ;;  %v6809_v36 = vld [vmem:[#allocation53_spill] sm:$0xff] }
 0x52a   : > { %6805 = vst [vmem:[#allocation40_spill] sm:$0xff] %v6005_v44  ;;  %v2873_v23 = vsel %vm2849_vm2, %v6806_v10, %v2840_v17  ;;  %v2839_v31 = vsel %vm2816_vm1, %v6807_v32, 1.0737418e+09  ;;  %v2842_v29 = vsel %vm2816_vm1, %v6808_v54, 1.0737418e+09  ;;  %v2567_v48 = vpop.xlane.xlu0 %2566  ;;  %v2668_v20 = vmin.f32 %v5998_v19, %v6001_v46 }
 0x52b   : > { %v2872_v44 = vsel %vm2849_vm2, %v6809_v36, %v2839_v31  ;;  %vm2606_vm9 = vcmp.eq.f32.partialorder %v6023_v2, %v2567_v48  ;;  %vm2607_vm10 = vcmp.eq.f32.partialorder %v4923_v59, %v2567_v48  ;;  %v6029_v17 = vsel %vm2882_vm3, %v2567_v48, %v2873_v23  ;;  %v2564_v32 = vpop.xlane.xlu1 %2563  ;;  %2672 = vmin.xlane.f32.xlu0 %v2671_v24  ;;  %v6812_v24 = vld [vmem:[#allocation54_spill] sm:$0xff]  ;;  %v6813_v36 = vld [vmem:[#allocation29_spill] sm:$0xff] }
 0x52c   : > { %6810 = vst [vmem:[#allocation17_spill] sm:$0xff] %v6029_v17  ;;  %v6032_v10 = vsel %vm2606_vm9, inf, %v5530_v49  ;;  %v6035_v54 = vsel %vm2607_vm10, inf, %v5533_v60  ;;  %vm2604_vm11 = vcmp.eq.f32.partialorder %v6037_v14, %v2564_v32  ;;  %vm2605_vm12 = vcmp.eq.f32.partialorder %v4923_v59, %v2564_v32  ;;  %2669 = vmin.xlane.f32.xlu1 %v2668_v20 }
 0x52d   : > { %v6042_v31 = vsel %vm2604_vm11, inf, %v5544_v5  ;;  %v6045_v48 = vsel %vm2605_vm12, inf, %v5547_v27  ;;  %v6049_v49 = vsel %vm2882_vm3, %v2564_v32, %v2872_v44  ;;  %v2677_v60 = vmin.f32 %v6032_v10, %v6035_v54  ;;  %v6814_v5 = vld [vmem:[#allocation8_spill] sm:$0xff]  ;;  %v6815_v32 = vld [vmem:[#allocation55_spill] sm:$0xff] }
 0x52e   : > { %6811 = vst [vmem:[#allocation16_spill] sm:$0xff] %v6049_v49  ;;  %v2875_v23 = vsel %vm2849_vm2, %v6812_v24, %v2842_v29  ;;  %v2841_v20 = vsel %vm2816_vm1, %v6813_v36, 1.0737418e+09  ;;  %v2844_v27 = vsel %vm2816_vm1, %v6814_v5, 1.0737418e+09  ;;  %v2573_v17 = vpop.xlane.xlu0 %2572  ;;  %v2674_v44 = vmin.f32 %v6042_v31, %v6045_v48 }
 0x52f   : > { %v2874_v49 = vsel %vm2849_vm2, %v6815_v32, %v2841_v20  ;;  %vm2610_vm13 = vcmp.eq.f32.partialorder %v6067_v30, %v2573_v17  ;;  %vm2611_vm14 = vcmp.eq.f32.partialorder %v4923_v59, %v2573_v17  ;;  %v6073_v29 = vsel %vm2882_vm3, %v2573_v17, %v2875_v23  ;;  %v2570_v24 = vpop.xlane.xlu1 %2569  ;;  %2678 = vmin.xlane.f32.xlu0 %v2677_v60  ;;  %v6818_v60 = vld [vmem:[#allocation56_spill] sm:$0xff]  ;;  %v6819_v32 = vld [vmem:[#allocation10_spill] sm:$0xff] }
 0x530   : > { %6816 = vst [vmem:[#allocation41_spill] sm:$0xff] %v6073_v29  ;;  %v6076_v36 = vsel %vm2610_vm13, inf, %v5558_v57  ;;  %v6079_v5 = vsel %vm2611_vm14, inf, %v5561_v38  ;;  %vm2608_vm15 = vcmp.eq.f32.partialorder %v6081_v45, %v2570_v24  ;;  %vm2609_vm0 = vcmp.eq.f32.partialorder %v4923_v59, %v2570_v24  ;;  %2675 = vmin.xlane.f32.xlu1 %v2674_v44 }
 0x531   : > { %v6086_v20 = vsel %vm2608_vm15, inf, %v5572_v6  ;;  %v6089_v17 = vsel %vm2609_vm0, inf, %v5575_v4  ;;  %v6093_v57 = vsel %vm2882_vm3, %v2570_v24, %v2874_v49  ;;  %v2683_v38 = vmin.f32 %v6076_v36, %v6079_v5  ;;  %v6820_v6 = vld [vmem:[#allocation30_spill] sm:$0xff]  ;;  %v6821_v24 = vld [vmem:[#allocation57_spill] sm:$0xff] }
 0x532   : > { %6817 = vst [vmem:[#allocation42_spill] sm:$0xff] %v6093_v57  ;;  %v2877_v23 = vsel %vm2849_vm2, %v6818_v60, %v2844_v27  ;;  %v2843_v44 = vsel %vm2816_vm1, %v6819_v32, 1.0737418e+09  ;;  %v2846_v4 = vsel %vm2816_vm1, %v6820_v6, 1.0737418e+09  ;;  %v2579_v29 = vpop.xlane.xlu0 %2578  ;;  %v2680_v49 = vmin.f32 %v6086_v20, %v6089_v17 }
 0x533   : > { %v2876_v57 = vsel %vm2849_vm2, %v6821_v24, %v2843_v44  ;;  %vm2614_vm4 = vcmp.eq.f32.partialorder %v6111_v47, %v2579_v29  ;;  %vm2615_vm5 = vcmp.eq.f32.partialorder %v4923_v59, %v2579_v29  ;;  %v6117_v27 = vsel %vm2882_vm3, %v2579_v29, %v2877_v23  ;;  %v2576_v60 = vpop.xlane.xlu1 %2575  ;;  %2684 = vmin.xlane.f32.xlu0 %v2683_v38  ;;  %v6825_v38 = vld [vmem:[#allocation58_spill] sm:$0xff]  ;;  %v6826_v24 = vld [vmem:[#allocation31_spill] sm:$0xff] }
 0x534   : > { %6822 = vst [vmem:[#allocation21_spill] sm:$0xff] %v6117_v27  ;;  %v6120_v32 = vsel %vm2614_vm4, inf, %v5586_v62  ;;  %v6123_v6 = vsel %vm2615_vm5, inf, %v5589_v63  ;;  %vm2612_vm6 = vcmp.eq.f32.partialorder %v6125_v26, %v2576_v60  ;;  %vm2613_vm7 = vcmp.eq.f32.partialorder %v4923_v59, %v2576_v60  ;;  %2681 = vmin.xlane.f32.xlu1 %v2680_v49  ;;  %v6827_v27 = vld [vmem:[#allocation59_spill] sm:$0xff]  ;;  %v6166_v26 = vld [vmem:[#allocation3] sm:$0xff] }
 0x535   : > { %v6130_v44 = vsel %vm2612_vm6, inf, %v5600_v43  ;;  %v6133_v29 = vsel %vm2613_vm7, inf, %v5603_v8  ;;  %v6137_v62 = vsel %vm2882_vm3, %v2576_v60, %v2876_v57  ;;  %v2689_v63 = vmin.f32 %v6120_v32, %v6123_v6  ;;  %v6152_v60 = vld [vmem:[#allocation3 + $0x8] sm:$0xff] }
 0x536   : > { %6824 = vst [vmem:[#allocation43_spill] sm:$0xff] %v6137_v62  ;;  %v2879_v23 = vsel %vm2849_vm2, %v6825_v38, %v2846_v4  ;;  %v2845_v49 = vsel %vm2816_vm1, %v6826_v24, 1.0737418e+09  ;;  %v2585_v43 = vpop.xlane.xlu0 %2584  ;;  %v2686_v8 = vmin.f32 %v6130_v44, %v6133_v29  ;;  %vm2915_vm0 = vcmp.eq.s32.totalorder %v4920_v7, 3 }
 0x537   : > { %v2878_v57 = vsel %vm2849_vm2, %v6827_v27, %v2845_v49  ;;  %vm2618_vm8 = vcmp.eq.f32.partialorder %v6152_v60, %v2585_v43  ;;  %vm2619_vm9 = vcmp.eq.f32.partialorder %v4923_v59, %v2585_v43  ;;  %v6158_v4 = vsel %vm2882_vm3, %v2585_v43, %v2879_v23  ;;  %v2582_v38 = vpop.xlane.xlu1 %2581  ;;  %2690 = vmin.xlane.f32.xlu0 %v2689_v63  ;;  %v6186_v43 = vld [vmem:[#allocation3 + $0x50] sm:$0xff] }
 0x538   : > { %6828 = vst [vmem:[#allocation44_spill] sm:$0xff] %v6158_v4  ;;  %v6161_v24 = vsel %vm2618_vm8, inf, %v5614_v12  ;;  %v6164_v62 = vsel %vm2619_vm9, inf, %v5617_v15  ;;  %vm2616_vm10 = vcmp.eq.f32.partialorder %v6166_v26, %v2582_v38  ;;  %vm2617_vm11 = vcmp.eq.f32.partialorder %v4923_v59, %v2582_v38  ;;  %2687 = vmin.xlane.f32.xlu1 %v2686_v8 }
 0x539   : > { %v6171_v27 = vsel %vm2616_vm10, inf, %v5628_v16  ;;  %v6174_v23 = vsel %vm2617_vm11, inf, %v5631_v18  ;;  %v6178_v12 = vsel %vm2882_vm3, %v2582_v38, %v2878_v57  ;;  %v2695_v15 = vmin.f32 %v6161_v24, %v6164_v62  ;;  %v6200_v57 = vld [vmem:[#allocation3 + $0x60] sm:$0xff] }
 0x53a   : > { %6829 = vst [vmem:[#allocation27_spill] sm:$0xff] %v6178_v12  ;;  %v6182_v63 = vpop.xlane.xlu0 %2590  ;;  %v2692_v49 = vmin.f32 %v6171_v27, %v6174_v23 }
 0x53b   : > { %6830 = vst [vmem:[#allocation18_spill] sm:$0xff] %v6182_v63  ;;  %vm2622_vm12 = vcmp.eq.f32.partialorder %v6186_v43, %v6182_v63  ;;  %vm2623_vm13 = vcmp.eq.f32.partialorder %v4923_v59, %v6182_v63  ;;  %v6192_v16 = vpop.xlane.xlu1 %2587  ;;  %2696 = vmin.xlane.f32.xlu0 %v2695_v15 }
 0x53c   : > { %6831 = vst [vmem:[#allocation22_spill] sm:$0xff] %v6192_v16  ;;  %v6195_v18 = vsel %vm2622_vm12, inf, %v5642_v61  ;;  %v6198_v8 = vsel %vm2623_vm13, inf, %v5645_v35  ;;  %vm2620_vm14 = vcmp.eq.f32.partialorder %v6200_v57, %v6192_v16  ;;  %vm2621_vm15 = vcmp.eq.f32.partialorder %v4923_v59, %v6192_v16  ;;  %2693 = vmin.xlane.f32.xlu1 %v2692_v49 }
 0x53d   : > { %v6207_v38 = vsel %vm2620_vm14, inf, %v5654_v13  ;;  %v6210_v15 = vsel %vm2621_vm15, inf, %v5657_v58  ;;  %v2701_v61 = vmin.f32 %v6195_v18, %v6198_v8  ;;  %v6832_v13 = vld [vmem:[#allocation62_spill] sm:$0xff] }
 0x53e   : > { %v2698_v35 = vmin.f32 %v6207_v38, %v6210_v15 }
 0x53f   : > { %2702 = vmin.xlane.f32.xlu0 %v2701_v61  ;;  %v6833_v61 = vld [vmem:[#allocation63_spill] sm:$0xff] }
 0x540   : > { %2699 = vmin.xlane.f32.xlu1 %v2698_v35 }
 0x5a6   : > { %v2661_v63 = vpop.xlane.xlu0 %2660 }
 0x5a7   : > { %vm2706_vm4 = vcmp.eq.f32.partialorder %v5897_v51, %v2661_v63  ;;  %vm2707_vm5 = vcmp.eq.f32.partialorder %v5900_v3, %v2661_v63  ;;  %v2917_v58 = vsel %vm2915_vm0, %v2661_v63, %v6832_v13 }
 0x5a8   : > { %v2738_v49 = vsel %vm2706_vm4, %v5885_v28, 1.0737418e+09  ;;  %v2739_v16 = vsel %vm2707_vm5, %v4923_v59, 1.0737418e+09  ;;  %2949 = vst [vmem:[#allocation2] sm:$0xff] %v2917_v58  ;;  %v2658_v12 = vpop.xlane.xlu1 %2657 }
 0x5a9   : > { %vm2704_vm6 = vcmp.eq.f32.partialorder %v5913_v22, %v2658_v12  ;;  %vm2705_vm7 = vcmp.eq.f32.partialorder %v5916_v40, %v2658_v12  ;;  %v2916_v51 = vsel %vm2915_vm0, %v2658_v12, %v6833_v61  ;;  %v2771_v35 = vmin.f32 %v2738_v49, %v2739_v16  ;;  %v6834_v22 = vld [vmem:[#allocation12_spill] sm:$0xff] }
 0x5aa   : > { %v2736_v3 = vsel %vm2704_vm6, %v5902_v39, 1.0737418e+09  ;;  %v2737_v4 = vsel %vm2705_vm7, %v4923_v59, 1.0737418e+09  ;;  %2948 = vst [vmem:[#allocation2 + $0x30] sm:$0xff] %v2916_v51 }
 0x5ab   : > { %2772 = vmin.xlane.f32.xlu0 %v2771_v35  ;;  %v2768_v28 = vmin.f32 %v2736_v3, %v2737_v4  ;;  %v6835_v4 = vld [vmem:[#allocation34_spill] sm:$0xff] }
 0x5ac   : > { %v2667_v63 = vpop.xlane.xlu0 %2666 }
 0x5ad   : > { %vm2710_vm8 = vcmp.eq.f32.partialorder %v5935_v55, %v2667_v63  ;;  %vm2711_vm9 = vcmp.eq.f32.partialorder %v5938_v42, %v2667_v63  ;;  %v2919_v40 = vsel %vm2915_vm0, %v2667_v63, %v6834_v22  ;;  %2769 = vmin.xlane.f32.xlu1 %v2768_v28 }
 0x5ae   : > { %v2742_v12 = vsel %vm2710_vm8, %v5926_v0, 1.0737418e+09  ;;  %v2743_v16 = vsel %vm2711_vm9, %v4923_v59, 1.0737418e+09  ;;  %2951 = vst [vmem:[#allocation2 + $0x18] sm:$0xff] %v2919_v40 }
 0x5af   : > { %v2777_v39 = vmin.f32 %v2742_v12, %v2743_v16 }
 0x5b0   : > { %v2664_v13 = vpop.xlane.xlu1 %2663 }
 0x5b1   : > { %vm2708_vm10 = vcmp.eq.f32.partialorder %v5957_v33, %v2664_v13  ;;  %vm2709_vm11 = vcmp.eq.f32.partialorder %v5960_v11, %v2664_v13  ;;  %v2918_v55 = vsel %vm2915_vm0, %v2664_v13, %v6835_v4  ;;  %2778 = vmin.xlane.f32.xlu0 %v2777_v39  ;;  %v6836_v33 = vld [vmem:[#allocation11_spill] sm:$0xff]  ;;  %v6839_v4 = vld [vmem:[#allocation4_spill] sm:$0xff] }
 0x5b2   : > { %v2740_v42 = vsel %vm2708_vm10, %v5948_v53, 1.0737418e+09  ;;  %v2741_v58 = vsel %vm2709_vm11, %v4923_v59, 1.0737418e+09  ;;  %2950 = vst [vmem:[#allocation2 + $0x58] sm:$0xff] %v2918_v55  ;;  %v6838_v39 = vld [vmem:[#allocation35_spill] sm:$0xff]  ;;  %v6840_v55 = vld [vmem:[#allocation24_spill] sm:$0xff] }
 0x5b3   : > { %v2774_v0 = vmin.f32 %v2740_v42, %v2741_v58  ;;  %v6841_v58 = vld [vmem:[#allocation45_spill] sm:$0xff] }
 0x5b4   : > { %v2673_v49 = vpop.xlane.xlu0 %2672 }
 0x5b5   : > { %2775 = vmin.xlane.f32.xlu1 %v2774_v0  ;;  %vm2714_vm12 = vcmp.eq.f32.partialorder %v5988_v21, %v2673_v49  ;;  %vm2715_vm13 = vcmp.eq.f32.partialorder %v5991_v52, %v2673_v49  ;;  %v2921_v11 = vsel %vm2915_vm0, %v2673_v49, %v6836_v33  ;;  %v2670_v61 = vpop.xlane.xlu1 %2669  ;;  %v6842_v49 = vld [vmem:[#allocation15_spill] sm:$0xff] }
 0x5b6   : > { %v2746_v51 = vsel %vm2714_vm12, %v5979_v34, 1.0737418e+09  ;;  %v2747_v35 = vsel %vm2715_vm13, %v4923_v59, 1.0737418e+09  ;;  %2953 = vst [vmem:[#allocation2 + $0x68] sm:$0xff] %v2921_v11  ;;  %vm2712_vm14 = vcmp.eq.f32.partialorder %v5998_v19, %v2670_v61  ;;  %vm2713_vm15 = vcmp.eq.f32.partialorder %v6001_v46, %v2670_v61 }
 0x5b7   : > { %v2744_v53 = vsel %vm2712_vm14, %v5993_v25, 1.0737418e+09  ;;  %v2745_v21 = vsel %vm2713_vm15, %v4923_v59, 1.0737418e+09  ;;  %v2920_v52 = vsel %vm2915_vm0, %v2670_v61, %v5749_v37  ;;  %v2783_v3 = vmin.f32 %v2746_v51, %v2747_v35  ;;  %v6843_v35 = vld [vmem:[#allocation13_spill] sm:$0xff] }
 0x5b8   : > { %2952 = vst [vmem:[#allocation2 + $0x50] sm:$0xff] %v2920_v52  ;;  %v2679_v28 = vpop.xlane.xlu0 %2678  ;;  %v2780_v63 = vmin.f32 %v2744_v53, %v2745_v21  ;;  %v6844_v52 = vld [vmem:[#allocation46_spill] sm:$0xff] }
 0x5b9   : > { %vm2718_vm4 = vcmp.eq.f32.partialorder %v6032_v10, %v2679_v28  ;;  %vm2719_vm5 = vcmp.eq.f32.partialorder %v6035_v54, %v2679_v28  ;;  %v2923_v34 = vsel %vm2915_vm0, %v2679_v28, %v5767_v56  ;;  %v2676_v19 = vpop.xlane.xlu1 %2675  ;;  %2784 = vmin.xlane.f32.xlu0 %v2783_v3  ;;  %v6845_v3 = vld [vmem:[#allocation36_spill] sm:$0xff] }
 0x5ba   : > { %v2750_v25 = vsel %vm2718_vm4, %v6023_v2, 1.0737418e+09  ;;  %v2751_v46 = vsel %vm2719_vm5, %v4923_v59, 1.0737418e+09  ;;  %2955 = vst [vmem:[#allocation2 + $0x48] sm:$0xff] %v2923_v34  ;;  %vm2716_vm6 = vcmp.eq.f32.partialorder %v6042_v31, %v2676_v19  ;;  %vm2717_vm7 = vcmp.eq.f32.partialorder %v6045_v48, %v2676_v19  ;;  %2781 = vmin.xlane.f32.xlu1 %v2780_v63  ;;  %v6846_v63 = vld [vmem:[#allocation37_spill] sm:$0xff] }
 0x5bb   : > { %v2748_v37 = vsel %vm2716_vm6, %v6037_v14, 1.0737418e+09  ;;  %v2749_v10 = vsel %vm2717_vm7, %v4923_v59, 1.0737418e+09  ;;  %v2922_v56 = vsel %vm2915_vm0, %v2676_v19, %v5777_v50  ;;  %v2789_v54 = vmin.f32 %v2750_v25, %v2751_v46 }
 0x5bc   : > { %2954 = vst [vmem:[#allocation2 + $0x8] sm:$0xff] %v2922_v56  ;;  %v2685_v22 = vpop.xlane.xlu0 %2684  ;;  %v2786_v2 = vmin.f32 %v2748_v37, %v2749_v10 }
 0x5bd   : > { %vm2722_vm8 = vcmp.eq.f32.partialorder %v6076_v36, %v2685_v22  ;;  %vm2723_vm9 = vcmp.eq.f32.partialorder %v6079_v5, %v2685_v22  ;;  %v2925_v31 = vsel %vm2915_vm0, %v2685_v22, %v5795_v1  ;;  %v2682_v48 = vpop.xlane.xlu1 %2681  ;;  %2790 = vmin.xlane.f32.xlu0 %v2789_v54  ;;  %v6847_v54 = vld [vmem:[#allocation19_spill] sm:$0xff] }
 0x5be   : > { %v2754_v14 = vsel %vm2722_vm8, %v6067_v30, 1.0737418e+09  ;;  %v2755_v40 = vsel %vm2723_vm9, %v4923_v59, 1.0737418e+09  ;;  %2957 = vst [vmem:[#allocation2 + $0x20] sm:$0xff] %v2925_v31  ;;  %vm2720_vm10 = vcmp.eq.f32.partialorder %v6086_v20, %v2682_v48  ;;  %vm2721_vm11 = vcmp.eq.f32.partialorder %v6089_v17, %v2682_v48  ;;  %2787 = vmin.xlane.f32.xlu1 %v2786_v2  ;;  %v6849_v2 = vld [vmem:[#allocation14_spill] sm:$0xff] }
 0x5bf   : > { %v2752_v50 = vsel %vm2720_vm10, %v6081_v45, 1.0737418e+09  ;;  %v2753_v36 = vsel %vm2721_vm11, %v4923_v59, 1.0737418e+09  ;;  %v2924_v1 = vsel %vm2915_vm0, %v2682_v48, %v5805_v41  ;;  %v2795_v5 = vmin.f32 %v2754_v14, %v2755_v40  ;;  %v6837_v41 = vld [vmem:[#allocation9_spill] sm:$0xff]  ;;  %v6850_v14 = vld [vmem:[#allocation23_spill] sm:$0xff] }
 0x5c0   : > { %2956 = vst [vmem:[#allocation2 + $0x40] sm:$0xff] %v2924_v1  ;;  %v2691_v12 = vpop.xlane.xlu0 %2690  ;;  %v2792_v30 = vmin.f32 %v2752_v50, %v2753_v36  ;;  %v6851_v36 = vld [vmem:[#allocation39_spill] sm:$0xff] }
 0x5c1   : > { %vm2726_vm12 = vcmp.eq.f32.partialorder %v6120_v32, %v2691_v12  ;;  %vm2727_vm13 = vcmp.eq.f32.partialorder %v6123_v6, %v2691_v12  ;;  %v2927_v20 = vsel %vm2915_vm0, %v2691_v12, %v5823_v9  ;;  %v2688_v17 = vpop.xlane.xlu1 %2687  ;;  %2796 = vmin.xlane.f32.xlu0 %v2795_v5  ;;  %v6852_v12 = vld [vmem:[#allocation40_spill] sm:$0xff] }
 0x5c2   : > { %v2758_v45 = vsel %vm2726_vm12, %v6111_v47, 1.0737418e+09  ;;  %v2759_v16 = vsel %vm2727_vm13, %v4923_v59, 1.0737418e+09  ;;  %2959 = vst [vmem:[#allocation2 + $0x38] sm:$0xff] %v2927_v20  ;;  %vm2724_vm14 = vcmp.eq.f32.partialorder %v6130_v44, %v2688_v17  ;;  %vm2725_vm15 = vcmp.eq.f32.partialorder %v6133_v29, %v2688_v17  ;;  %2793 = vmin.xlane.f32.xlu1 %v2792_v30 }
 0x5c3   : > { %v2756_v32 = vsel %vm2724_vm14, %v6837_v41, 1.0737418e+09  ;;  %v2757_v6 = vsel %vm2725_vm15, %v4923_v59, 1.0737418e+09  ;;  %v2926_v9 = vsel %vm2915_vm0, %v2688_v17, %v6838_v39  ;;  %v2801_v13 = vmin.f32 %v2758_v45, %v2759_v16  ;;  %v6853_v17 = vld [vmem:[#allocation17_spill] sm:$0xff]  ;;  %v6854_v41 = vld [vmem:[#allocation16_spill] sm:$0xff] }
 0x5c4   : > { %v2832_v47 = vsel %vm2816_vm1, %v6839_v4, inf  ;;  %v2831_v44 = vsel %vm2816_vm1, %v6840_v55, inf  ;;  %2958 = vst [vmem:[#allocation2 + $0x10] sm:$0xff] %v2926_v9  ;;  %v2697_v29 = vpop.xlane.xlu0 %2696  ;;  %v2798_v42 = vmin.f32 %v2756_v32, %v2757_v6  ;;  %v6855_v39 = vld [vmem:[#allocation41_spill] sm:$0xff]  ;;  %v6856_v4 = vld [vmem:[#allocation42_spill] sm:$0xff] }
 0x5c5   : > { %v2865_v0 = vsel %vm2849_vm2, %v6841_v58, %v2832_v47  ;;  %vm2730_vm4 = vcmp.eq.f32.partialorder %v6161_v24, %v2697_v29  ;;  %vm2731_vm5 = vcmp.eq.f32.partialorder %v6164_v62, %v2697_v29  ;;  %v2929_v33 = vsel %vm2915_vm0, %v2697_v29, %v6842_v49  ;;  %v2694_v11 = vpop.xlane.xlu1 %2693  ;;  %2802 = vmin.xlane.f32.xlu0 %v2801_v13  ;;  %v6858_v58 = vld [vmem:[#allocation43_spill] sm:$0xff] }
 0x5c6   : > { %v2762_v61 = vsel %vm2730_vm4, %v6152_v60, 1.0737418e+09  ;;  %v2763_v51 = vsel %vm2731_vm5, %v4923_v59, 1.0737418e+09  ;;  %2961 = vst [vmem:[#allocation2 + $0x70] sm:$0xff] %v2929_v33  ;;  %vm2728_vm6 = vcmp.eq.f32.partialorder %v6171_v27, %v2694_v11  ;;  %vm2729_vm7 = vcmp.eq.f32.partialorder %v6174_v23, %v2694_v11  ;;  %2799 = vmin.xlane.f32.xlu1 %v2798_v42  ;;  %v6859_v33 = vld [vmem:[#allocation44_spill] sm:$0xff] }
 0x5c7   : > { %v2760_v24 = vsel %vm2728_vm6, %v6166_v26, 1.0737418e+09  ;;  %v2761_v62 = vsel %vm2729_vm7, %v4923_v59, 1.0737418e+09  ;;  %v2928_v53 = vsel %vm2915_vm0, %v2694_v11, %v6843_v35  ;;  %v2807_v21 = vmin.f32 %v2762_v61, %v2763_v51  ;;  %v6860_v51 = vld [vmem:[#allocation32_spill] sm:$0xff] }
 0x5c8   : > { %v2864_v60 = vsel %vm2849_vm2, %v6844_v52, %v2831_v44  ;;  %v2898_v27 = vsel %vm2882_vm3, %v6845_v3, %v2865_v0  ;;  %2960 = vst [vmem:[#allocation2 + $0x60] sm:$0xff] %v2928_v53  ;;  %v2703_v23 = vpop.xlane.xlu0 %2702  ;;  %v2804_v28 = vmin.f32 %v2760_v24, %v2761_v62  ;;  %v6857_v44 = vld [vmem:[#allocation21_spill] sm:$0xff]  ;;  %v2848_v24 = vsel %vm2816_vm1, %v6860_v51, 1.0737418e+09  ;;  %v6861_v62 = vld [vmem:[#allocation27_spill] sm:$0xff]  ;;  %v6863_v52 = vld [vmem:[#allocation60_spill] sm:$0xff] }
 0x5c9   : > { %v2897_v26 = vsel %vm2882_vm3, %v6846_v63, %v2864_v60  ;;  %vm2734_vm8 = vcmp.eq.f32.partialorder %v6195_v18, %v2703_v23  ;;  %vm2735_vm9 = vcmp.eq.f32.partialorder %v6198_v8, %v2703_v23  ;;  %v2931_v34 = vsel %vm2915_vm0, %v2703_v23, %v2898_v27  ;;  %v2700_v19 = vpop.xlane.xlu1 %2699  ;;  %2808 = vmin.xlane.f32.xlu0 %v2807_v21  ;;  %v6862_v53 = vld [vmem:[#allocation33_spill] sm:$0xff]  ;;  %v6865_v23 = vld [vmem:[#allocation18_spill] sm:$0xff] }
 0x5ca   : > { %v2766_v25 = vsel %vm2734_vm8, %v6186_v43, 1.0737418e+09  ;;  %v2767_v46 = vsel %vm2735_vm9, %v4923_v59, 1.0737418e+09  ;;  %2963 = vst [vmem:[#allocation2 + $0x28] sm:$0xff] %v2931_v34  ;;  %vm2732_vm10 = vcmp.eq.f32.partialorder %v6207_v38, %v2700_v19  ;;  %vm2733_vm11 = vcmp.eq.f32.partialorder %v6210_v15, %v2700_v19  ;;  %2805 = vmin.xlane.f32.xlu1 %v2804_v28  ;;  %v6864_v3 = vld [vmem:[#allocation61_spill] sm:$0xff] }
 0x5cb   : > { %v2764_v37 = vsel %vm2732_vm10, %v6200_v57, 1.0737418e+09  ;;  %v2765_v18 = vsel %vm2733_vm11, %v4923_v59, 1.0737418e+09  ;;  %v2930_v8 = vsel %vm2915_vm0, %v2700_v19, %v2897_v26  ;;  %v2813_v10 = vmin.f32 %v2766_v25, %v2767_v46  ;;  %v6848_v57 = vld [vmem:[#allocation38_spill] sm:$0xff] }
 0x5cc   : > { %2962 = vst [vmem:[#allocation2 + $0x78] sm:$0xff] %v2930_v8  ;;  %v2810_v56 = vmin.f32 %v2764_v37, %v2765_v18  ;;  %v2847_v21 = vsel %vm2816_vm1, %v6862_v53, 1.0737418e+09  ;;  %v2881_v60 = vsel %vm2849_vm2, %v6863_v52, %v2848_v24  ;;  %v6866_v26 = vld [vmem:[#allocation22_spill] sm:$0xff] }
 0x5cd   : > { %2814 = vmin.xlane.f32.xlu0 %v2813_v10  ;;  %v2880_v27 = vsel %vm2849_vm2, %v6864_v3, %v2847_v21  ;;  %v2914_v28 = vsel %vm2882_vm3, %v6865_v23, %v2881_v60 }
 0x5ce   : > { %2811 = vmin.xlane.f32.xlu1 %v2810_v56  ;;  %v2913_v34 = vsel %vm2882_vm3, %v6866_v26, %v2880_v27 }
 0x634   : > { %v2773_v43 = vpop.xlane.xlu0 %2772 }
 0x635   : > { %v6348_v38 = vsel %vm2915_vm0, %v2773_v43, %v6847_v54 }
 0x636   : > { %2965 = vst [vmem:[#allocation3 + $0x68] sm:$0xff] %v6348_v38  ;;  %v2770_v15 = vpop.xlane.xlu1 %2769 }
 0x637   : > { %v2932_v59 = vsel %vm2915_vm0, %v2770_v15, %v6848_v57 }
 0x638   : > { %2964 = vst [vmem:[#allocation3 + $0x28] sm:$0xff] %v2932_v59 }
 0x63a   : > { %v2779_v22 = vpop.xlane.xlu0 %2778 }
 0x63b   : > { %v2935_v31 = vsel %vm2915_vm0, %v2779_v22, %v6849_v2 }
 0x63c   : > { %2967 = vst [vmem:[#allocation3 + $0x40] sm:$0xff] %v2935_v31 }
 0x63e   : > { %v2776_v48 = vpop.xlane.xlu1 %2775 }
 0x63f   : > { %v2934_v40 = vsel %vm2915_vm0, %v2776_v48, %v6850_v14 }
 0x640   : > { %2966 = vst [vmem:[#allocation3 + $0x10] sm:$0xff] %v2934_v40 }
 0x642   : > { %v2785_v50 = vpop.xlane.xlu0 %2784 }
 0x643   : > { %v2937_v1 = vsel %vm2915_vm0, %v2785_v50, %v6851_v36  ;;  %v2782_v5 = vpop.xlane.xlu1 %2781 }
 0x644   : > { %2969 = vst [vmem:[#allocation3 + $0x30] sm:$0xff] %v2937_v1  ;;  %v2936_v30 = vsel %vm2915_vm0, %v2782_v5, %v6852_v12 }
 0x645   : > { %2968 = vst [vmem:[#allocation3 + $0x48] sm:$0xff] %v2936_v30 }
 0x646   : > { %v2791_v20 = vpop.xlane.xlu0 %2790 }
 0x647   : > { %v2939_v45 = vsel %vm2915_vm0, %v2791_v20, %v6853_v17  ;;  %v2788_v16 = vpop.xlane.xlu1 %2787 }
 0x648   : > { %2971 = vst [vmem:[#allocation3 + $0x38] sm:$0xff] %v2939_v45  ;;  %v2938_v32 = vsel %vm2915_vm0, %v2788_v16, %v6854_v41 }
 0x649   : > { %2970 = vst [vmem:[#allocation3 + $0x70] sm:$0xff] %v2938_v32 }
 0x64a   : > { %v2797_v6 = vpop.xlane.xlu0 %2796 }
 0x64b   : > { %v6375_v9 = vsel %vm2915_vm0, %v2797_v6, %v6855_v39  ;;  %v2794_v13 = vpop.xlane.xlu1 %2793 }
 0x64c   : > { %2973 = vst [vmem:[#allocation3 + $0x78] sm:$0xff] %v6375_v9  ;;  %v2940_v47 = vsel %vm2915_vm0, %v2794_v13, %v6856_v4 }
 0x64d   : > { %2972 = vst [vmem:[#allocation3 + $0x20] sm:$0xff] %v2940_v47 }
 0x64e   : > { %v2803_v55 = vpop.xlane.xlu0 %2802 }
 0x64f   : > { %v2943_v29 = vsel %vm2915_vm0, %v2803_v55, %v6857_v44  ;;  %v2800_v42 = vpop.xlane.xlu1 %2799 }
 0x650   : > { %2975 = vst [vmem:[#allocation3 + $0x58] sm:$0xff] %v2943_v29  ;;  %v2942_v0 = vsel %vm2915_vm0, %v2800_v42, %v6858_v58 }
 0x651   : > { %2974 = vst [vmem:[#allocation3 + $0x18] sm:$0xff] %v2942_v0 }
 0x652   : > { %v2809_v49 = vpop.xlane.xlu0 %2808 }
 0x653   : > { %v2945_v11 = vsel %vm2915_vm0, %v2809_v49, %v6859_v33  ;;  %v2806_v61 = vpop.xlane.xlu1 %2805 }
 0x654   : > { %2977 = vst [vmem:[#allocation3 + $0x8] sm:$0xff] %v2945_v11  ;;  %v2944_v35 = vsel %vm2915_vm0, %v2806_v61, %v6861_v62 }
 0x655   : > { %2976 = vst [vmem:[#allocation3] sm:$0xff] %v2944_v35  ;;  %2983 = sbr.rel (%p3185_p11) target bundleno = 1638 (0x666), region = 44 }
 0x656   : > { %v2815_v63 = vpop.xlane.xlu0 %2814 }
 0x657   : > { %v2947_v19 = vsel %vm2915_vm0, %v2815_v63, %v2914_v28  ;;  %v2812_v25 = vpop.xlane.xlu1 %2811 }
 0x658   : > { %2979 = vst [vmem:[#allocation3 + $0x50] sm:$0xff] %v2947_v19  ;;  %v2946_v46 = vsel %vm2915_vm0, %v2812_v25, %v2913_v34 }
 0x659   : > { %2978 = vst [vmem:[#allocation3 + $0x60] sm:$0xff] %v2946_v46 }
 0x65a   : > { %v3716_v37 = vtrunc.f32 %v2932_v59  ;;  %vm3000_vm1 = vcmask 31744   ;;  %v3718_v18 = vtrunc.f32 %v6348_v38  ;;  %v3720_v8 = vtrunc.f32 %v2934_v40 }
 0x65b   : > { %v3722_v10 = vtrunc.f32 %v2935_v31  ;;  %v3724_v56 = vtrunc.f32 %v2936_v30  ;;  %v3726_v43 = vtrunc.f32 %v2937_v1  ;;  %v3728_v54 = vtrunc.f32 %v2938_v32 }
 0x65c   : > { %v3717_v15 = vcvt.f32.s32 %v3716_v37  ;;  %v3719_v7 = vcvt.f32.s32 %v3718_v18  ;;  %v3721_v57 = vcvt.f32.s32 %v3720_v8  ;;  %v3730_v22 = vtrunc.f32 %v2939_v45 }
 0x65d   : > { %v3723_v59 = vcvt.f32.s32 %v3722_v10  ;;  %v3725_v2 = vcvt.f32.s32 %v3724_v56  ;;  %v3727_v48 = vcvt.f32.s32 %v3726_v43  ;;  %v3729_v14 = vcvt.f32.s32 %v3728_v54 }
 0x65e   : > { %3001 = vst.msk [vmem:[%s3969_s16] sm:$0xff] %vm3000_vm1, %v3717_v15  ;;  %3002 = vst.msk [vmem:[%s3969_s16 + $0x8] sm:$0xff] %vm3000_vm1, %v3719_v7  ;;  %v3731_v38 = vcvt.f32.s32 %v3730_v22  ;;  %v3732_v31 = vtrunc.f32 %v2940_v47  ;;  %v3734_v40 = vtrunc.f32 %v6375_v9  ;;  %v3736_v50 = vtrunc.f32 %v2942_v0 }
 0x65f   : > { %3003 = vst.msk [vmem:[%s3969_s16 + $0x10] sm:$0xff] %vm3000_vm1, %v3721_v57  ;;  %3004 = vst.msk [vmem:[%s3969_s16 + $0x18] sm:$0xff] %vm3000_vm1, %v3723_v59  ;;  %v3738_v36 = vtrunc.f32 %v2943_v29  ;;  %v3740_v1 = vtrunc.f32 %v2944_v35  ;;  %v3742_v5 = vtrunc.f32 %v2945_v11  ;;  %v3744_v12 = vtrunc.f32 %v2946_v46 }
 0x660   : > { %3005 = vst.msk [vmem:[%s3969_s16 + $0x20] sm:$0xff] %vm3000_vm1, %v3725_v2  ;;  %3006 = vst.msk [vmem:[%s3969_s16 + $0x28] sm:$0xff] %vm3000_vm1, %v3727_v48  ;;  %v3733_v30 = vcvt.f32.s32 %v3732_v31  ;;  %v3735_v20 = vcvt.f32.s32 %v3734_v40  ;;  %v3737_v17 = vcvt.f32.s32 %v3736_v50  ;;  %v3746_v45 = vtrunc.f32 %v2947_v19 }
 0x661   : > { %3007 = vst.msk [vmem:[%s3969_s16 + $0x30] sm:$0xff] %vm3000_vm1, %v3729_v14  ;;  %3008 = vst.msk [vmem:[%s3969_s16 + $0x38] sm:$0xff] %vm3000_vm1, %v3731_v38  ;;  %v3739_v16 = vcvt.f32.s32 %v3738_v36  ;;  %v3741_v41 = vcvt.f32.s32 %v3740_v1  ;;  %v3743_v32 = vcvt.f32.s32 %v3742_v5  ;;  %v3745_v6 = vcvt.f32.s32 %v3744_v12 }
 0x662   : > { %3009 = vst.msk [vmem:[%s3969_s16 + $0x40] sm:$0xff] %vm3000_vm1, %v3733_v30  ;;  %3010 = vst.msk [vmem:[%s3969_s16 + $0x48] sm:$0xff] %vm3000_vm1, %v3735_v20  ;;  %v3747_v39 = vcvt.f32.s32 %v3746_v45 }
 0x663   : > { %3011 = vst.msk [vmem:[%s3969_s16 + $0x50] sm:$0xff] %vm3000_vm1, %v3737_v17  ;;  %3012 = vst.msk [vmem:[%s3969_s16 + $0x58] sm:$0xff] %vm3000_vm1, %v3739_v16 }
 0x664   : > { %3013 = vst.msk [vmem:[%s3969_s16 + $0x60] sm:$0xff] %vm3000_vm1, %v3741_v41  ;;  %3014 = vst.msk [vmem:[%s3969_s16 + $0x68] sm:$0xff] %vm3000_vm1, %v3743_v32 }
 0x665   : > { %3015 = vst.msk [vmem:[%s3969_s16 + $0x70] sm:$0xff] %vm3000_vm1, %v3745_v6  ;;  %3016 = vst.msk [vmem:[%s3969_s16 + $0x78] sm:$0xff] %vm3000_vm1, %v3747_v39 }
 0x666 PF: > { %s14_s21 = sadd.s32 1, %s3879_s21   ;;  %s6867_s15 = smov %s3867_s18 }
 0x667   : > { %p11_p12 = scmp.ge.s32.totalorder %s14_s21, 10   ;;  %s6868_s16 = smov %s3871_s19 }
 0x668   : > { %s6869_s17 = smov %s3875_s20  ;;  %s6870_s18 = smov %s6874_s22 }
 0x669   : > { %s6871_s19 = smov %s6878_s23  ;;  %s6872_s20 = smov %s6882_s24 }
 0x66a   :  { %13 = sbr.rel (!%p11_p12) target bundleno = 4 (0x4), region = 83 }

// kernel: knn_dist_forward.3
= control target key start
LH: loop header
LB: loop body
LE: loop exit
PB: predicated region body
PF: predicated region fallthrough
CT: control target
= control target key end

     0   :  { %s4520_s12 = smov 0   ;;  %s4522_s13 = smov 0   ;;  %s5745_s0 = inlined_call_operand.vmem [shape: f32[12,512], index: 0, kind: input, shape index: {}]   ;;  %s5746_s1 = inlined_call_operand.vmem [shape: f32[64,512], index: 1, kind: input, shape index: {}]   ;;  %s5747_s2 = inlined_call_operand.vmem [shape: f32[240,128], index: 2, kind: input, shape index: {}]   ;;  %s5748_s3 = inlined_call_operand.vmem [shape: f32[16,512], index: 3, kind: output, shape index: {}]  }
   0x1   :  { %s4524_s14 = smov 0  }
   0x2 LB: > { %s4420_s15 = sadd.s32 4294967295, %s4496_s14   ;;  %s4537_s16 = sadd.s32 1, %s4496_s14   ;;  %s4496_s14 = sphi %s4524_s14, %s5799_s14   ;;  %s4492_s13 = sphi %s4522_s13, %s5798_s13   ;;  %s4488_s12 = sphi %s4520_s12, %s5797_s12  }
   0x3   : > { %s17_s17 = ssub.s32 %s4496_s14, %s4537_s16  ;;  %s20_s18 = sadd.s32 1, %s4492_s13 }
   0x4   : > { %p18_p0 = scmp.eq.s32.totalorder %s17_s17, 0  ;;  %p27_p1 = scmp.ne.s32.totalorder %s4492_s13, %s4488_s12 }
   0x5   : > { %p28_p2 = scmp.eq.s32.totalorder %s4496_s14, 0  ;;  %p104_p3 = scmp.eq.s32.totalorder %s4420_s15, 1 }
   0x6   : > { %s4548_s19 = scalar_select %p18_p0, %s4492_s13, %s20_s18  }
   0x7   : > { %p4550_p4 = por %p28_p2, %p27_p1  ;;  %p4554_p5 = por %p104_p3, %p27_p1 }
   0x8   : > { %p4423_p6 = scmp.ge.s32.totalorder %s4496_s14, 2 }
   0xa   : > { %129 = sbr.rel (%p4423_p6) target bundleno = 33 (0x21), region = 20 }
   0xf   : > { %132 = sbr.rel (!%p4550_p4) target bundleno = 21 (0x15), region = 24  ;;  %s134_s22 = sand.u32 (%p4550_p4), 1, %s4492_s13  }
  0x10   : > { %s4439_s23 = sshll.u32 (%p4550_p4), %s4496_s14, 4  ;;  %s4424_s24 = sshll.u32 (%p4550_p4), %s134_s22, 5 }
  0x11   : > { %s139_s27 = scalar_lea.vmem (%p4550_p4), %s5745_s0, %s4439_s23  ;;  %s136_s28 = scalar_lea.vmem (%p4550_p4), [#allocation2], %s4424_s24 }
  0x12   : > { %v152_v0 = vld [vmem:[%s139_s27] sm:$0xff] (%p4550_p4)  ;;  %v154_v1 = vld [vmem:[%s139_s27 + $0x8] sm:$0xff] (%p4550_p4) }
  0x13   : > { %v156_v2 = vld [vmem:[%s139_s27 + $0x20] sm:$0xff] (%p4550_p4)  ;;  %153 = vst [vmem:[%s136_s28] sm:$0xff] (%p4550_p4), %v152_v0  ;;  %155 = vst [vmem:[%s136_s28 + $0x8] sm:$0xff] (%p4550_p4), %v154_v1  ;;  %v158_v3 = vld [vmem:[%s139_s27 + $0x28] sm:$0xff] (%p4550_p4) }
  0x14   : > { %157 = vst [vmem:[%s136_s28 + $0x10] sm:$0xff] %v156_v2  ;;  %159 = vst [vmem:[%s136_s28 + $0x18] sm:$0xff] %v158_v3 }
  0x15 PF: > { %165 = sbr.rel (!%p4550_p4) target bundleno = 33 (0x21), region = 47  ;;  %s167_s29 = sand.u32 (%p4550_p4), 1, %s4492_s13  }
  0x16   : > { %s4440_s30 = sshll.u32 (%p4550_p4), %s4496_s14, 4  ;;  %s4427_s4 = sshll.u32 (%p4550_p4), %s167_s29, 7 }
  0x17   : > { %s4573_s7 = scalar_lea.vmem (%p4550_p4), %s5746_s1, %s4440_s30  ;;  %s169_s8 = scalar_lea.vmem (%p4550_p4), [#allocation3], %s4427_s4 }
  0x18   : > { %v185_v4 = vld [vmem:[%s4573_s7] sm:$0xff] (%p4550_p4)  ;;  %v187_v5 = vld [vmem:[%s4573_s7 + $0x8] sm:$0xff] (%p4550_p4) }
  0x19   : > { %v189_v6 = vld [vmem:[%s4573_s7 + $0x20] sm:$0xff] (%p4550_p4)  ;;  %186 = vst [vmem:[%s169_s8] sm:$0xff] (%p4550_p4), %v185_v4  ;;  %188 = vst [vmem:[%s169_s8 + $0x8] sm:$0xff] (%p4550_p4), %v187_v5  ;;  %v191_v7 = vld [vmem:[%s4573_s7 + $0x28] sm:$0xff] (%p4550_p4) }
  0x1a   : > { %190 = vst [vmem:[%s169_s8 + $0x10] sm:$0xff] %v189_v6  ;;  %v193_v8 = vld [vmem:[%s4573_s7 + $0x40] sm:$0xff]  ;;  %v195_v9 = vld [vmem:[%s4573_s7 + $0x48] sm:$0xff]  ;;  %192 = vst [vmem:[%s169_s8 + $0x18] sm:$0xff] %v191_v7 }
  0x1b   : > { %194 = vst [vmem:[%s169_s8 + $0x20] sm:$0xff] %v193_v8  ;;  %196 = vst [vmem:[%s169_s8 + $0x28] sm:$0xff] %v195_v9  ;;  %v197_v10 = vld [vmem:[%s4573_s7 + $0x60] sm:$0xff]  ;;  %v199_v11 = vld [vmem:[%s4573_s7 + $0x68] sm:$0xff] }
  0x1c   : > { %v201_v12 = vld [vmem:[%s4573_s7 + $0x80] sm:$0xff]  ;;  %198 = vst [vmem:[%s169_s8 + $0x30] sm:$0xff] %v197_v10  ;;  %200 = vst [vmem:[%s169_s8 + $0x38] sm:$0xff] %v199_v11  ;;  %v203_v13 = vld [vmem:[%s4573_s7 + $0x88] sm:$0xff] }
  0x1d   : > { %202 = vst [vmem:[%s169_s8 + $0x40] sm:$0xff] %v201_v12  ;;  %v205_v14 = vld [vmem:[%s4573_s7 + $0xa0] sm:$0xff]  ;;  %v207_v15 = vld [vmem:[%s4573_s7 + $0xa8] sm:$0xff]  ;;  %204 = vst [vmem:[%s169_s8 + $0x48] sm:$0xff] %v203_v13 }
  0x1e   : > { %206 = vst [vmem:[%s169_s8 + $0x50] sm:$0xff] %v205_v14  ;;  %208 = vst [vmem:[%s169_s8 + $0x58] sm:$0xff] %v207_v15  ;;  %v209_v16 = vld [vmem:[%s4573_s7 + $0xc0] sm:$0xff]  ;;  %v211_v17 = vld [vmem:[%s4573_s7 + $0xc8] sm:$0xff] }
  0x1f   : > { %v213_v18 = vld [vmem:[%s4573_s7 + $0xe0] sm:$0xff]  ;;  %210 = vst [vmem:[%s169_s8 + $0x60] sm:$0xff] %v209_v16  ;;  %212 = vst [vmem:[%s169_s8 + $0x68] sm:$0xff] %v211_v17  ;;  %v215_v19 = vld [vmem:[%s4573_s7 + $0xe8] sm:$0xff] }
  0x20   : > { %214 = vst [vmem:[%s169_s8 + $0x70] sm:$0xff] %v213_v18  ;;  %216 = vst [vmem:[%s169_s8 + $0x78] sm:$0xff] %v215_v19 }
  0x21 PF: > { %p4430_p7 = scmp.ge.s32.totalorder %s4496_s14, 1  ;;  %p221_p8 = scmp.lt.s32.totalorder %s4496_s14, 3 }
  0x23   : > { %p222_p9 = pnand %p4430_p7, %p221_p8 }
  0x25   : > { %225 = sbr.rel (%p222_p9) target bundleno = 1392 (0x570), region = 70 }
  0x2a   : > { %s228_s9 = sand.u32 1, %s4488_s12   ;;  %v268_v20 = vld [vmem:[%s5747_s2] sm:$0xff]  ;;  %vm270_vm0 = vcmask 97280   ;;  %vm277_vm1 = vcmask 1043456   ;;  %v5749_v21 = vmov 0.0   ;;  %vm1353_vm2 = vcmask 31744  }
  0x2b   : > { %s4599_s17 = sshll.u32 %s228_s9, 5  ;;  %352 = vmatprep.mubr.f32.mxu0 %v5749_v21  ;;  %v272_v22 = vsel %vm270_vm0, %v268_v20, 0  ;;  %v269_v23 = vld [vmem:[%s5747_s2 + $0x8] sm:$0xf]  ;;  %459 = vmatprep.mubr.f32.mxu1 %v5749_v21  ;;  %v824_v12 = vld [vmem:[%s5747_s2 + $0x10] sm:$0xf] }
  0x2c   : > { %v4607_v24 = vand.u32 4294901760, %v272_v22  ;;  %v275_v25 = vsel %vm270_vm0, %v269_v23, 0  ;;  %s230_s22 = scalar_lea.vmem [#allocation2], %s4599_s17  ;;  %vm2843_vm7 = vcmask 326656   ;;  %s4432_s25 = sshll.u32 %s228_s9, 7 }
  0x2d   : > { %v267_v26 = vld [vmem:[%s230_s22 + $0x18] sm:$0xf]  ;;  %v266_v27 = vld [vmem:[%s230_s22 + $0x10] sm:$0xf]  ;;  %v265_v28 = vld [vmem:[%s230_s22 + $0x8] sm:$0xff]  ;;  %v4611_v29 = vand.u32 4294901760, %v275_v25 }
  0x2e   : > { %v282_v30 = vsel %vm277_vm1, %v267_v26, 0  ;;  %v279_v31 = vsel %vm277_vm1, %v266_v27, 0  ;;  %v4615_v32 = vand.u32 4294901760, %v265_v28  ;;  %v264_v33 = vld [vmem:[%s230_s22] sm:$0xff]  ;;  %v354_v34 = vsub.f32 %v272_v22, %v4607_v24  ;;  %s5709_s26 = scalar_lea.vmem [#allocation3], %s4432_s25  ;;  %s260_s12 = scalar_lea.vmem [#allocation4], %s4599_s17 }
  0x2f   : > { %v4618_v35 = vand.u32 4294901760, %v282_v30  ;;  %v4620_v36 = vand.u32 4294901760, %v279_v31  ;;  %v4622_v37 = vand.u32 4294901760, %v264_v33  ;;  %v365_v38 = vsub.f32 %v275_v25, %v4611_v29  ;;  %s4441_s9 = sshll.u32 (%p4554_p5), %s4420_s15, 4 }
  0x30   : > { %v355_v39 = vand.u32 4294901760, %v354_v34  ;;  %v4626_v40 = vsub.f32 %v265_v28, %v4615_v32  ;;  %v830_v22 = vsel %vm270_vm0, %v824_v12, 0  ;;  %s4322_s28 = scalar_lea.vmem (%p4554_p5), %s5748_s3, %s4441_s9 }
  0x31   : > { %313 = vmatprep.subr.mxu0 %v4618_v35  ;;  %v4630_v41 = vsub.f32 %v282_v30, %v4618_v35  ;;  %v4633_v42 = vsub.f32 %v279_v31, %v4620_v36  ;;  %v366_v43 = vand.u32 4294901760, %v365_v38  ;;  %v4636_v44 = vsub.f32 %v264_v33, %v4622_v37 }
  0x32   : > { %315 = vmatpush1.msra.mxu0 %v4620_v36  ;;  %v356_v45 = vsub.f32 %v354_v34, %v355_v39  ;;  %v4640_v46 = vand.u32 4294901760, %v4626_v40  ;;  %v4711_v28 = vand.u32 4294901760, %v830_v22 }
  0x33   : > { %317 = vmatprep.subr.mxu0 %v4615_v32  ;;  %v4644_v47 = vand.u32 4294901760, %v4630_v41  ;;  %v4647_v48 = vand.u32 4294901760, %v4633_v42  ;;  %v367_v49 = vsub.f32 %v365_v38, %v366_v43  ;;  %v4650_v50 = vand.u32 4294901760, %v4636_v44 }
  0x34   : > { %319 = vmatpush1.msra.mxu0 %v4622_v37  ;;  %v357_v51 = vand.u32 4294901760, %v356_v45  ;;  %v418_v52 = vsub.f32 %v4626_v40, %v4640_v46 }
  0x35   : > { %v406_v53 = vsub.f32 %v4630_v41, %v4644_v47  ;;  %v412_v54 = vsub.f32 %v4633_v42, %v4647_v48  ;;  %504 = vmatprep.subr.mxu0 %v4630_v41  ;;  %v424_v55 = vsub.f32 %v4636_v44, %v4650_v50  ;;  %v368_v56 = vand.u32 4294901760, %v367_v49 }
  0x36   : > { %358 = vmatmul.mubr.f32.vlgmr.msra.gmra.mxu0 %v357_v51  ;;  %v4667_v59 = vand.u32 4294901760, %v418_v52  ;;  %v4714_v49 = vsub.f32 %v830_v22, %v4711_v28 }
  0x37   : > { %v4662_v57 = vand.u32 4294901760, %v406_v53  ;;  %363 = vmatprep.mubr.f32.mxu0 %v5749_v21  ;;  %v4665_v58 = vand.u32 4294901760, %v412_v54  ;;  %507 = vmatpush1.msra.mxu0 %v4633_v42  ;;  %v4670_v60 = vand.u32 4294901760, %v424_v55 }
  0x38   : > { %510 = vmatprep.subr.mxu0 %v4626_v40 }
  0x39   : > { %408 = vmatprep.subr.mxu1 %v4662_v57  ;;  %513 = vmatpush1.msra.mxu0 %v4636_v44 }
  0x3a   : > { %414 = vmatpush1.msra.mxu1 %v4665_v58  ;;  %369 = vmatmul.mubr.f32.gmra.mxu0 %v368_v56 }
  0x3b   : > { %420 = vmatprep.subr.mxu1 %v4667_v59  ;;  %546 = vmatprep.mubr.f32.mxu0 %v5749_v21 }
  0x3c   : > { %426 = vmatpush1.msra.mxu1 %v4670_v60  ;;  %681 = vmatprep.subr.mxu0 %v4644_v47 }
  0x3d   : > { %461 = vmatmul.mubr.f32.vlgmr.msra.gmra.mxu1 %v4607_v24  ;;  %592 = vmatprep.subr.mxu1 %v4618_v35 }
  0x3e   : > { %549 = vmatmul.mubr.f32.vlgmr.msra.gmra.mxu0 %v354_v34  ;;  %466 = vmatprep.mubr.f32.mxu1 %v5749_v21 }
  0x3f   : > { %554 = vmatprep.mubr.f32.mxu0 %v5749_v21  ;;  %594 = vmatpush1.msra.mxu1 %v4620_v36 }
  0x40   : > { %596 = vmatprep.subr.mxu1 %v4615_v32  ;;  %685 = vmatpush1.msra.mxu0 %v4647_v48 }
  0x41   : > { %468 = vmatmul.mubr.f32.gmra.mxu1 %v4611_v29  ;;  %689 = vmatprep.subr.mxu0 %v4640_v46 }
  0x42   : > { %557 = vmatmul.mubr.f32.gmra.mxu0 %v365_v38  ;;  %598 = vmatpush1.msra.mxu1 %v4622_v37 }
  0x43   : > { %631 = vmatprep.mubr.f32.mxu1 %v5749_v21  ;;  %693 = vmatpush1.msra.mxu0 %v4650_v50 }
  0x44   : > { %726 = vmatprep.mubr.f32.mxu0 %v5749_v21  ;;  %770 = vmatprep.subr.mxu1 %v4618_v35 }
  0x45   : > { %635 = vmatmul.mubr.f32.vlgmr.msra.gmra.mxu1 %v355_v39 }
  0x46   : > { %728 = vmatmul.mubr.f32.vlgmr.msra.gmra.mxu0 %v4607_v24  ;;  %640 = vmatprep.mubr.f32.mxu1 %v5749_v21 }
  0x47   : > { %733 = vmatprep.mubr.f32.mxu0 %v5749_v21  ;;  %772 = vmatpush1.msra.mxu1 %v4620_v36 }
  0x48   : > { %774 = vmatprep.subr.mxu1 %v4615_v32 }
  0x49   : > { %644 = vmatmul.mubr.f32.gmra.mxu1 %v366_v43 }
  0x4a   : > { %735 = vmatmul.mubr.f32.gmra.mxu0 %v4611_v29  ;;  %776 = vmatpush1.msra.mxu1 %v4622_v37 }
  0x4b   : > { %809 = vmatprep.mubr.f32.mxu1 %v5749_v21  ;;  %906 = vmatprep.mubr.f32.mxu0 %v5749_v21 }
  0x4d   : > { %811 = vmatmul.mubr.f32.vlgmr.msra.gmra.mxu1 %v4607_v24 }
  0x4e   : > { %816 = vmatprep.mubr.f32.mxu1 %v5749_v21 }
  0x51   : > { %818 = vmatmul.mubr.f32.gmra.mxu1 %v4611_v29 }
  0x52   : > { %1002 = vmatprep.mubr.f32.mxu1 %v5749_v21 }
  0xf6   : > { %v359_v61 = vpop.f32.mrf.mxu0 }
  0xf8   : > { %v361_v62 = vpop.f32.mrf.mxu0 }
  0xfa   : > { %v370_v63 = vpop.f32.mrf.mxu0 }
  0xfc   : > { %v372_v0 = vpop.f32.mrf.mxu0 }
  0xfd   : > { %v462_v1 = vpop.f32.mrf.mxu1 }
  0xfe   : > { %v550_v2 = vpop.f32.mrf.mxu0  ;;  %v463_v6 = vadd.f32 %v462_v1, %v359_v61 }
  0xff   : > { %v464_v3 = vpop.f32.mrf.mxu1 }
 0x100   : > { %v552_v4 = vpop.f32.mrf.mxu0  ;;  %v465_v9 = vadd.f32 %v464_v3, %v361_v62  ;;  %v551_v13 = vadd.f32 %v550_v2, %v463_v6 }
 0x101   : > { %v469_v5 = vpop.f32.mrf.mxu1 }
 0x102   : > { %v558_v7 = vpop.f32.mrf.mxu0  ;;  %v470_v14 = vadd.f32 %v469_v5, %v370_v63  ;;  %v553_v17 = vadd.f32 %v552_v4, %v465_v9  ;;  %v909_v63 = vand.u32 4294901760, %v4714_v49 }
 0x103   : > { %v471_v8 = vpop.f32.mrf.mxu1 }
 0x104   : > { %v560_v10 = vpop.f32.mrf.mxu0  ;;  %v472_v18 = vadd.f32 %v471_v8, %v372_v0  ;;  %v559_v24 = vadd.f32 %v558_v7, %v470_v14  ;;  %v910_v8 = vsub.f32 %v4714_v49, %v909_v63 }
 0x105   : > { %v636_v11 = vpop.f32.mrf.mxu1 }
 0x106   : > { %v729_v15 = vpop.f32.mrf.mxu0  ;;  %v637_v19 = vadd.f32 %v636_v11, %v551_v13  ;;  %v561_v29 = vadd.f32 %v560_v10, %v472_v18 }
 0x107   : > { %v638_v16 = vpop.f32.mrf.mxu1 }
 0x108   : > { %v731_v20 = vpop.f32.mrf.mxu0  ;;  %v639_v25 = vadd.f32 %v638_v16, %v553_v17  ;;  %v730_v30 = vadd.f32 %v729_v15, %v637_v19  ;;  %v911_v15 = vand.u32 4294901760, %v910_v8 }
 0x109   : > { %v645_v23 = vpop.f32.mrf.mxu1 }
 0x10a   : > { %v736_v27 = vpop.f32.mrf.mxu0  ;;  %v646_v31 = vadd.f32 %v645_v23, %v559_v24  ;;  %v732_v34 = vadd.f32 %v731_v20, %v639_v25 }
 0x10b   : > { %v647_v26 = vpop.f32.mrf.mxu1 }
 0x10c   : > { %v648_v38 = vadd.f32 %v647_v26, %v561_v29  ;;  %v738_v43 = vpop.f32.mrf.mxu0  ;;  %v737_v51 = vadd.f32 %v736_v27, %v646_v31 }
 0x10d   : > { %v812_v33 = vpop.f32.mrf.mxu1 }
 0x10e   : > { %v813_v39 = vadd.f32 %v812_v33, %v730_v30  ;;  %v739_v55 = vadd.f32 %v738_v43, %v648_v38 }
 0x10f   : > { %v814_v45 = vpop.f32.mrf.mxu1 }
 0x110   : > { %v825_v52 = vmul.f32 %v813_v39, %v813_v39  ;;  %v815_v53 = vadd.f32 %v814_v45, %v732_v34 }
 0x111   : > { %v819_v54 = vpop.f32.mrf.mxu1 }
 0x112   : > { %v826_v56 = vmul.f32 %v815_v53, %v815_v53  ;;  %v820_v61 = vadd.f32 %v819_v54, %v737_v51  ;;  %v872_v0 = vand.u32 4294901760, %v825_v52 }
 0x113   : > { %v821_v62 = vpop.f32.mrf.mxu1 }
 0x114   : > { %v870_v1 = vand.u32 4294901760, %v826_v56  ;;  %v827_v2 = vmul.f32 %v820_v61, %v820_v61  ;;  %v822_v3 = vadd.f32 %v821_v62, %v739_v55  ;;  %v965_v9 = vsub.f32 %v825_v52, %v872_v0 }
 0x116   : > { %v833_v4 = vsel %vm277_vm1, %v827_v2, 0  ;;  %v828_v5 = vmul.f32 %v822_v3, %v822_v3  ;;  %v959_v6 = vsub.f32 %v826_v56, %v870_v1  ;;  %v966_v17 = vand.u32 4294901760, %v965_v9 }
 0x117   : > { %v868_v7 = vand.u32 4294901760, %v833_v4 }
 0x118   : > { %v836_v10 = vsel %vm277_vm1, %v828_v5, 0  ;;  %v960_v16 = vand.u32 4294901760, %v959_v6  ;;  %v967_v23 = vsub.f32 %v965_v9, %v966_v17 }
 0x119   : > { %v953_v11 = vsub.f32 %v833_v4, %v868_v7  ;;  %v866_v12 = vand.u32 4294901760, %v836_v10  ;;  %v1349_v4 = vld [vmem:[%s5747_s2 + $0x48] sm:$0xff] }
 0x11a   : > { %v961_v22 = vsub.f32 %v959_v6, %v960_v16  ;;  %v968_v27 = vand.u32 4294901760, %v967_v23 }
 0x11b   : > { %v954_v13 = vand.u32 4294901760, %v953_v11  ;;  %867 = vmatprep.subr.mxu0 %v866_v12  ;;  %v947_v14 = vsub.f32 %v836_v10, %v866_v12 }
 0x11c   : > { %869 = vmatpush1.msra.mxu0 %v868_v7  ;;  %v962_v26 = vand.u32 4294901760, %v961_v22 }
 0x11d   : > { %871 = vmatprep.subr.mxu0 %v870_v1  ;;  %v948_v18 = vand.u32 4294901760, %v947_v14  ;;  %v955_v19 = vsub.f32 %v953_v11, %v954_v13 }
 0x11e   : > { %873 = vmatpush1.msra.mxu0 %v872_v0 }
 0x11f   : > { %1040 = vmatprep.subr.mxu0 %v947_v14  ;;  %912 = vmatmul.mubr.f32.vlgmr.msra.gmra.mxu0 %v911_v15  ;;  %v949_v20 = vsub.f32 %v947_v14, %v948_v18  ;;  %v956_v25 = vand.u32 4294901760, %v955_v19 }
 0x120   : > { %1043 = vmatpush1.msra.mxu0 %v953_v11  ;;  %1082 = vmatprep.mubr.f32.mxu0 %v5749_v21 }
 0x121   : > { %1046 = vmatprep.subr.mxu0 %v959_v6  ;;  %v950_v24 = vand.u32 4294901760, %v949_v20  ;;  %v1358_v6 = vsel %vm1353_vm2, %v1349_v4, 0 }
 0x122   : > { %1049 = vmatpush1.msra.mxu0 %v965_v9  ;;  %v4746_v9 = vand.u32 4294901760, %v1358_v6 }
 0x123   : > { %951 = vmatprep.subr.mxu1 %v950_v24  ;;  %1200 = vmatprep.subr.mxu0 %v948_v18  ;;  %v1352_v24 = vld [vmem:[%s5747_s2 + $0x60] sm:$0xff] }
 0x124   : > { %957 = vmatpush1.msra.mxu1 %v956_v25  ;;  %1085 = vmatmul.mubr.f32.vlgmr.msra.gmra.mxu0 %v4714_v49 }
 0x125   : > { %1204 = vmatpush1.msra.mxu0 %v954_v13  ;;  %963 = vmatprep.subr.mxu1 %v962_v26  ;;  %v4754_v13 = vsub.f32 %v1358_v6, %v4746_v9 }
 0x126   : > { %1208 = vmatprep.subr.mxu0 %v960_v16  ;;  %969 = vmatpush1.msra.mxu1 %v968_v27 }
 0x127   : > { %1212 = vmatpush1.msra.mxu0 %v966_v17  ;;  %1004 = vmatmul.mubr.f32.vlgmr.msra.gmra.mxu1 %v4711_v28  ;;  %v1455_v22 = vand.u32 4294901760, %v4754_v13 }
 0x128   : > { %1120 = vmatprep.subr.mxu1 %v866_v12  ;;  %1159 = vmatprep.mubr.f32.mxu1 %v5749_v21 }
 0x129   : > { %1122 = vmatpush1.msra.mxu1 %v868_v7  ;;  %1245 = vmatprep.mubr.f32.mxu0 %v5749_v21 }
 0x12a   : > { %1124 = vmatprep.subr.mxu1 %v870_v1  ;;  %1247 = vmatmul.mubr.f32.vlgmr.msra.gmra.mxu0 %v4711_v28 }
 0x12b   : > { %1126 = vmatpush1.msra.mxu1 %v872_v0  ;;  %1441 = vmatprep.mubr.f32.mxu0 %v5749_v21 }
 0x12c   : > { %1163 = vmatmul.mubr.f32.vlgmr.msra.gmra.mxu1 %v909_v63  ;;  %1282 = vmatprep.subr.mxu1 %v866_v12  ;;  %v1351_v12 = vld [vmem:[%s5747_s2 + $0x58] sm:$0xff] }
 0x12d   : > { %1284 = vmatpush1.msra.mxu1 %v868_v7  ;;  %1321 = vmatprep.mubr.f32.mxu1 %v5749_v21  ;;  %v1350_v7 = vld [vmem:[%s5747_s2 + $0x50] sm:$0xff]  ;;  %v1364_v16 = vsel %vm1353_vm2, %v1351_v12, 0 }
 0x12e   : > { %1286 = vmatprep.subr.mxu1 %v870_v1  ;;  %v1361_v10 = vsel %vm1353_vm2, %v1350_v7, 0  ;;  %v4769_v27 = vand.u32 4294901760, %v1364_v16  ;;  %v2739_v7 = vld [vmem:[%s5747_s2 + $0xa0] sm:$0xff] }
 0x12f   : > { %1288 = vmatpush1.msra.mxu1 %v872_v0  ;;  %v4756_v14 = vand.u32 4294901760, %v1361_v10 }
 0x130   : > { %1323 = vmatmul.mubr.f32.vlgmr.msra.gmra.mxu1 %v4711_v28  ;;  %v1348_v28 = vld [vmem:[%s5747_s2 + $0x40] sm:$0xff] }
 0x131   : > { %1571 = vmatprep.mubr.f32.mxu1 %v5749_v21  ;;  %v1355_v2 = vsel %vm1353_vm2, %v1348_v28, 0  ;;  %v4764_v23 = vsub.f32 %v1361_v10, %v4756_v14  ;;  %v2740_v28 = vld [vmem:[%s5747_s2 + $0xa8] sm:$0xff] }
 0x132   : > { %v4737_v5 = vand.u32 4294901760, %v1355_v2 }
 0x134   : > { %v4744_v8 = vsub.f32 %v1355_v2, %v4737_v5 }
 0x136   : > { %v1444_v11 = vand.u32 4294901760, %v4744_v8 }
 0x138   : > { %v1445_v18 = vsub.f32 %v4744_v8, %v1444_v11 }
 0x1df   : > { %v913_v29 = vpop.f32.mrf.mxu0 }
 0x1e1   : > { %v915_v30 = vpop.f32.mrf.mxu0 }
 0x1e4   : > { %v1086_v31 = vpop.f32.mrf.mxu0 }
 0x1e6   : > { %v1088_v38 = vpop.f32.mrf.mxu0 }
 0x1e7   : > { %v1005_v33 = vpop.f32.mrf.mxu1 }
 0x1e8   : > { %v1006_v34 = vadd.f32 %v1005_v33, %v913_v29 }
 0x1e9   : > { %v1007_v39 = vpop.f32.mrf.mxu1 }
 0x1ea   : > { %v1087_v43 = vadd.f32 %v1086_v31, %v1006_v34  ;;  %v1008_v45 = vadd.f32 %v1007_v39, %v915_v30  ;;  %v1248_v52 = vpop.f32.mrf.mxu0  ;;  %v1367_v34 = vsel %vm1353_vm2, %v1352_v24, 0 }
 0x1ec   : > { %v1089_v49 = vadd.f32 %v1088_v38, %v1008_v45  ;;  %v1164_v51 = vpop.f32.mrf.mxu1  ;;  %v1250_v61 = vpop.f32.mrf.mxu0 }
 0x1ed   : > { %v1165_v53 = vadd.f32 %v1164_v51, %v1087_v43  ;;  %v1446_v43 = vand.u32 4294901760, %v1445_v18  ;;  %v1466_v51 = vand.u32 4294901760, %v4764_v23 }
 0x1ee   : > { %v1166_v54 = vpop.f32.mrf.mxu1 }
 0x1ef   : > { %v1249_v55 = vadd.f32 %v1248_v52, %v1165_v53  ;;  %v1167_v56 = vadd.f32 %v1166_v54, %v1089_v49  ;;  %v1456_v49 = vsub.f32 %v4754_v13, %v1455_v22  ;;  %v4781_v52 = vsub.f32 %v1364_v16, %v4769_v27 }
 0x1f0   : > { %v1324_v62 = vpop.f32.mrf.mxu1 }
 0x1f1   : > { %v1251_v63 = vadd.f32 %v1250_v61, %v1167_v56  ;;  %v1325_v0 = vadd.f32 %v1324_v62, %v1249_v55  ;;  %v4786_v55 = vand.u32 4294901760, %v1367_v34  ;;  %v2742_v56 = vld [vmem:[%s5747_s2 + $0xb8] sm:$0xff]  ;;  %v4499_v61 = vmov 0  }
 0x1f2   : > { %v1326_v1 = vpop.f32.mrf.mxu1  ;;  %4468 = vset.pattern.permute.xlu0 %v4499_v61  ;;  %4469 = vset.pattern.permute.xlu1 %v4499_v61  ;;  %v1477_v4 = vand.u32 4294901760, %v4781_v52 }
 0x1f3   : > { %4470 = vrsqrt.f32 %v1325_v0  ;;  %v1327_v3 = vadd.f32 %v1326_v1, %v1251_v63  ;;  %vm1331_vm3 = vcmp.eq.f32.partialorder %v1325_v0, inf  ;;  %v1334_v20 = vand.u32 2147483648, %v1325_v0  ;;  %2765 = vperm.xlu0 %4468, %v2742_v56   ;;  %v2741_v1 = vld [vmem:[%s5747_s2 + $0xb0] sm:$0xff]  ;;  %2755 = vperm.xlu1 %4469, %v2740_v28  }
 0x1f4   : > { %vm1333_vm4 = vcmp.eq.f32.partialorder %v1325_v0, 0.0  ;;  %v4804_v6 = vsub.f32 %v1367_v34, %v4786_v55  ;;  %v1478_v18 = vsub.f32 %v4781_v52, %v1477_v4 }
 0x1f5   : > { %4472 = vrsqrt.f32 %v1327_v3  ;;  %vm1338_vm5 = vcmp.eq.f32.partialorder %v1327_v3, inf  ;;  %v1341_v29 = vand.u32 2147483648, %v1327_v3  ;;  %vm1340_vm6 = vcmp.eq.f32.partialorder %v1327_v3, 0.0 }
 0x1f7   : > { %2760 = vperm.xlu0 %4468, %v2741_v1   ;;  %2750 = vperm.xlu1 %4469, %v2739_v7  }
 0x200   : > { %v4471_v15 = vpop.eup %4470 }
 0x201   : > { %v1330_v17 = vmul.f32 %v4471_v15, %v1325_v0  ;;  %v2738_v15 = vld [vmem:[%s5747_s2 + $0x98] sm:$0xff] }
 0x202   : > { %v4473_v19 = vpop.eup %4472  ;;  %2745 = vperm.xlu0 %4468, %v2738_v15  }
 0x203   : > { %v1337_v25 = vmul.f32 %v4473_v19, %v1327_v3  ;;  %v1332_v26 = vsel %vm1331_vm3, %v1325_v0, %v1330_v17  ;;  %v1457_v0 = vand.u32 4294901760, %v1456_v49  ;;  %v1488_v19 = vand.u32 4294901760, %v4804_v6 }
 0x204   : > { %v1335_v30 = vsel %vm1333_vm4, %v1334_v20, %v1332_v26  ;;  %v2817_v20 = vld [vmem:[%s5747_s2 + $0xe0] sm:$0xff] }
 0x205   : > { %v1339_v31 = vsel %vm1338_vm5, %v1327_v3, %v1337_v25  ;;  %v1370_v33 = vsel %vm277_vm1, %v1335_v30, 0  ;;  %v1467_v3 = vsub.f32 %v4764_v23, %v1466_v51  ;;  %2840 = vperm.xlu1 %4469, %v2817_v20   ;;  %v1479_v25 = vand.u32 4294901760, %v1478_v18 }
 0x206   : > { %v1342_v38 = vsel %vm1340_vm6, %v1341_v29, %v1339_v31  ;;  %v4773_v39 = vand.u32 4294901760, %v1370_v33  ;;  %v1489_v26 = vsub.f32 %v4804_v6, %v1488_v19  ;;  %v2816_v29 = vld [vmem:[%s5747_s2 + $0xd8] sm:$0xff]  ;;  %v2814_v31 = vld [vmem:[%s5747_s2 + $0xc8] sm:$0xff] }
 0x207   : > { %v1373_v45 = vsel %vm277_vm1, %v1342_v38, 0  ;;  %v1468_v17 = vand.u32 4294901760, %v1467_v3  ;;  %2835 = vperm.xlu0 %4468, %v2816_v29  }
 0x208   : > { %v1405_v53 = vand.u32 4294901760, %v1373_v45  ;;  %v4784_v54 = vsub.f32 %v1370_v33, %v4773_v39  ;;  %v1490_v30 = vand.u32 4294901760, %v1489_v26 }
 0x20a   : > { %1406 = vmatprep.subr.mxu0 %v1405_v53  ;;  %v1528_v62 = vsub.f32 %v1373_v45, %v1405_v53  ;;  %v1535_v63 = vand.u32 4294901760, %v4784_v54 }
 0x20b   : > { %1408 = vmatpush1.msra.mxu0 %v4773_v39  ;;  %2825 = vperm.xlu0 %4468, %v2814_v31  }
 0x20c   : > { %1447 = vmatmul.mubr.f32.vlgmr.msra.gmra.mxu0 %v1446_v43  ;;  %1639 = vmatprep.subr.mxu0 %v1528_v62  ;;  %v1529_v2 = vand.u32 4294901760, %v1528_v62  ;;  %v1536_v10 = vsub.f32 %v4784_v54, %v1535_v63 }
 0x20d   : > { %1642 = vmatpush1.msra.mxu0 %v4784_v54  ;;  %1452 = vmatprep.mubr.f32.mxu0 %v5749_v21 }
 0x20e   : > { %1861 = vmatprep.subr.mxu0 %v1529_v2  ;;  %v1530_v12 = vsub.f32 %v1528_v62, %v1529_v2  ;;  %v1537_v24 = vand.u32 4294901760, %v1536_v10 }
 0x210   : > { %1458 = vmatmul.mubr.f32.gmra.mxu0 %v1457_v0  ;;  %v1531_v16 = vand.u32 4294901760, %v1530_v12 }
 0x211   : > { %1463 = vmatprep.mubr.f32.mxu0 %v5749_v21 }
 0x212   : > { %1532 = vmatprep.subr.mxu1 %v1531_v16 }
 0x213   : > { %1538 = vmatpush1.msra.mxu1 %v1537_v24 }
 0x214   : > { %1469 = vmatmul.mubr.f32.gmra.mxu0 %v1468_v17  ;;  %1573 = vmatmul.mubr.f32.vlgmr.msra.gmra.mxu1 %v4737_v5 }
 0x215   : > { %1747 = vmatprep.subr.mxu1 %v1405_v53  ;;  %1474 = vmatprep.mubr.f32.mxu0 %v5749_v21 }
 0x216   : > { %1749 = vmatpush1.msra.mxu1 %v4773_v39  ;;  %1578 = vmatprep.mubr.f32.mxu1 %v5749_v21 }
 0x217   : > { %1965 = vmatprep.subr.mxu1 %v1405_v53 }
 0x218   : > { %1480 = vmatmul.mubr.f32.gmra.mxu0 %v1479_v25  ;;  %1580 = vmatmul.mubr.f32.gmra.mxu1 %v4746_v9 }
 0x219   : > { %1485 = vmatprep.mubr.f32.mxu0 %v5749_v21  ;;  %1585 = vmatprep.mubr.f32.mxu1 %v5749_v21 }
 0x21c   : > { %1491 = vmatmul.mubr.f32.gmra.mxu0 %v1490_v30  ;;  %1587 = vmatmul.mubr.f32.gmra.mxu1 %v4756_v14 }
 0x21d   : > { %1592 = vmatprep.mubr.f32.mxu1 %v5749_v21  ;;  %1675 = vmatprep.mubr.f32.mxu0 %v5749_v21 }
 0x220   : > { %1594 = vmatmul.mubr.f32.gmra.mxu1 %v4769_v27  ;;  %1678 = vmatmul.mubr.f32.vlgmr.msra.gmra.mxu0 %v4744_v8  ;;  %v1343_v8 = vld [vmem:[%s5747_s2 + $0x18] sm:$0xff] }
 0x221   : > { %1865 = vmatpush1.msra.mxu0 %v1535_v63  ;;  %1599 = vmatprep.mubr.f32.mxu1 %v5749_v21 }
 0x222   : > { %1683 = vmatprep.mubr.f32.mxu0 %v5749_v21  ;;  %2080 = vmatprep.subr.mxu0 %v4618_v35 }
 0x224   : > { %1601 = vmatmul.mubr.f32.gmra.mxu1 %v4786_v55  ;;  %1686 = vmatmul.mubr.f32.gmra.mxu0 %v4754_v13 }
 0x225   : > { %1691 = vmatprep.mubr.f32.mxu0 %v5749_v21  ;;  %1782 = vmatprep.mubr.f32.mxu1 %v5749_v21 }
 0x228   : > { %1694 = vmatmul.mubr.f32.gmra.mxu0 %v4764_v23  ;;  %1786 = vmatmul.mubr.f32.vlgmr.msra.gmra.mxu1 %v1444_v11  ;;  %v1344_v11 = vld [vmem:[%s5747_s2 + $0x20] sm:$0xff]  ;;  %v1345_v23 = vld [vmem:[%s5747_s2 + $0x28] sm:$0xff] }
 0x229   : > { %1967 = vmatpush1.msra.mxu1 %v4773_v39  ;;  %1699 = vmatprep.mubr.f32.mxu0 %v5749_v21  ;;  %v2043_v38 = vsel %vm270_vm0, %v1345_v23, 0  ;;  %v1346_v39 = vld [vmem:[%s5747_s2 + $0x30] sm:$0xff] }
 0x22a   : > { %1791 = vmatprep.mubr.f32.mxu1 %v5749_v21  ;;  %2208 = vmatprep.subr.mxu1 %v4662_v57  ;;  %v2037_v57 = vsel %vm270_vm0, %v1343_v8, 0  ;;  %v4910_v49 = vand.u32 4294901760, %v2043_v38 }
 0x22b   : > { %v4875_v13 = vand.u32 4294901760, %v2037_v57 }
 0x22c   : > { %1702 = vmatmul.mubr.f32.gmra.mxu0 %v4781_v52  ;;  %1795 = vmatmul.mubr.f32.gmra.mxu1 %v1455_v22  ;;  %v2040_v22 = vsel %vm270_vm0, %v1344_v11, 0  ;;  %v4927_v53 = vsub.f32 %v2043_v38, %v4910_v49 }
 0x22d   : > { %1707 = vmatprep.mubr.f32.mxu0 %v5749_v21  ;;  %1800 = vmatprep.mubr.f32.mxu1 %v5749_v21  ;;  %v4889_v33 = vsub.f32 %v2037_v57, %v4875_v13  ;;  %v4894_v34 = vand.u32 4294901760, %v2040_v22 }
 0x22e   : > { %v2144_v56 = vand.u32 4294901760, %v4927_v53 }
 0x22f   : > { %v2122_v43 = vand.u32 4294901760, %v4889_v33  ;;  %v4908_v45 = vsub.f32 %v2040_v22, %v4894_v34 }
 0x230   : > { %1710 = vmatmul.mubr.f32.gmra.mxu0 %v4804_v6  ;;  %1804 = vmatmul.mubr.f32.gmra.mxu1 %v1466_v51  ;;  %v2046_v51 = vsel %vm270_vm0, %v1346_v39, 0 }
 0x231   : > { %1809 = vmatprep.mubr.f32.mxu1 %v5749_v21  ;;  %1898 = vmatprep.mubr.f32.mxu0 %v5749_v21  ;;  %v2133_v52 = vand.u32 4294901760, %v4908_v45 }
 0x234   : > { %1813 = vmatmul.mubr.f32.gmra.mxu1 %v1477_v4  ;;  %1900 = vmatmul.mubr.f32.vlgmr.msra.gmra.mxu0 %v4737_v5 }
 0x235   : > { %1818 = vmatprep.mubr.f32.mxu1 %v5749_v21  ;;  %1905 = vmatprep.mubr.f32.mxu0 %v5749_v21 }
 0x236   : > { %2082 = vmatpush1.msra.mxu0 %v4620_v36 }
 0x237   : > { %2084 = vmatprep.subr.mxu0 %v4615_v32 }
 0x238   : > { %1822 = vmatmul.mubr.f32.gmra.mxu1 %v1488_v19  ;;  %1907 = vmatmul.mubr.f32.gmra.mxu0 %v4746_v9 }
 0x239   : > { %1912 = vmatprep.mubr.f32.mxu0 %v5749_v21  ;;  %2000 = vmatprep.mubr.f32.mxu1 %v5749_v21 }
 0x23a   : > { %2086 = vmatpush1.msra.mxu0 %v4622_v37 }
 0x23b   : > { %2325 = vmatprep.subr.mxu0 %v4630_v41  ;;  %v1347_v41 = vld [vmem:[%s5747_s2 + $0x38] sm:$0xff] }
 0x23c   : > { %1914 = vmatmul.mubr.f32.gmra.mxu0 %v4756_v14  ;;  %2002 = vmatmul.mubr.f32.vlgmr.msra.gmra.mxu1 %v4737_v5  ;;  %v2123_v5 = vsub.f32 %v4889_v33, %v2122_v43  ;;  %v2049_v54 = vsel %vm270_vm0, %v1347_v41, 0 }
 0x23d   : > { %1919 = vmatprep.mubr.f32.mxu0 %v5749_v21  ;;  %2007 = vmatprep.mubr.f32.mxu1 %v5749_v21  ;;  %v4945_v61 = vand.u32 4294901760, %v2049_v54 }
 0x23e   : > { %2214 = vmatpush1.msra.mxu1 %v4665_v58  ;;  %v4929_v58 = vand.u32 4294901760, %v2046_v51 }
 0x23f   : > { %2220 = vmatprep.subr.mxu1 %v4667_v59  ;;  %v2124_v59 = vand.u32 4294901760, %v2123_v5  ;;  %v4955_v63 = vsub.f32 %v2049_v54, %v4945_v61 }
 0x240   : > { %1921 = vmatmul.mubr.f32.gmra.mxu0 %v4769_v27  ;;  %2009 = vmatmul.mubr.f32.gmra.mxu1 %v4746_v9  ;;  %v2134_v9 = vsub.f32 %v4908_v45, %v2133_v52  ;;  %v4943_v28 = vsub.f32 %v2046_v51, %v4929_v58 }
 0x241   : > { %1926 = vmatprep.mubr.f32.mxu0 %v5749_v21  ;;  %2014 = vmatprep.mubr.f32.mxu1 %v5749_v21  ;;  %v2166_v1 = vand.u32 4294901760, %v4955_v63 }
 0x242   : > { %2226 = vmatpush1.msra.mxu1 %v4670_v60  ;;  %v2135_v60 = vand.u32 4294901760, %v2134_v9  ;;  %v2155_v62 = vand.u32 4294901760, %v4943_v28 }
 0x243   : > { %2437 = vmatprep.subr.mxu1 %v4618_v35  ;;  %v2167_v2 = vsub.f32 %v4955_v63, %v2166_v1 }
 0x244   : > { %1928 = vmatmul.mubr.f32.gmra.mxu0 %v4786_v55  ;;  %2016 = vmatmul.mubr.f32.gmra.mxu1 %v4756_v14  ;;  %v2145_v14 = vsub.f32 %v4927_v53, %v2144_v56  ;;  %v2156_v0 = vsub.f32 %v4943_v28, %v2155_v62 }
 0x245   : > { %2021 = vmatprep.mubr.f32.mxu1 %v5749_v21  ;;  %2119 = vmatprep.mubr.f32.mxu0 %v5749_v21 }
 0x248   : > { %2023 = vmatmul.mubr.f32.gmra.mxu1 %v4769_v27  ;;  %2125 = vmatmul.mubr.f32.vlgmr.msra.gmra.mxu0 %v2124_v59  ;;  %v2146_v27 = vand.u32 4294901760, %v2145_v14 }
 0x249   : > { %2028 = vmatprep.mubr.f32.mxu1 %v5749_v21  ;;  %2130 = vmatprep.mubr.f32.mxu0 %v5749_v21 }
 0x24a   : > { %2328 = vmatpush1.msra.mxu0 %v4633_v42  ;;  %v3655_v42 = vld [vmem:[%s5747_s2 + $0xe8] sm:$0xf] }
 0x24b   : > { %2331 = vmatprep.subr.mxu0 %v4626_v40  ;;  %v2815_v40 = vld [vmem:[%s5747_s2 + $0xd0] sm:$0xff]  ;;  %3658 = vperm.xlu0 %4468, %v3655_v42  }
 0x24c   : > { %2030 = vmatmul.mubr.f32.gmra.mxu1 %v4786_v55  ;;  %2136 = vmatmul.mubr.f32.gmra.mxu0 %v2135_v60  ;;  %v2157_v55 = vand.u32 4294901760, %v2156_v0 }
 0x24d   : > { %2141 = vmatprep.mubr.f32.mxu0 %v5749_v21  ;;  %2259 = vmatprep.mubr.f32.mxu1 %v5749_v21 }
 0x24e   : > { %2334 = vmatpush1.msra.mxu0 %v4636_v44  ;;  %2830 = vperm.xlu1 %4469, %v2815_v40   ;;  %v2813_v44 = vld [vmem:[%s5747_s2 + $0xc0] sm:$0xff] }
 0x24f   : > { %2553 = vmatprep.subr.mxu0 %v4644_v47  ;;  %v2168_v47 = vand.u32 4294901760, %v2167_v2 }
 0x250   : > { %2147 = vmatmul.mubr.f32.gmra.mxu0 %v2146_v27  ;;  %2261 = vmatmul.mubr.f32.vlgmr.msra.gmra.mxu1 %v4875_v13 }
 0x251   : > { %2152 = vmatprep.mubr.f32.mxu0 %v5749_v21  ;;  %2266 = vmatprep.mubr.f32.mxu1 %v5749_v21 }
 0x252   : > { %2439 = vmatpush1.msra.mxu1 %v4620_v36  ;;  %2820 = vperm.xlu1 %4469, %v2813_v44  }
 0x253   : > { %2441 = vmatprep.subr.mxu1 %v4615_v32 }
 0x254   : > { %2158 = vmatmul.mubr.f32.gmra.mxu0 %v2157_v55  ;;  %2268 = vmatmul.mubr.f32.gmra.mxu1 %v4894_v34 }
 0x255   : > { %2163 = vmatprep.mubr.f32.mxu0 %v5749_v21  ;;  %2273 = vmatprep.mubr.f32.mxu1 %v5749_v21 }
 0x256   : > { %2443 = vmatpush1.msra.mxu1 %v4622_v37 }
 0x257   : > { %2663 = vmatprep.subr.mxu1 %v4618_v35 }
 0x258   : > { %2169 = vmatmul.mubr.f32.gmra.mxu0 %v2168_v47  ;;  %2275 = vmatmul.mubr.f32.gmra.mxu1 %v4910_v49 }
 0x259   : > { %2280 = vmatprep.mubr.f32.mxu1 %v5749_v21  ;;  %2367 = vmatprep.mubr.f32.mxu0 %v5749_v21 }
 0x25c   : > { %2282 = vmatmul.mubr.f32.gmra.mxu1 %v4929_v58  ;;  %2370 = vmatmul.mubr.f32.vlgmr.msra.gmra.mxu0 %v4889_v33 }
 0x25d   : > { %2287 = vmatprep.mubr.f32.mxu1 %v5749_v21  ;;  %2375 = vmatprep.mubr.f32.mxu0 %v5749_v21 }
 0x25e   : > { %2557 = vmatpush1.msra.mxu0 %v4647_v48 }
 0x25f   : > { %2561 = vmatprep.subr.mxu0 %v4640_v46 }
 0x260   : > { %2289 = vmatmul.mubr.f32.gmra.mxu1 %v4945_v61  ;;  %2378 = vmatmul.mubr.f32.gmra.mxu0 %v4908_v45 }
 0x261   : > { %2383 = vmatprep.mubr.f32.mxu0 %v5749_v21  ;;  %2476 = vmatprep.mubr.f32.mxu1 %v5749_v21 }
 0x262   : > { %2565 = vmatpush1.msra.mxu0 %v4650_v50 }
 0x264   : > { %2386 = vmatmul.mubr.f32.gmra.mxu0 %v4927_v53  ;;  %2480 = vmatmul.mubr.f32.vlgmr.msra.gmra.mxu1 %v2122_v43 }
 0x265   : > { %2391 = vmatprep.mubr.f32.mxu0 %v5749_v21  ;;  %2485 = vmatprep.mubr.f32.mxu1 %v5749_v21 }
 0x266   : > { %2665 = vmatpush1.msra.mxu1 %v4620_v36 }
 0x267   : > { %2667 = vmatprep.subr.mxu1 %v4615_v32 }
 0x268   : > { %2394 = vmatmul.mubr.f32.gmra.mxu0 %v4943_v28  ;;  %2489 = vmatmul.mubr.f32.gmra.mxu1 %v2133_v52 }
 0x269   : > { %2399 = vmatprep.mubr.f32.mxu0 %v5749_v21  ;;  %2494 = vmatprep.mubr.f32.mxu1 %v5749_v21 }
 0x26a   : > { %2669 = vmatpush1.msra.mxu1 %v4622_v37 }
 0x26c   : > { %2402 = vmatmul.mubr.f32.gmra.mxu0 %v4955_v63  ;;  %2498 = vmatmul.mubr.f32.gmra.mxu1 %v2144_v56 }
 0x26d   : > { %2503 = vmatprep.mubr.f32.mxu1 %v5749_v21  ;;  %2598 = vmatprep.mubr.f32.mxu0 %v5749_v21 }
 0x270   : > { %2507 = vmatmul.mubr.f32.gmra.mxu1 %v2155_v62  ;;  %2600 = vmatmul.mubr.f32.vlgmr.msra.gmra.mxu0 %v4875_v13 }
 0x271   : > { %2512 = vmatprep.mubr.f32.mxu1 %v5749_v21  ;;  %2605 = vmatprep.mubr.f32.mxu0 %v5749_v21 }
 0x274   : > { %2516 = vmatmul.mubr.f32.gmra.mxu1 %v2166_v1  ;;  %2607 = vmatmul.mubr.f32.gmra.mxu0 %v4894_v34 }
 0x275   : > { %2612 = vmatprep.mubr.f32.mxu0 %v5749_v21  ;;  %2702 = vmatprep.mubr.f32.mxu1 %v5749_v21 }
 0x278   : > { %2614 = vmatmul.mubr.f32.gmra.mxu0 %v4910_v49  ;;  %2704 = vmatmul.mubr.f32.vlgmr.msra.gmra.mxu1 %v4875_v13 }
 0x279   : > { %2619 = vmatprep.mubr.f32.mxu0 %v5749_v21  ;;  %2709 = vmatprep.mubr.f32.mxu1 %v5749_v21 }
 0x27c   : > { %2621 = vmatmul.mubr.f32.gmra.mxu0 %v4929_v58  ;;  %2711 = vmatmul.mubr.f32.gmra.mxu1 %v4894_v34 }
 0x27d   : > { %2626 = vmatprep.mubr.f32.mxu0 %v5749_v21  ;;  %2716 = vmatprep.mubr.f32.mxu1 %v5749_v21 }
 0x280   : > { %2628 = vmatmul.mubr.f32.gmra.mxu0 %v4945_v61  ;;  %2718 = vmatmul.mubr.f32.gmra.mxu1 %v4910_v49 }
 0x281   : > { %2723 = vmatprep.mubr.f32.mxu1 %v5749_v21  ;;  %2933 = vmatprep.mubr.f32.mxu0 %v5749_v21 }
 0x284   : > { %2725 = vmatmul.mubr.f32.gmra.mxu1 %v4929_v58 }
 0x285   : > { %2730 = vmatprep.mubr.f32.mxu1 %v5749_v21 }
 0x288   : > { %2732 = vmatmul.mubr.f32.gmra.mxu1 %v4945_v61 }
 0x289   : > { %3103 = vmatprep.mubr.f32.mxu1 %v5749_v21 }
 0x2cc   : > { %v1448_v32 = vpop.f32.mrf.mxu0 }
 0x2ce   : > { %v1450_v35 = vpop.f32.mrf.mxu0 }
 0x2d0   : > { %v1459_v36 = vpop.f32.mrf.mxu0 }
 0x2d2   : > { %v1461_v37 = vpop.f32.mrf.mxu0 }
 0x2d4   : > { %v1470_v46 = vpop.f32.mrf.mxu0  ;;  %v1574_v48 = vpop.f32.mrf.mxu1 }
 0x2d5   : > { %v1575_v50 = vadd.f32 %v1574_v48, %v1448_v32 }
 0x2d6   : > { %v1472_v3 = vpop.f32.mrf.mxu0  ;;  %v1576_v4 = vpop.f32.mrf.mxu1 }
 0x2d7   : > { %v1577_v6 = vadd.f32 %v1576_v4, %v1450_v35 }
 0x2d8   : > { %v1481_v7 = vpop.f32.mrf.mxu0  ;;  %v1581_v10 = vpop.f32.mrf.mxu1 }
 0x2d9   : > { %v1582_v12 = vadd.f32 %v1581_v10, %v1459_v36 }
 0x2da   : > { %v1483_v15 = vpop.f32.mrf.mxu0  ;;  %v1583_v16 = vpop.f32.mrf.mxu1 }
 0x2db   : > { %v1584_v17 = vadd.f32 %v1583_v16, %v1461_v37 }
 0x2dc   : > { %v1492_v18 = vpop.f32.mrf.mxu0  ;;  %v1588_v19 = vpop.f32.mrf.mxu1 }
 0x2dd   : > { %v1589_v20 = vadd.f32 %v1588_v19, %v1470_v46 }
 0x2de   : > { %v1494_v24 = vpop.f32.mrf.mxu0  ;;  %v1590_v25 = vpop.f32.mrf.mxu1 }
 0x2df   : > { %v1591_v26 = vadd.f32 %v1590_v25, %v1472_v3 }
 0x2e0   : > { %v1595_v29 = vpop.f32.mrf.mxu1  ;;  %v1679_v30 = vpop.f32.mrf.mxu0 }
 0x2e1   : > { %v1596_v31 = vadd.f32 %v1595_v29, %v1481_v7  ;;  %v1680_v8 = vadd.f32 %v1679_v30, %v1575_v50 }
 0x2e2   : > { %v1597_v57 = vpop.f32.mrf.mxu1  ;;  %v1681_v11 = vpop.f32.mrf.mxu0 }
 0x2e3   : > { %v1598_v13 = vadd.f32 %v1597_v57, %v1483_v15  ;;  %v1682_v22 = vadd.f32 %v1681_v11, %v1577_v6 }
 0x2e4   : > { %v1602_v23 = vpop.f32.mrf.mxu1  ;;  %v1687_v33 = vpop.f32.mrf.mxu0 }
 0x2e5   : > { %v1603_v34 = vadd.f32 %v1602_v23, %v1492_v18  ;;  %v1688_v38 = vadd.f32 %v1687_v33, %v1582_v12 }
 0x2e6   : > { %v1604_v39 = vpop.f32.mrf.mxu1  ;;  %v1689_v43 = vpop.f32.mrf.mxu0 }
 0x2e7   : > { %v1605_v45 = vadd.f32 %v1604_v39, %v1494_v24  ;;  %v1690_v49 = vadd.f32 %v1689_v43, %v1584_v17 }
 0x2e8   : > { %v1695_v51 = vpop.f32.mrf.mxu0  ;;  %v1787_v41 = vpop.f32.mrf.mxu1 }
 0x2e9   : > { %v1696_v5 = vadd.f32 %v1695_v51, %v1589_v20  ;;  %v1788_v52 = vadd.f32 %v1787_v41, %v1680_v8 }
 0x2ea   : > { %v1697_v53 = vpop.f32.mrf.mxu0  ;;  %v1789_v58 = vpop.f32.mrf.mxu1 }
 0x2eb   : > { %v1698_v54 = vadd.f32 %v1697_v53, %v1591_v26  ;;  %v1790_v59 = vadd.f32 %v1789_v58, %v1682_v22 }
 0x2ec   : > { %v1703_v9 = vpop.f32.mrf.mxu0  ;;  %v1796_v56 = vpop.f32.mrf.mxu1 }
 0x2ed   : > { %v1704_v28 = vadd.f32 %v1703_v9, %v1596_v31  ;;  %v1797_v61 = vadd.f32 %v1796_v56, %v1688_v38 }
 0x2ee   : > { %v1705_v60 = vpop.f32.mrf.mxu0  ;;  %v1798_v14 = vpop.f32.mrf.mxu1 }
 0x2ef   : > { %v1706_v62 = vadd.f32 %v1705_v60, %v1598_v13  ;;  %v1799_v63 = vadd.f32 %v1798_v14, %v1690_v49 }
 0x2f0   : > { %v1711_v27 = vpop.f32.mrf.mxu0  ;;  %v1805_v0 = vpop.f32.mrf.mxu1 }
 0x2f1   : > { %v1712_v1 = vadd.f32 %v1711_v27, %v1603_v34  ;;  %v5046_v40 = vadd.f32 %v1805_v0, %v1696_v5 }
 0x2f2   : > { %v1713_v42 = vpop.f32.mrf.mxu0  ;;  %v1807_v55 = vpop.f32.mrf.mxu1 }
 0x2f3   : > { %v1714_v2 = vadd.f32 %v1713_v42, %v1605_v45  ;;  %v5048_v44 = vadd.f32 %v1807_v55, %v1698_v54 }
 0x2f4   : > { %v1814_v47 = vpop.f32.mrf.mxu1  ;;  %v1901_v32 = vpop.f32.mrf.mxu0 }
 0x2f5   : > { %v5050_v35 = vadd.f32 %v1814_v47, %v1704_v28  ;;  %v1902_v36 = vadd.f32 %v1901_v32, %v1788_v52  ;;  %v2808_v32 = vld [vmem:[%s5747_s2 + $0x68] sm:$0xff] }
 0x2f6   : > { %v1816_v37 = vpop.f32.mrf.mxu1  ;;  %v1903_v46 = vpop.f32.mrf.mxu0 }
 0x2f7   : > { %v5052_v48 = vadd.f32 %v1816_v37, %v1706_v62  ;;  %v1904_v50 = vadd.f32 %v1903_v46, %v1790_v59 }
 0x2f8   : > { %v1823_v3 = vpop.f32.mrf.mxu1  ;;  %v1908_v4 = vpop.f32.mrf.mxu0 }
 0x2f9   : > { %v5054_v6 = vadd.f32 %v1823_v3, %v1712_v1  ;;  %v1909_v7 = vadd.f32 %v1908_v4, %v1797_v61  ;;  %v2845_v3 = vsel %vm2843_vm7, %v2808_v32, 0 }
 0x2fa   : > { %v1825_v10 = vpop.f32.mrf.mxu1  ;;  %v1910_v12 = vpop.f32.mrf.mxu0 }
 0x2fb   : > { %v5056_v15 = vadd.f32 %v1825_v10, %v1714_v2  ;;  %v1911_v16 = vadd.f32 %v1910_v12, %v1799_v63  ;;  %v5134_v10 = vand.u32 4294901760, %v2845_v3 }
 0x2fc   : > { %v5058_v17 = vpop.f32.mrf.mxu0  ;;  %v2003_v18 = vpop.f32.mrf.mxu1 }
 0x2fd   : > { %v5060_v19 = vadd.f32 %v2003_v18, %v1902_v36  ;;  %5763 = vst [vmem:[#allocation9_spill] sm:$0xff] %v5134_v10 }
 0x2fe   : > { %v5062_v20 = vpop.f32.mrf.mxu0  ;;  %v2005_v24 = vpop.f32.mrf.mxu1 }
 0x2ff   : > { %v5064_v25 = vadd.f32 %v2005_v24, %v1904_v50 }
 0x300   : > { %v5066_v26 = vpop.f32.mrf.mxu0  ;;  %v2010_v29 = vpop.f32.mrf.mxu1 }
 0x301   : > { %v5068_v30 = vadd.f32 %v2010_v29, %v1909_v7  ;;  %v2809_v29 = vld [vmem:[%s5747_s2 + $0x70] sm:$0xff] }
 0x302   : > { %v5070_v31 = vpop.f32.mrf.mxu0  ;;  %v2012_v8 = vpop.f32.mrf.mxu1 }
 0x303   : > { %v5072_v57 = vadd.f32 %v2012_v8, %v1911_v16  ;;  %v5148_v8 = vsub.f32 %v2845_v3, %v5134_v10  ;;  %v1918_v3 = vadd.f32 %v5062_v20, %v5048_v44  ;;  %v1923_v10 = vadd.f32 %v5066_v26, %v5050_v35 }
 0x304   : > { %v5074_v11 = vpop.f32.mrf.mxu0  ;;  %v5076_v13 = vpop.f32.mrf.mxu1 }
 0x305   : > { %v1930_v44 = vadd.f32 %v5074_v11, %v5054_v6 }
 0x306   : > { %v5078_v22 = vpop.f32.mrf.mxu0  ;;  %v5080_v23 = vpop.f32.mrf.mxu1 }
 0x307   : > { %v1932_v35 = vadd.f32 %v5078_v22, %v5056_v15  ;;  %v2020_v20 = vadd.f32 %v5080_v23, %v1918_v3 }
 0x308   : > { %v5082_v33 = vpop.f32.mrf.mxu1  ;;  %v2126_v34 = vpop.f32.mrf.mxu0 }
 0x30a   : > { %v5084_v38 = vpop.f32.mrf.mxu1  ;;  %v2128_v39 = vpop.f32.mrf.mxu0 }
 0x30c   : > { %v5086_v43 = vpop.f32.mrf.mxu1  ;;  %v2137_v45 = vpop.f32.mrf.mxu0 }
 0x30d   : > { %v2032_v6 = vadd.f32 %v5086_v43, %v1930_v44 }
 0x30e   : > { %v5088_v49 = vpop.f32.mrf.mxu1  ;;  %v5090_v51 = vpop.f32.mrf.mxu0 }
 0x30f   : > { %v2140_v15 = vadd.f32 %v5090_v51, %v5072_v57 }
 0x310   : > { %v5092_v41 = vpop.f32.mrf.mxu0  ;;  %v2262_v5 = vpop.f32.mrf.mxu1 }
 0x312   : > { %v5094_v52 = vpop.f32.mrf.mxu0  ;;  %v2264_v53 = vpop.f32.mrf.mxu1 }
 0x314   : > { %v5096_v58 = vpop.f32.mrf.mxu0  ;;  %v2269_v54 = vpop.f32.mrf.mxu1 }
 0x316   : > { %v5098_v59 = vpop.f32.mrf.mxu0  ;;  %v5100_v9 = vpop.f32.mrf.mxu1 }
 0x318   : > { %v5102_v56 = vpop.f32.mrf.mxu0  ;;  %v5104_v28 = vpop.f32.mrf.mxu1 }
 0x31a   : > { %v5106_v61 = vpop.f32.mrf.mxu0  ;;  %v5108_v60 = vpop.f32.mrf.mxu1 }
 0x31c   : > { %v5110_v14 = vpop.f32.mrf.mxu1  ;;  %v2371_v62 = vpop.f32.mrf.mxu0 }
 0x31e   : > { %v5112_v63 = vpop.f32.mrf.mxu1  ;;  %v2373_v27 = vpop.f32.mrf.mxu0 }
 0x320   : > { %v5114_v0 = vpop.f32.mrf.mxu1  ;;  %v2379_v1 = vpop.f32.mrf.mxu0 }
 0x321   : > { %5759 = vst [vmem:[#allocation5_spill] sm:$0xff] %v5114_v0  ;;  %v2127_v0 = vadd.f32 %v2126_v34, %v5060_v19  ;;  %v2138_v19 = vadd.f32 %v2137_v45, %v5068_v30 }
 0x322   : > { %v5116_v42 = vpop.f32.mrf.mxu1  ;;  %v5118_v55 = vpop.f32.mrf.mxu0 }
 0x323   : > { %5760 = vst [vmem:[#allocation6_spill] sm:$0xff] %v5116_v42  ;;  %v1916_v42 = vadd.f32 %v5058_v17, %v5046_v40  ;;  %v1925_v40 = vadd.f32 %v5070_v31, %v5052_v48  ;;  %v2263_v34 = vadd.f32 %v2262_v5, %v2127_v0  ;;  %v2270_v31 = vadd.f32 %v2269_v54, %v2138_v19  ;;  %v2756_v54 = vpop.permute.xlu1 %2755 }
 0x324   : > { %v5120_v2 = vpop.f32.mrf.mxu0  ;;  %v2481_v47 = vpop.f32.mrf.mxu1  ;;  %v2151_v5 = vadd.f32 %v5094_v52, %v2020_v20 }
 0x325   : > { %v2018_v17 = vadd.f32 %v5076_v13, %v1916_v42  ;;  %v2372_v13 = vadd.f32 %v2371_v62, %v2263_v34  ;;  %v2027_v45 = vadd.f32 %v5084_v38, %v1925_v40  ;;  %v2034_v62 = vadd.f32 %v5088_v49, %v1932_v35 }
 0x326   : > { %v5125_v36 = vpop.f32.mrf.mxu0  ;;  %v2483_v37 = vpop.f32.mrf.mxu1  ;;  %v2272_v38 = vadd.f32 %v5100_v9, %v2140_v15  ;;  %v2279_v57 = vadd.f32 %v5108_v60, %v2151_v5 }
 0x327   : > { %v2149_v48 = vadd.f32 %v5092_v41, %v2018_v17  ;;  %v2482_v41 = vadd.f32 %v2481_v47, %v2372_v13 }
 0x328   : > { %v5127_v46 = vpop.f32.mrf.mxu0  ;;  %v2490_v50 = vpop.f32.mrf.mxu1  ;;  %v2382_v47 = vadd.f32 %v5118_v55, %v2272_v38  ;;  %v2390_v9 = vadd.f32 %v5125_v36, %v2279_v57  ;;  %v5771_v34 = vld [vmem:[#allocation5_spill] sm:$0xff] }
 0x329   : > { %5761 = vst [vmem:[#allocation7_spill] sm:$0xff] %v5127_v46 }
 0x32a   : > { %v5130_v4 = vpop.f32.mrf.mxu0  ;;  %v5132_v7 = vpop.f32.mrf.mxu1 }
 0x32b   : > { %5762 = vst [vmem:[#allocation8_spill] sm:$0xff] %v5130_v4  ;;  %v5152_v4 = vpop.permute.xlu0 %2765 }
 0x32c   : > { %v5136_v12 = vpop.f32.mrf.mxu0  ;;  %v5138_v16 = vpop.f32.mrf.mxu1  ;;  %5768 = vst [vmem:[#allocation14_spill] sm:$0xff] %v5152_v4  ;;  %v2129_v4 = vadd.f32 %v2128_v39, %v5064_v25 }
 0x32d   : > { %5764 = vst [vmem:[#allocation10_spill] sm:$0xff] %v5136_v12  ;;  %v5155_v12 = vsel %vm2843_vm7, %v2809_v29, 0 }
 0x32e   : > { %v5140_v18 = vpop.f32.mrf.mxu0  ;;  %v5142_v24 = vpop.f32.mrf.mxu1  ;;  %v2265_v25 = vadd.f32 %v2264_v53, %v2129_v4  ;;  %v2380_v53 = vadd.f32 %v2379_v1, %v2270_v31  ;;  %v2171_v1 = vadd.f32 %v5102_v56, %v2032_v6 }
 0x32f   : > { %5765 = vst [vmem:[#allocation11_spill] sm:$0xff] %v5140_v18  ;;  %5766 = vst [vmem:[#allocation12_spill] sm:$0xff] %v5142_v24  ;;  %v2025_v24 = vadd.f32 %v5082_v33, %v1923_v10  ;;  %v5186_v30 = vpop.permute.xlu0 %2760  ;;  %v2277_v33 = vadd.f32 %v5104_v28, %v2149_v48  ;;  %v2162_v28 = vadd.f32 %v5098_v59, %v2027_v45 }
 0x330   : > { %v5150_v32 = vpop.f32.mrf.mxu1  ;;  %v2601_v21 = vpop.f32.mrf.mxu0  ;;  %v2374_v11 = vadd.f32 %v2373_v27, %v2265_v25  ;;  %v2491_v27 = vadd.f32 %v2490_v50, %v2380_v53  ;;  %v2493_v59 = vadd.f32 %v5132_v7, %v2382_v47  ;;  %v5773_v35 = vld [vmem:[#allocation7_spill] sm:$0xff]  ;;  %v2810_v7 = vld [vmem:[%s5747_s2 + $0x78] sm:$0xff] }
 0x331   : > { %5767 = vst [vmem:[#allocation13_spill] sm:$0xff] %v5150_v32  ;;  %v2160_v0 = vadd.f32 %v5096_v58, %v2025_v24  ;;  %v2388_v51 = vadd.f32 %v5120_v2, %v2277_v33  ;;  %v2602_v52 = vadd.f32 %v2601_v21, %v2482_v41  ;;  %v2173_v2 = vadd.f32 %v5106_v61, %v2034_v62  ;;  %v2751_v25 = vpop.permute.xlu1 %2750 }
 0x332   : > { %v5157_v46 = vpop.f32.mrf.mxu1  ;;  %v2603_v18 = vpop.f32.mrf.mxu0  ;;  %v2484_v43 = vadd.f32 %v2483_v37, %v2374_v11  ;;  %v2286_v55 = vadd.f32 %v5112_v63, %v2162_v28  ;;  %v5774_v48 = vld [vmem:[#allocation8_spill] sm:$0xff]  ;;  %v5224_v38 = vsel %vm2843_vm7, %v2810_v7, 0 }
 0x333   : > { %5769 = vst [vmem:[#allocation15_spill] sm:$0xff] %v5157_v46  ;;  %v5171_v46 = vand.u32 4294901760, %v5155_v12  ;;  %v2500_v37 = vadd.f32 %v5138_v16, %v2388_v51  ;;  %v2746_v60 = vpop.permute.xlu0 %2745  ;;  %v2284_v21 = vadd.f32 %v5110_v14, %v2160_v0  ;;  %v2291_v16 = vadd.f32 %v5771_v34, %v2171_v1 }
 0x334   : > { %v5168_v29 = vpop.f32.mrf.mxu1  ;;  %v2608_v32 = vpop.f32.mrf.mxu0  ;;  %v2604_v49 = vadd.f32 %v2603_v18, %v2484_v43  ;;  %v2398_v31 = vadd.f32 %v5774_v48, %v2286_v55  ;;  %v5775_v6 = vld [vmem:[#allocation10_spill] sm:$0xff] }
 0x335   : > { %v2609_v24 = vadd.f32 %v2608_v32, %v2491_v27  ;;  %v5772_v32 = vld [vmem:[#allocation6_spill] sm:$0xff]  ;;  %v2396_v20 = vadd.f32 %v5773_v35, %v2284_v21  ;;  %v2404_v15 = vadd.f32 %v5775_v6, %v2291_v16 }
 0x336   : > { %v5182_v26 = vpop.f32.mrf.mxu1  ;;  %v2610_v39 = vpop.f32.mrf.mxu0  ;;  %v5770_v18 = vld [vmem:[#allocation12_spill] sm:$0xff]  ;;  %v2293_v44 = vadd.f32 %v5772_v32, %v2173_v2  ;;  %v5777_v53 = vld [vmem:[#allocation11_spill] sm:$0xff] }
 0x337   : > { %v2502_v17 = vadd.f32 %v5770_v18, %v2390_v9  ;;  %v2611_v61 = vadd.f32 %v2610_v39, %v2493_v59 }
 0x338   : > { %v2615_v22 = vpop.f32.mrf.mxu0  ;;  %v2705_v23 = vpop.f32.mrf.mxu1  ;;  %v5776_v11 = vld [vmem:[#allocation13_spill] sm:$0xff]  ;;  %v2406_v41 = vadd.f32 %v5777_v53, %v2293_v44 }
 0x339   : > { %v2706_v3 = vadd.f32 %v2705_v23, %v2602_v52  ;;  %v2616_v19 = vadd.f32 %v2615_v22, %v2500_v37  ;;  %v2509_v22 = vadd.f32 %v5776_v11, %v2396_v20 }
 0x33a   : > { %v2617_v42 = vpop.f32.mrf.mxu0  ;;  %v2707_v4 = vpop.f32.mrf.mxu1  ;;  %v5778_v43 = vld [vmem:[#allocation15_spill] sm:$0xff]  ;;  %v2520_v52 = vadd.f32 %v5182_v26, %v2406_v41  ;;  %v2811_v41 = vld [vmem:[%s5747_s2 + $0x80] sm:$0xff] }
 0x33b   : > { %v2708_v50 = vadd.f32 %v2707_v4, %v2604_v49  ;;  %v5216_v63 = vadd.f32 %v2746_v60, %v2706_v3  ;;  %v2618_v13 = vadd.f32 %v2617_v42, %v2502_v17  ;;  %v2511_v4 = vadd.f32 %v5778_v43, %v2398_v31  ;;  %v5779_v17 = vld [vmem:[#allocation14_spill] sm:$0xff] }
 0x33c   : > { %v2622_v10 = vpop.f32.mrf.mxu0  ;;  %v2712_v58 = vpop.f32.mrf.mxu1  ;;  %v2518_v42 = vadd.f32 %v5168_v29, %v2404_v15 }
 0x33d   : > { %v2713_v36 = vadd.f32 %v2712_v58, %v2609_v24  ;;  %v5220_v23 = vadd.f32 %v2746_v60, %v2708_v50  ;;  %v2623_v57 = vadd.f32 %v2622_v10, %v2509_v22  ;;  %vm2778_vm8 = vcmp.gt.f32.partialorder %v5216_v63, 0.0 }
 0x33e   : > { %v2624_v56 = vpop.f32.mrf.mxu0  ;;  %v2714_v40 = vpop.f32.mrf.mxu1  ;;  %v2788_v28 = vmul.f32 0.2, %v5216_v63 }
 0x33f   : > { %v2715_v5 = vadd.f32 %v2714_v40, %v2611_v61  ;;  %v2770_v62 = vadd.f32 %v2751_v25, %v2713_v36  ;;  %vm2779_vm9 = vcmp.gt.f32.partialorder %v5220_v23, 0.0  ;;  %v2625_v47 = vadd.f32 %v2624_v56, %v2511_v4 }
 0x340   : > { %v2719_v14 = vpop.f32.mrf.mxu1  ;;  %v2629_v39 = vpop.f32.mrf.mxu0  ;;  %v2789_v24 = vmul.f32 0.2, %v5220_v23  ;;  %v5282_v4 = vsub.f32 %v5155_v12, %v5171_v46 }
 0x341   : > { %v2720_v45 = vadd.f32 %v2719_v14, %v2616_v19  ;;  %v2771_v49 = vadd.f32 %v2751_v25, %v2715_v5  ;;  %vm2780_vm10 = vcmp.gt.f32.partialorder %v2770_v62, 0.0  ;;  %v2630_v29 = vadd.f32 %v2629_v39, %v2518_v42 }
 0x342   : > { %v2721_v33 = vpop.f32.mrf.mxu1  ;;  %v2631_v58 = vpop.f32.mrf.mxu0  ;;  %v2790_v21 = vmul.f32 0.2, %v2770_v62  ;;  %v5285_v42 = vand.u32 4294901760, %v5224_v38 }
 0x343   : > { %v2722_v0 = vadd.f32 %v2721_v33, %v2618_v13  ;;  %v2772_v51 = vadd.f32 %v2756_v54, %v2720_v45  ;;  %v2791_v50 = vmul.f32 0.2, %v2771_v49  ;;  %vm2781_vm14 = vcmp.gt.f32.partialorder %v2771_v49, 0.0 }
 0x344   : > { %v2726_v27 = vpop.f32.mrf.mxu1  ;;  %v2800_v61 = vsel %vm2780_vm10, %v2770_v62, %v2790_v21  ;;  %v2798_v13 = vsel %vm2778_vm8, %v5216_v63, %v2788_v28  ;;  %v2799_v45 = vsel %vm2779_vm9, %v5220_v23, %v2789_v24  ;;  %v2947_v24 = vand.u32 4294901760, %v5282_v4 }
 0x345   : > { %v2773_v1 = vadd.f32 %v2756_v54, %v2722_v0  ;;  %v2727_v9 = vadd.f32 %v2726_v27, %v2623_v57  ;;  %v2792_v3 = vmul.f32 0.2, %v2772_v51  ;;  %vm2782_vm12 = vcmp.gt.f32.partialorder %v2772_v51, 0.0 }
 0x346   : > { %v2728_v37 = vpop.f32.mrf.mxu1  ;;  %v2632_v54 = vadd.f32 %v2631_v58, %v2520_v52  ;;  %v2801_v25 = vsel %vm2781_vm14, %v2771_v49, %v2791_v50  ;;  %v5262_v33 = vand.u32 4294901760, %v2800_v61  ;;  %v5275_v62 = vand.u32 4294901760, %v2799_v45 }
 0x347   : > { %v2793_v10 = vmul.f32 0.2, %v2773_v1  ;;  %vm2783_vm11 = vcmp.gt.f32.partialorder %v2773_v1, 0.0  ;;  %v2774_v26 = vadd.f32 %v5186_v30, %v2727_v9  ;;  %v2729_v60 = vadd.f32 %v2728_v37, %v2625_v47 }
 0x348   : > { %v2733_v2 = vpop.f32.mrf.mxu1  ;;  %v2802_v34 = vsel %vm2782_vm12, %v2772_v51, %v2792_v3  ;;  %v5254_v22 = vand.u32 4294901760, %v2801_v25  ;;  %v5780_v0 = vand.u32 4294901760, %v5148_v8  ;;  %v5296_v28 = vand.u32 4294901760, %v2798_v13  ;;  %v2812_v3 = vld [vmem:[%s5747_s2 + $0x88] sm:$0xff] }
 0x349   : > { %v2734_v59 = vadd.f32 %v2733_v2, %v2630_v29  ;;  %vm2784_vm13 = vcmp.gt.f32.partialorder %v2774_v26, 0.0  ;;  %v2794_v56 = vmul.f32 0.2, %v2774_v26  ;;  %v2775_v40 = vadd.f32 %v5186_v30, %v2729_v60 }
 0x34a   : > { %v2735_v55 = vpop.f32.mrf.mxu1  ;;  %v2803_v18 = vsel %vm2783_vm11, %v2773_v1, %v2793_v10  ;;  %v5252_v15 = vand.u32 4294901760, %v2802_v34  ;;  %v2937_v43 = vsub.f32 %v5148_v8, %v5780_v0  ;;  %v5301_v1 = vsub.f32 %v2801_v25, %v5254_v22 }
 0x34b   : > { %v2776_v19 = vadd.f32 %v5779_v17, %v2734_v59  ;;  %v2736_v36 = vadd.f32 %v2735_v55, %v2632_v54  ;;  %v2804_v16 = vsel %vm2784_vm13, %v2774_v26, %v2794_v56  ;;  %vm2785_vm15 = vcmp.gt.f32.partialorder %v2775_v40, 0.0 }
 0x34c   : > { %v2795_v32 = vmul.f32 0.2, %v2775_v40  ;;  %v5237_v20 = vand.u32 4294901760, %v2804_v16  ;;  %v5240_v14 = vand.u32 4294901760, %v2803_v18  ;;  %v5294_v52 = vsub.f32 %v2802_v34, %v5252_v15 }
 0x34d   : > { %vm2786_vm0 = vcmp.gt.f32.partialorder %v2776_v19, 0.0  ;;  %v2796_v44 = vmul.f32 0.2, %v2776_v19  ;;  %v2777_v35 = vadd.f32 %v5779_v17, %v2736_v36  ;;  %v2854_v47 = vsel %vm2843_vm7, %v2811_v41, 0 }
 0x34e   : > { %v2805_v30 = vsel %vm2785_vm15, %v2775_v40, %v2795_v32  ;;  %v5260_v39 = vsub.f32 %v2804_v16, %v5237_v20  ;;  %v5270_v23 = vsub.f32 %v2803_v18, %v5240_v14  ;;  %v5305_v49 = vsub.f32 %v2800_v61, %v5262_v33 }
 0x34f   : > { %v2806_v7 = vsel %vm2786_vm0, %v2776_v19, %v2796_v44  ;;  %vm2787_vm1 = vcmp.gt.f32.partialorder %v2777_v35, 0.0  ;;  %v2797_v48 = vmul.f32 0.2, %v2777_v35  ;;  %v5242_v31 = vand.u32 4294901760, %v2805_v30 }
 0x350   : > { %v5250_v6 = vand.u32 4294901760, %v2806_v7  ;;  %v3031_v12 = vand.u32 4294901760, %v5260_v39  ;;  %v3037_v9 = vand.u32 4294901760, %v5270_v23  ;;  %v5316_v29 = vsub.f32 %v2799_v45, %v5275_v62 }
 0x351   : > { %v2807_v11 = vsel %vm2787_vm1, %v2777_v35, %v2797_v48  ;;  %v5257_v5 = vsub.f32 %v2805_v30, %v5242_v31  ;;  %v5320_v10 = vsub.f32 %v5224_v38, %v5285_v42  ;;  %v3043_v2 = vand.u32 4294901760, %v5294_v52 }
 0x352   : > { %v5264_v63 = vand.u32 4294901760, %v2807_v11  ;;  %v5267_v53 = vsub.f32 %v2806_v7, %v5250_v6  ;;  %v5333_v21 = vand.u32 4294901760, %v2854_v47  ;;  %v5336_v38 = vsub.f32 %v2798_v13, %v5296_v28 }
 0x353   : > { %v3025_v27 = vand.u32 4294901760, %v5257_v5  ;;  %v2938_v54 = vand.u32 4294901760, %v2937_v43  ;;  %v3032_v59 = vsub.f32 %v5260_v39, %v3031_v12  ;;  %v3049_v50 = vand.u32 4294901760, %v5301_v1 }
 0x354   : > { %2882 = vmatprep.subr.mxu0 %v5264_v63  ;;  %v5289_v57 = vsub.f32 %v2807_v11, %v5264_v63  ;;  %v3019_v51 = vand.u32 4294901760, %v5267_v53  ;;  %v3038_v40 = vsub.f32 %v5270_v23, %v3037_v9  ;;  %v3055_v55 = vand.u32 4294901760, %v5305_v49 }
 0x355   : > { %2884 = vmatpush1.msra.mxu0 %v5250_v6  ;;  %v3026_v60 = vsub.f32 %v5257_v5, %v3025_v27  ;;  %v2857_v18 = vsel %vm2843_vm7, %v2812_v3, 0  ;;  %v2948_v19 = vsub.f32 %v5282_v4, %v2947_v24  ;;  %v3061_v36 = vand.u32 4294901760, %v5316_v29 }
 0x356   : > { %2886 = vmatprep.subr.mxu0 %v5242_v31  ;;  %v3013_v58 = vand.u32 4294901760, %v5289_v57  ;;  %v3020_v37 = vsub.f32 %v5267_v53, %v3019_v51  ;;  %v3044_v16 = vsub.f32 %v5294_v52, %v3043_v2  ;;  %v2958_v32 = vand.u32 4294901760, %v5320_v10 }
 0x357   : > { %2888 = vmatpush1.msra.mxu0 %v5237_v20  ;;  %v3027_v34 = vand.u32 4294901760, %v3026_v60  ;;  %v5360_v44 = vsub.f32 %v2854_v47, %v5333_v21  ;;  %v3033_v35 = vand.u32 4294901760, %v3032_v59  ;;  %v3050_v61 = vsub.f32 %v5301_v1, %v3049_v50 }
 0x358   : > { %2890 = vmatprep.subr.mxu0 %v5240_v14  ;;  %v3014_v26 = vsub.f32 %v5289_v57, %v3013_v58  ;;  %v3021_v17 = vand.u32 4294901760, %v3020_v37  ;;  %v3067_v25 = vand.u32 4294901760, %v5336_v38  ;;  %v5367_v30 = vand.u32 4294901760, %v2857_v18 }
 0x359   : > { %2892 = vmatpush1.msra.mxu0 %v5252_v15  ;;  %v3039_v7 = vand.u32 4294901760, %v3038_v40  ;;  %v3056_v48 = vsub.f32 %v5305_v49, %v3055_v55  ;;  %v2949_v13 = vand.u32 4294901760, %v2948_v19  ;;  %v3062_v45 = vsub.f32 %v5316_v29, %v3061_v36 }
 0x35a   : > { %2894 = vmatprep.subr.mxu0 %v5254_v22  ;;  %v3015_v56 = vand.u32 4294901760, %v3014_v26  ;;  %v3045_v11 = vand.u32 4294901760, %v3044_v16  ;;  %v2959_v41 = vsub.f32 %v5320_v10, %v2958_v32  ;;  %v5781_v0 = vmov 0.0  }
 0x35b   : > { %2896 = vmatpush1.msra.mxu0 %v5262_v33  ;;  %v3051_v43 = vand.u32 4294901760, %v3050_v61  ;;  %v3068_v47 = vsub.f32 %v5336_v38, %v3067_v25  ;;  %v2969_v37 = vand.u32 4294901760, %v5360_v44  ;;  %v5387_v3 = vsub.f32 %v2857_v18, %v5367_v30  ;;  %v5782_v18 = vld [vmem:[#allocation9_spill] sm:$0xff] }
 0x35c   : > { %2898 = vmatprep.subr.mxu0 %v5275_v62  ;;  %3016 = vmatprep.subr.mxu1 %v3015_v56  ;;  %v3057_v26 = vand.u32 4294901760, %v3056_v48  ;;  %v3063_v60 = vand.u32 4294901760, %v3062_v45 }
 0x35d   : > { %2900 = vmatpush1.msra.mxu0 %v5296_v28  ;;  %3022 = vmatpush1.msra.mxu1 %v3021_v17  ;;  %v3069_v59 = vand.u32 4294901760, %v3068_v47  ;;  %v2970_v56 = vsub.f32 %v5360_v44, %v2969_v37  ;;  %v2980_v40 = vand.u32 4294901760, %v5387_v3 }
 0x35e   : > { %2939 = vmatmul.mubr.f32.vlgmr.msra.gmra.mxu0 %v2938_v54  ;;  %3028 = vmatprep.subr.mxu1 %v3027_v34  ;;  %v2960_v54 = vand.u32 4294901760, %v2959_v41 }
 0x35f   : > { %3163 = vmatprep.subr.mxu0 %v5289_v57  ;;  %3034 = vmatpush1.msra.mxu1 %v3033_v35  ;;  %v2971_v17 = vand.u32 4294901760, %v2970_v56  ;;  %v2981_v19 = vsub.f32 %v5387_v3, %v2980_v40 }
 0x360   : > { %3166 = vmatpush1.msra.mxu0 %v5267_v53  ;;  %3040 = vmatprep.subr.mxu1 %v3039_v7 }
 0x361   : > { %3169 = vmatprep.subr.mxu0 %v5257_v5  ;;  %2944 = vmatprep.mubr.f32.mxu0 %v5781_v0  ;;  %v2982_v34 = vand.u32 4294901760, %v2981_v19  ;;  %v5783_v5 = vand.u32 4294901760, %v5148_v8 }
 0x362   : > { %3046 = vmatpush1.msra.mxu1 %v3045_v11  ;;  %3172 = vmatpush1.msra.mxu0 %v5260_v39 }
 0x363   : > { %2950 = vmatmul.mubr.f32.gmra.mxu0 %v2949_v13  ;;  %3052 = vmatprep.subr.mxu1 %v3051_v43 }
 0x364   : > { %3175 = vmatprep.subr.mxu0 %v5270_v23  ;;  %3058 = vmatpush1.msra.mxu1 %v3057_v26 }
 0x365   : > { %3178 = vmatpush1.msra.mxu0 %v5294_v52  ;;  %3064 = vmatprep.subr.mxu1 %v3063_v60 }
 0x366   : > { %3181 = vmatprep.subr.mxu0 %v5301_v1  ;;  %2955 = vmatprep.mubr.f32.mxu0 %v5781_v0 }
 0x367   : > { %3070 = vmatpush1.msra.mxu1 %v3069_v59  ;;  %3184 = vmatpush1.msra.mxu0 %v5305_v49 }
 0x368   : > { %2961 = vmatmul.mubr.f32.gmra.mxu0 %v2960_v54  ;;  %3105 = vmatmul.mubr.f32.vlgmr.msra.gmra.mxu1 %v5782_v18 }
 0x369   : > { %3187 = vmatprep.subr.mxu0 %v5316_v29  ;;  %3287 = vmatprep.subr.mxu1 %v5264_v63 }
 0x36a   : > { %3190 = vmatpush1.msra.mxu0 %v5336_v38  ;;  %3289 = vmatpush1.msra.mxu1 %v5250_v6 }
 0x36b   : > { %3291 = vmatprep.subr.mxu1 %v5242_v31  ;;  %3409 = vmatprep.subr.mxu0 %v3013_v58 }
 0x36c   : > { %2966 = vmatprep.mubr.f32.mxu0 %v5781_v0  ;;  %3110 = vmatprep.mubr.f32.mxu1 %v5781_v0 }
 0x36d   : > { %3293 = vmatpush1.msra.mxu1 %v5237_v20  ;;  %2972 = vmatmul.mubr.f32.gmra.mxu0 %v2971_v17 }
 0x36e   : > { %3112 = vmatmul.mubr.f32.gmra.mxu1 %v5171_v46  ;;  %3295 = vmatprep.subr.mxu1 %v5240_v14 }
 0x36f   : > { %3297 = vmatpush1.msra.mxu1 %v5252_v15  ;;  %2977 = vmatprep.mubr.f32.mxu0 %v5781_v0 }
 0x370   : > { %3299 = vmatprep.subr.mxu1 %v5254_v22  ;;  %3117 = vmatprep.mubr.f32.mxu1 %v5781_v0 }
 0x371   : > { %3301 = vmatpush1.msra.mxu1 %v5262_v33  ;;  %2983 = vmatmul.mubr.f32.gmra.mxu0 %v2982_v34 }
 0x372   : > { %3119 = vmatmul.mubr.f32.gmra.mxu1 %v5285_v42  ;;  %3303 = vmatprep.subr.mxu1 %v5275_v62 }
 0x373   : > { %3305 = vmatpush1.msra.mxu1 %v5296_v28  ;;  %3124 = vmatprep.mubr.f32.mxu1 %v5781_v0 }
 0x374   : > { %3537 = vmatprep.subr.mxu1 %v5264_v63  ;;  %3223 = vmatprep.mubr.f32.mxu0 %v5781_v0 }
 0x375   : > { %3226 = vmatmul.mubr.f32.vlgmr.msra.gmra.mxu0 %v5148_v8 }
 0x376   : > { %3126 = vmatmul.mubr.f32.gmra.mxu1 %v5333_v21  ;;  %3413 = vmatpush1.msra.mxu0 %v3019_v51 }
 0x377   : > { %3417 = vmatprep.subr.mxu0 %v3025_v27  ;;  %3131 = vmatprep.mubr.f32.mxu1 %v5781_v0 }
 0x378   : > { %3421 = vmatpush1.msra.mxu0 %v3031_v12  ;;  %3231 = vmatprep.mubr.f32.mxu0 %v5781_v0 }
 0x379   : > { %3425 = vmatprep.subr.mxu0 %v3037_v9  ;;  %3234 = vmatmul.mubr.f32.gmra.mxu0 %v5282_v4 }
 0x37a   : > { %3133 = vmatmul.mubr.f32.gmra.mxu1 %v5367_v30  ;;  %3429 = vmatpush1.msra.mxu0 %v3043_v2 }
 0x37b   : > { %3433 = vmatprep.subr.mxu0 %v3049_v50  ;;  %3239 = vmatprep.mubr.f32.mxu0 %v5781_v0 }
 0x37c   : > { %3437 = vmatpush1.msra.mxu0 %v3055_v55  ;;  %3338 = vmatprep.mubr.f32.mxu1 %v5781_v0 }
 0x37d   : > { %3441 = vmatprep.subr.mxu0 %v3061_v36  ;;  %3242 = vmatmul.mubr.f32.gmra.mxu0 %v5320_v10 }
 0x37e   : > { %3342 = vmatmul.mubr.f32.vlgmr.msra.gmra.mxu1 %v5783_v5  ;;  %3445 = vmatpush1.msra.mxu0 %v3067_v25  ;;  %v2836_v25 = vpop.permute.xlu0 %2835 }
 0x37f   : > { %3539 = vmatpush1.msra.mxu1 %v5250_v6  ;;  %3247 = vmatprep.mubr.f32.mxu0 %v5781_v0 }
 0x380   : > { %3541 = vmatprep.subr.mxu1 %v5242_v31  ;;  %3347 = vmatprep.mubr.f32.mxu1 %v5781_v0 }
 0x381   : > { %3543 = vmatpush1.msra.mxu1 %v5237_v20  ;;  %3250 = vmatmul.mubr.f32.gmra.mxu0 %v5360_v44 }
 0x382   : > { %3545 = vmatprep.subr.mxu1 %v5240_v14  ;;  %3351 = vmatmul.mubr.f32.gmra.mxu1 %v2947_v24 }
 0x383   : > { %3547 = vmatpush1.msra.mxu1 %v5252_v15  ;;  %3255 = vmatprep.mubr.f32.mxu0 %v5781_v0 }
 0x384   : > { %3549 = vmatprep.subr.mxu1 %v5254_v22  ;;  %3356 = vmatprep.mubr.f32.mxu1 %v5781_v0 }
 0x385   : > { %3551 = vmatpush1.msra.mxu1 %v5262_v33  ;;  %3258 = vmatmul.mubr.f32.gmra.mxu0 %v5387_v3 }
 0x386   : > { %3553 = vmatprep.subr.mxu1 %v5275_v62  ;;  %3360 = vmatmul.mubr.f32.gmra.mxu1 %v2958_v32  ;;  %v3654_v32 = vld [vmem:[%s5747_s2 + $0x90] sm:$0xf] }
 0x387   : > { %3555 = vmatpush1.msra.mxu1 %v5296_v28  ;;  %3365 = vmatprep.mubr.f32.mxu1 %v5781_v0  ;;  %v3662_v7 = vsel %vm2843_vm7, %v3654_v32, 0 }
 0x388   : > { %3478 = vmatprep.mubr.f32.mxu0 %v5781_v0  ;;  %v5524_v11 = vand.u32 4294901760, %v3662_v7 }
 0x389   : > { %3480 = vmatmul.mubr.f32.vlgmr.msra.gmra.mxu0 %v5782_v18 }
 0x38a   : > { %3369 = vmatmul.mubr.f32.gmra.mxu1 %v2969_v37  ;;  %3485 = vmatprep.mubr.f32.mxu0 %v5781_v0  ;;  %5788 = vst [vmem:[#allocation8_spill] sm:$0xff] %v5524_v11  ;;  %v2826_v37 = vpop.permute.xlu0 %2825 }
 0x38b   : > { %3374 = vmatprep.mubr.f32.mxu1 %v5781_v0 }
 0x38d   : > { %3487 = vmatmul.mubr.f32.gmra.mxu0 %v5171_v46 }
 0x38e   : > { %3378 = vmatmul.mubr.f32.gmra.mxu1 %v2980_v40  ;;  %3492 = vmatprep.mubr.f32.mxu0 %v5781_v0  ;;  %v5529_v40 = vsub.f32 %v3662_v7, %v5524_v11 }
 0x38f   : > { %3588 = vmatprep.mubr.f32.mxu1 %v5781_v0 }
 0x391   : > { %3494 = vmatmul.mubr.f32.gmra.mxu0 %v5285_v42 }
 0x392   : > { %3590 = vmatmul.mubr.f32.vlgmr.msra.gmra.mxu1 %v5782_v18  ;;  %3499 = vmatprep.mubr.f32.mxu0 %v5781_v0 }
 0x393   : > { %3595 = vmatprep.mubr.f32.mxu1 %v5781_v0 }
 0x395   : > { %3501 = vmatmul.mubr.f32.gmra.mxu0 %v5333_v21 }
 0x396   : > { %3597 = vmatmul.mubr.f32.gmra.mxu1 %v5171_v46  ;;  %3506 = vmatprep.mubr.f32.mxu0 %v5781_v0 }
 0x397   : > { %3602 = vmatprep.mubr.f32.mxu1 %v5781_v0 }
 0x399   : > { %3508 = vmatmul.mubr.f32.gmra.mxu0 %v5367_v30 }
 0x39a   : > { %3604 = vmatmul.mubr.f32.gmra.mxu1 %v5285_v42  ;;  %3738 = vmatprep.mubr.f32.mxu0 %v5781_v0 }
 0x39b   : > { %3609 = vmatprep.mubr.f32.mxu1 %v5781_v0 }
 0x39e   : > { %3611 = vmatmul.mubr.f32.gmra.mxu1 %v5333_v21  ;;  %v2841_v21 = vpop.permute.xlu1 %2840 }
 0x39f   : > { %3616 = vmatprep.mubr.f32.mxu1 %v5781_v0 }
 0x3a2   : > { %3618 = vmatmul.mubr.f32.gmra.mxu1 %v5367_v30  ;;  %v2831_v35 = vpop.permute.xlu1 %2830 }
 0x3a3   : > { %3864 = vmatprep.mubr.f32.mxu1 %v5781_v0 }
 0x3a6   : > { %v2821_v43 = vpop.permute.xlu1 %2820 }
 0x41e   : > { %v2940_v46 = vpop.f32.mrf.mxu0 }
 0x41f   : > { %v2941_v3 = vadd.f32 %v2940_v46, %v2821_v43 }
 0x420   : > { %v2942_v8 = vpop.f32.mrf.mxu0 }
 0x421   : > { %v2943_v26 = vadd.f32 %v2942_v8, %v2821_v43 }
 0x423   : > { %v2951_v20 = vpop.f32.mrf.mxu0 }
 0x424   : > { %v2952_v54 = vadd.f32 %v2951_v20, %v2826_v37 }
 0x425   : > { %v2953_v14 = vpop.f32.mrf.mxu0 }
 0x426   : > { %v2954_v59 = vadd.f32 %v2953_v14, %v2826_v37 }
 0x428   : > { %v2962_v31 = vpop.f32.mrf.mxu0  ;;  %v3106_v6 = vpop.f32.mrf.mxu1 }
 0x429   : > { %v2963_v18 = vadd.f32 %v2962_v31, %v2831_v35  ;;  %v3107_v17 = vadd.f32 %v3106_v6, %v2941_v3 }
 0x42a   : > { %v2964_v15 = vpop.f32.mrf.mxu0  ;;  %v3108_v22 = vpop.f32.mrf.mxu1 }
 0x42b   : > { %v2965_v19 = vadd.f32 %v2964_v15, %v2831_v35  ;;  %v3109_v34 = vadd.f32 %v3108_v22, %v2943_v26 }
 0x42d   : > { %v2973_v39 = vpop.f32.mrf.mxu0 }
 0x42e   : > { %v3113_v33 = vpop.f32.mrf.mxu1  ;;  %v2974_v32 = vadd.f32 %v2973_v39, %v2836_v25 }
 0x42f   : > { %v2975_v63 = vpop.f32.mrf.mxu0  ;;  %v3114_v0 = vadd.f32 %v3113_v33, %v2952_v54 }
 0x430   : > { %v3115_v53 = vpop.f32.mrf.mxu1 }
 0x431   : > { %v2984_v23 = vpop.f32.mrf.mxu0 }
 0x432   : > { %v3120_v62 = vpop.f32.mrf.mxu1 }
 0x433   : > { %v2986_v4 = vpop.f32.mrf.mxu0  ;;  %v3121_v46 = vadd.f32 %v3120_v62, %v2963_v18 }
 0x434   : > { %v3122_v42 = vpop.f32.mrf.mxu1  ;;  %v2987_v14 = vadd.f32 %v2986_v4, %v2841_v21 }
 0x435   : > { %v3227_v57 = vpop.f32.mrf.mxu0  ;;  %v3123_v37 = vadd.f32 %v3122_v42, %v2965_v19 }
 0x436   : > { %v3127_v51 = vpop.f32.mrf.mxu1  ;;  %v3228_v8 = vadd.f32 %v3227_v57, %v3107_v17 }
 0x437   : > { %v3229_v27 = vpop.f32.mrf.mxu0 }
 0x438   : > { %v3129_v52 = vpop.f32.mrf.mxu1  ;;  %v3230_v43 = vadd.f32 %v3229_v27, %v3109_v34 }
 0x439   : > { %v5502_v28 = vpop.f32.mrf.mxu0 }
 0x43a   : > { %v3134_v12 = vpop.f32.mrf.mxu1  ;;  %v3236_v33 = vadd.f32 %v5502_v28, %v3114_v0 }
 0x43b   : > { %v3237_v1 = vpop.f32.mrf.mxu0 }
 0x43c   : > { %v3136_v49 = vpop.f32.mrf.mxu1 }
 0x43d   : > { %v3243_v58 = vpop.f32.mrf.mxu0 }
 0x43e   : > { %v3343_v9 = vpop.f32.mrf.mxu1  ;;  %v3244_v6 = vadd.f32 %v3243_v58, %v3121_v46 }
 0x43f   : > { %v3245_v24 = vpop.f32.mrf.mxu0  ;;  %v3344_v15 = vadd.f32 %v3343_v9, %v3228_v8 }
 0x440   : > { %v3345_v29 = vpop.f32.mrf.mxu1 }
 0x441   : > { %v5504_v10 = vpop.f32.mrf.mxu0  ;;  %v3346_v22 = vadd.f32 %v3345_v29, %v3230_v43 }
 0x442   : > { %v5506_v2 = vpop.f32.mrf.mxu1 }
 0x443   : > { %v5508_v38 = vpop.f32.mrf.mxu0 }
 0x444   : > { %v3354_v50 = vpop.f32.mrf.mxu1 }
 0x445   : > { %v5510_v55 = vpop.f32.mrf.mxu0 }
 0x446   : > { %v3361_v36 = vpop.f32.mrf.mxu1 }
 0x447   : > { %v5512_v16 = vpop.f32.mrf.mxu0  ;;  %v3362_v57 = vadd.f32 %v3361_v36, %v3244_v6 }
 0x448   : > { %5784 = vst [vmem:[#allocation12_spill] sm:$0xff] %v5512_v16  ;;  %v3363_v44 = vpop.f32.mrf.mxu1  ;;  %v3128_v16 = vadd.f32 %v3127_v51, %v2974_v32  ;;  %v3353_v51 = vadd.f32 %v5506_v2, %v3236_v33 }
 0x449   : > { %v3481_v61 = vpop.f32.mrf.mxu0 }
 0x44a   : > { %v5517_v30 = vpop.f32.mrf.mxu1  ;;  %v3482_v27 = vadd.f32 %v3481_v61, %v3344_v15  ;;  %v3252_v42 = vadd.f32 %v5504_v10, %v3128_v16 }
 0x44b   : > { %5785 = vst [vmem:[#allocation5_spill] sm:$0xff] %v5517_v30  ;;  %v3483_v48 = vpop.f32.mrf.mxu0  ;;  %v2985_v30 = vadd.f32 %v2984_v23, %v2841_v21 }
 0x44c   : > { %v5520_v13 = vpop.f32.mrf.mxu1 }
 0x44d   : > { %5786 = vst [vmem:[#allocation6_spill] sm:$0xff] %v5520_v13  ;;  %v5522_v45 = vpop.f32.mrf.mxu0  ;;  %v3135_v39 = vadd.f32 %v3134_v12, %v2985_v30 }
 0x44e   : > { %5787 = vst [vmem:[#allocation7_spill] sm:$0xff] %v5522_v45  ;;  %v5526_v41 = vpop.f32.mrf.mxu1  ;;  %v3116_v45 = vadd.f32 %v3115_v53, %v2954_v59  ;;  %v3246_v53 = vadd.f32 %v3245_v24, %v3123_v37 }
 0x44f   : > { %5789 = vst [vmem:[#allocation10_spill] sm:$0xff] %v5526_v41  ;;  %v3490_v47 = vpop.f32.mrf.mxu0  ;;  %v2976_v41 = vadd.f32 %v2975_v63, %v2836_v25  ;;  %v3137_v63 = vadd.f32 %v3136_v49, %v2987_v14  ;;  %v3484_v25 = vadd.f32 %v3483_v48, %v3346_v22  ;;  %v3260_v49 = vadd.f32 %v5510_v55, %v3135_v39  ;;  %v5790_v24 = vld [vmem:[#allocation12_spill] sm:$0xff] }
 0x450   : > { %v3381_v60 = vpop.f32.mrf.mxu1  ;;  %v3238_v31 = vadd.f32 %v3237_v1, %v3116_v45  ;;  %v3364_v1 = vadd.f32 %v3363_v44, %v3246_v53 }
 0x451   : > { %v3495_v56 = vpop.f32.mrf.mxu0  ;;  %v3130_v7 = vadd.f32 %v3129_v52, %v2976_v41  ;;  %v3262_v29 = vadd.f32 %v5790_v24, %v3137_v63 }
 0x452   : > { %v3591_v5 = vpop.f32.mrf.mxu1  ;;  %v3355_v62 = vadd.f32 %v3354_v50, %v3238_v31  ;;  %v3496_v9 = vadd.f32 %v3495_v56, %v3362_v57  ;;  %v5791_v21 = vld [vmem:[#allocation5_spill] sm:$0xff] }
 0x453   : > { %v3497_v13 = vpop.f32.mrf.mxu0  ;;  %v3254_v52 = vadd.f32 %v5508_v38, %v3130_v7  ;;  %v5535_v12 = vadd.f32 %v3591_v5, %v3482_v27  ;;  %v3371_v50 = vadd.f32 %v5791_v21, %v3252_v42 }
 0x454   : > { %v3593_v20 = vpop.f32.mrf.mxu1  ;;  %v3491_v58 = vadd.f32 %v3490_v47, %v3355_v62  ;;  %v3498_v36 = vadd.f32 %v3497_v13, %v3364_v1  ;;  %v5792_v10 = vld [vmem:[#allocation6_spill] sm:$0xff]  ;;  %v3382_v47 = vadd.f32 %v3381_v60, %v3262_v29 }
 0x455   : > { %v3502_v11 = vpop.f32.mrf.mxu0  ;;  %v3594_v0 = vadd.f32 %v3593_v20, %v3484_v25  ;;  %v3373_v16 = vadd.f32 %v5792_v10, %v3254_v52  ;;  %v5793_v2 = vld [vmem:[#allocation7_spill] sm:$0xff]  ;;  %vm3624_vm2 = vcmp.gt.f32.partialorder %v5535_v12, 0.0  ;;  %v3634_v31 = vmul.f32 0.2, %v5535_v12 }
 0x456   : > { %v3598_v35 = vpop.f32.mrf.mxu1  ;;  %v3489_v30 = vadd.f32 %v5793_v2, %v3353_v51  ;;  %v5794_v45 = vld [vmem:[#allocation10_spill] sm:$0xff]  ;;  %v3503_v3 = vadd.f32 %v3502_v11, %v3371_v50 }
 0x457   : > { %v3504_v23 = vpop.f32.mrf.mxu0  ;;  %v3380_v41 = vadd.f32 %v5794_v45, %v3260_v49  ;;  %vm3625_vm3 = vcmp.gt.f32.partialorder %v3594_v0, 0.0  ;;  %v3635_v55 = vmul.f32 0.2, %v3594_v0  ;;  %v3644_v42 = vsel %vm3624_vm2, %v5535_v12, %v3634_v31 }
 0x458   : > { %v3600_v4 = vpop.f32.mrf.mxu1  ;;  %v3599_v54 = vadd.f32 %v3598_v35, %v3489_v30  ;;  %v3505_v13 = vadd.f32 %v3504_v23, %v3373_v16  ;;  %v5582_v21 = vand.u32 4294901760, %v3644_v42 }
 0x459   : > { %v3509_v61 = vpop.f32.mrf.mxu0  ;;  %v3601_v38 = vadd.f32 %v3600_v4, %v3491_v58  ;;  %v3645_v53 = vsel %vm3625_vm3, %v3594_v0, %v3635_v55 }
 0x45a   : > { %v3605_v28 = vpop.f32.mrf.mxu1  ;;  %v3510_v34 = vadd.f32 %v3509_v61, %v3380_v41  ;;  %vm3626_vm8 = vcmp.gt.f32.partialorder %v3599_v54, 0.0  ;;  %v3636_v46 = vmul.f32 0.2, %v3599_v54  ;;  %v5572_v49 = vand.u32 4294901760, %v3645_v53 }
 0x45b   : > { %v3606_v44 = vadd.f32 %v3605_v28, %v3496_v9  ;;  %v3511_v56 = vpop.f32.mrf.mxu0  ;;  %vm3627_vm5 = vcmp.gt.f32.partialorder %v3601_v38, 0.0  ;;  %v3637_v19 = vmul.f32 0.2, %v3601_v38  ;;  %v3741_v28 = vand.u32 4294901760, %v5529_v40 }
 0x45c   : > { %v3607_v48 = vpop.f32.mrf.mxu1  ;;  %v3512_v8 = vadd.f32 %v3511_v56, %v3382_v47  ;;  %v3646_v23 = vsel %vm3626_vm8, %v3599_v54, %v3636_v46  ;;  %v5611_v41 = vsub.f32 %v3644_v42, %v5582_v21 }
 0x45d   : > { %v3608_v26 = vadd.f32 %v3607_v48, %v3498_v36  ;;  %v3638_v5 = vmul.f32 0.2, %v3606_v44  ;;  %vm3628_vm6 = vcmp.gt.f32.partialorder %v3606_v44, 0.0  ;;  %v3647_v6 = vsel %vm3627_vm5, %v3601_v38, %v3637_v19 }
 0x45e   : > { %v3612_v59 = vpop.f32.mrf.mxu1  ;;  %v5559_v51 = vand.u32 4294901760, %v3647_v6  ;;  %v5566_v58 = vand.u32 4294901760, %v3646_v23  ;;  %v5602_v38 = vsub.f32 %v3645_v53, %v5572_v49  ;;  %v3742_v48 = vsub.f32 %v5529_v40, %v3741_v28 }
 0x45f   : > { %vm3629_vm4 = vcmp.gt.f32.partialorder %v3608_v26, 0.0  ;;  %v3639_v18 = vmul.f32 0.2, %v3608_v26  ;;  %v3613_v17 = vadd.f32 %v3612_v59, %v3503_v3  ;;  %v3648_v15 = vsel %vm3628_vm6, %v3606_v44, %v3638_v5 }
 0x460   : > { %v3614_v32 = vpop.f32.mrf.mxu1  ;;  %v5554_v27 = vand.u32 4294901760, %v3648_v15  ;;  %v5588_v36 = vsub.f32 %v3647_v6, %v5559_v51  ;;  %v5597_v2 = vsub.f32 %v3646_v23, %v5566_v58  ;;  %v3822_v19 = vand.u32 4294901760, %v5602_v38 }
 0x461   : > { %vm3630_vm7 = vcmp.gt.f32.partialorder %v3613_v17, 0.0  ;;  %v3640_v11 = vmul.f32 0.2, %v3613_v17  ;;  %v3615_v60 = vadd.f32 %v3614_v32, %v3505_v13  ;;  %v3649_v43 = vsel %vm3629_vm4, %v3608_v26, %v3639_v18 }
 0x462   : > { %v3619_v20 = vpop.f32.mrf.mxu1  ;;  %v5550_v62 = vand.u32 4294901760, %v3649_v43  ;;  %v5585_v50 = vsub.f32 %v3648_v15, %v5554_v27  ;;  %v3810_v54 = vand.u32 4294901760, %v5588_v36  ;;  %v3816_v13 = vand.u32 4294901760, %v5597_v2 }
 0x463   : > { %v3650_v14 = vsel %vm3630_vm7, %v3613_v17, %v3640_v11  ;;  %vm3631_vm9 = vcmp.gt.f32.partialorder %v3615_v60, 0.0  ;;  %v3641_v37 = vmul.f32 0.2, %v3615_v60  ;;  %v3620_v7 = vadd.f32 %v3619_v20, %v3510_v34 }
 0x464   : > { %v5546_v22 = vand.u32 4294901760, %v3650_v14  ;;  %v3621_v35 = vpop.f32.mrf.mxu1  ;;  %v5575_v24 = vsub.f32 %v3649_v43, %v5550_v62  ;;  %v3804_v3 = vand.u32 4294901760, %v5585_v50  ;;  %v3743_v18 = vand.u32 4294901760, %v3742_v48 }
 0x465   : > { %v3651_v39 = vsel %vm3631_vm9, %v3615_v60, %v3641_v37  ;;  %vm3632_vm10 = vcmp.gt.f32.partialorder %v3620_v7, 0.0  ;;  %v3642_v33 = vmul.f32 0.2, %v3620_v7  ;;  %v3622_v63 = vadd.f32 %v3621_v35, %v3512_v8  ;;  %v5795_v35 = vld [vmem:[#allocation8_spill] sm:$0xff] }
 0x466   : > { %v5552_v57 = vand.u32 4294901760, %v3651_v39  ;;  %v5569_v9 = vsub.f32 %v3650_v14, %v5546_v22  ;;  %v3798_v45 = vand.u32 4294901760, %v5575_v24  ;;  %v3805_v5 = vsub.f32 %v5585_v50, %v3804_v3 }
 0x467   : > { %v3652_v25 = vsel %vm3632_vm10, %v3620_v7, %v3642_v33  ;;  %vm3633_vm11 = vcmp.gt.f32.partialorder %v3622_v63, 0.0  ;;  %v3643_v4 = vmul.f32 0.2, %v3622_v63  ;;  %v3828_v32 = vand.u32 4294901760, %v5611_v41 }
 0x468   : > { %v5562_v52 = vsub.f32 %v3651_v39, %v5552_v57  ;;  %v5564_v1 = vand.u32 4294901760, %v3652_v25  ;;  %v3792_v30 = vand.u32 4294901760, %v5569_v9  ;;  %v3799_v17 = vsub.f32 %v5575_v24, %v3798_v45 }
 0x469   : > { %v3653_v0 = vsel %vm3633_vm11, %v3622_v63, %v3643_v4  ;;  %v3811_v60 = vsub.f32 %v5588_v36, %v3810_v54  ;;  %v3817_v8 = vsub.f32 %v5597_v2, %v3816_v13  ;;  %v3823_v20 = vsub.f32 %v5602_v38, %v3822_v19  ;;  %v3659_v63 = vpop.permute.xlu0 %3658 }
 0x46a   : > { %v5578_v12 = vsub.f32 %v3652_v25, %v5564_v1  ;;  %v5580_v29 = vand.u32 4294901760, %v3653_v0  ;;  %v3786_v16 = vand.u32 4294901760, %v5562_v52  ;;  %v3793_v59 = vsub.f32 %v5569_v9, %v3792_v30 }
 0x46b   : > { %v3800_v43 = vand.u32 4294901760, %v3799_v17  ;;  %v3806_v14 = vand.u32 4294901760, %v3805_v5  ;;  %v3829_v37 = vsub.f32 %v5611_v41, %v3828_v32  ;;  %v3812_v7 = vand.u32 4294901760, %v3811_v60  ;;  %v4289_v17 = vld [vmem:[%s5709_s26 + $0x60] sm:$0xff] }
 0x46c   : > { %v5591_v61 = vsub.f32 %v3653_v0, %v5580_v29  ;;  %3687 = vmatprep.subr.mxu0 %v5580_v29  ;;  %v3780_v10 = vand.u32 4294901760, %v5578_v12  ;;  %v3787_v55 = vsub.f32 %v5562_v52, %v3786_v16  ;;  %v3794_v46 = vand.u32 4294901760, %v3793_v59 }
 0x46d   : > { %3689 = vmatpush1.msra.mxu0 %v5564_v1  ;;  %v3818_v31 = vand.u32 4294901760, %v3817_v8  ;;  %v3824_v6 = vand.u32 4294901760, %v3823_v20  ;;  %v3830_v15 = vand.u32 4294901760, %v3829_v37  ;;  %v5796_v39 = vmov 0.0   ;;  %v4252_v20 = vld [vmem:[%s5709_s26 + $0x38] sm:$0xff] }
 0x46e   : > { %3691 = vmatprep.subr.mxu0 %v5552_v57  ;;  %v3774_v44 = vand.u32 4294901760, %v5591_v61  ;;  %v3781_v47 = vsub.f32 %v5578_v12, %v3780_v10  ;;  %v3788_v11 = vand.u32 4294901760, %v3787_v55  ;;  %v4237_v4 = vlaneseq }
 0x46f   : > { %3693 = vmatpush1.msra.mxu0 %v5546_v22 }
 0x470   : > { %3695 = vmatprep.subr.mxu0 %v5550_v62  ;;  %v3775_v26 = vsub.f32 %v5591_v61, %v3774_v44  ;;  %v3782_v34 = vand.u32 4294901760, %v3781_v47  ;;  %v4238_v0 = vshrl.u32 %v4237_v4, 7  ;;  %v4269_v47 = vld [vmem:[%s5709_s26 + $0x40] sm:$0xff] }
 0x471   : > { %3697 = vmatpush1.msra.mxu0 %v5554_v27 }
 0x472   : > { %3699 = vmatprep.subr.mxu0 %v5559_v51  ;;  %v3776_v56 = vand.u32 4294901760, %v3775_v26 }
 0x473   : > { %3701 = vmatpush1.msra.mxu0 %v5566_v58 }
 0x474   : > { %3703 = vmatprep.subr.mxu0 %v5572_v49  ;;  %3777 = vmatprep.subr.mxu1 %v3776_v56 }
 0x475   : > { %3705 = vmatpush1.msra.mxu0 %v5582_v21  ;;  %3783 = vmatpush1.msra.mxu1 %v3782_v34 }
 0x476   : > { %3744 = vmatmul.mubr.f32.vlgmr.msra.gmra.mxu0 %v3743_v18  ;;  %3789 = vmatprep.subr.mxu1 %v3788_v11  ;;  %v4236_v11 = vld [vmem:[%s5709_s26 + $0x18] sm:$0xff] }
 0x477   : > { %3896 = vmatprep.subr.mxu0 %v5591_v61  ;;  %3795 = vmatpush1.msra.mxu1 %v3794_v46  ;;  %v4295_v61 = vsub.s32 3, %v4238_v0 }
 0x478   : > { %3899 = vmatpush1.msra.mxu0 %v5578_v12  ;;  %3801 = vmatprep.subr.mxu1 %v3800_v43  ;;  %v4250_v43 = vld [vmem:[%s5709_s26 + $0x28] sm:$0xff] }
 0x479   : > { %3902 = vmatprep.subr.mxu0 %v5562_v52  ;;  %3807 = vmatpush1.msra.mxu1 %v3806_v14 }
 0x47a   : > { %3905 = vmatpush1.msra.mxu0 %v5569_v9  ;;  %3813 = vmatprep.subr.mxu1 %v3812_v7 }
 0x47b   : > { %3908 = vmatprep.subr.mxu0 %v5575_v24  ;;  %3819 = vmatpush1.msra.mxu1 %v3818_v31 }
 0x47c   : > { %3911 = vmatpush1.msra.mxu0 %v5585_v50  ;;  %3825 = vmatprep.subr.mxu1 %v3824_v6  ;;  %v4275_v50 = vsub.s32 2, %v4238_v0 }
 0x47d   : > { %3914 = vmatprep.subr.mxu0 %v5588_v36  ;;  %3831 = vmatpush1.msra.mxu1 %v3830_v15 }
 0x47e   : > { %3917 = vmatpush1.msra.mxu0 %v5597_v2  ;;  %3866 = vmatmul.mubr.f32.vlgmr.msra.gmra.mxu1 %v5795_v35 }
 0x47f   : > { %3920 = vmatprep.subr.mxu0 %v5602_v38  ;;  %3988 = vmatprep.subr.mxu1 %v5580_v29  ;;  %v4249_v38 = vld [vmem:[%s5709_s26 + $0x20] sm:$0xff] }
 0x480   : > { %3923 = vmatpush1.msra.mxu0 %v5611_v41  ;;  %3956 = vmatprep.mubr.f32.mxu0 %v5796_v39 }
 0x481   : > { %3990 = vmatpush1.msra.mxu1 %v5564_v1  ;;  %3959 = vmatmul.mubr.f32.vlgmr.msra.gmra.mxu0 %v5529_v40 }
 0x482   : > { %3992 = vmatprep.subr.mxu1 %v5552_v57  ;;  %4074 = vmatprep.subr.mxu0 %v3774_v44  ;;  %v4251_v44 = vld [vmem:[%s5709_s26 + $0x30] sm:$0xff] }
 0x483   : > { %3994 = vmatpush1.msra.mxu1 %v5546_v22  ;;  %4078 = vmatpush1.msra.mxu0 %v3780_v10 }
 0x484   : > { %3996 = vmatprep.subr.mxu1 %v5550_v62  ;;  %4082 = vmatprep.subr.mxu0 %v3786_v16  ;;  %v4233_v16 = vld [vmem:[%s5709_s26] sm:$0xff] }
 0x485   : > { %3998 = vmatpush1.msra.mxu1 %v5554_v27  ;;  %4086 = vmatpush1.msra.mxu0 %v3792_v30  ;;  %v4235_v30 = vld [vmem:[%s5709_s26 + $0x10] sm:$0xff] }
 0x486   : > { %4000 = vmatprep.subr.mxu1 %v5559_v51  ;;  %4090 = vmatprep.subr.mxu0 %v3798_v45 }
 0x487   : > { %4002 = vmatpush1.msra.mxu1 %v5566_v58  ;;  %4094 = vmatpush1.msra.mxu0 %v3804_v3  ;;  %v4271_v3 = vld [vmem:[%s5709_s26 + $0x50] sm:$0xff] }
 0x488   : > { %4004 = vmatprep.subr.mxu1 %v5572_v49  ;;  %4098 = vmatprep.subr.mxu0 %v3810_v54 }
 0x489   : > { %4006 = vmatpush1.msra.mxu1 %v5582_v21  ;;  %4039 = vmatprep.mubr.f32.mxu1 %v5796_v39 }
 0x48a   : > { %4102 = vmatpush1.msra.mxu0 %v3816_v13  ;;  %4043 = vmatmul.mubr.f32.vlgmr.msra.gmra.mxu1 %v3741_v28 }
 0x48b   : > { %4106 = vmatprep.subr.mxu0 %v3822_v19  ;;  %4174 = vmatprep.subr.mxu1 %v5580_v29  ;;  %v4239_v29 = vsub.s32 0, %v4238_v0  ;;  %v4291_v19 = vld [vmem:[%s5709_s26 + $0x70] sm:$0xff] }
 0x48c   : > { %4110 = vmatpush1.msra.mxu0 %v3828_v32  ;;  %4143 = vmatprep.mubr.f32.mxu0 %v5796_v39  ;;  %v4234_v32 = vld [vmem:[%s5709_s26 + $0x8] sm:$0xff] }
 0x48d   : > { %4176 = vmatpush1.msra.mxu1 %v5564_v1  ;;  %4145 = vmatmul.mubr.f32.vlgmr.msra.gmra.mxu0 %v5795_v35 }
 0x48e   : > { %4178 = vmatprep.subr.mxu1 %v5552_v57  ;;  %4225 = vmatprep.mubr.f32.mxu1 %v5796_v39 }
 0x48f   : > { %4180 = vmatpush1.msra.mxu1 %v5546_v22 }
 0x490   : > { %4182 = vmatprep.subr.mxu1 %v5550_v62 }
 0x491   : > { %4184 = vmatpush1.msra.mxu1 %v5554_v27 }
 0x492   : > { %4186 = vmatprep.subr.mxu1 %v5559_v51 }
 0x493   : > { %4188 = vmatpush1.msra.mxu1 %v5566_v58 }
 0x494   : > { %4190 = vmatprep.subr.mxu1 %v5572_v49 }
 0x495   : > { %4192 = vmatpush1.msra.mxu1 %v5582_v21  ;;  %v4255_v21 = vsub.s32 1, %v4238_v0 }
 0x496   : > { %4227 = vmatmul.mubr.f32.vlgmr.msra.gmra.mxu1 %v5795_v35 }
 0x536   : > { %v3745_v40 = vpop.f32.mrf.mxu0 }
 0x537   : > { %v3746_v53 = vadd.f32 %v3745_v40, %v3659_v63  ;;  %v4270_v40 = vld [vmem:[%s5709_s26 + $0x48] sm:$0xff] }
 0x538   : > { %v3747_v22 = vpop.f32.mrf.mxu0 }
 0x539   : > { %v3748_v27 = vadd.f32 %v3747_v22, %v3659_v63 }
 0x53e   : > { %v3867_v33 = vpop.f32.mrf.mxu1 }
 0x53f   : > { %v3868_v23 = vadd.f32 %v3867_v33, %v3746_v53  ;;  %v4272_v33 = vld [vmem:[%s5709_s26 + $0x58] sm:$0xff] }
 0x540   : > { %v3869_v62 = vpop.f32.mrf.mxu1 }
 0x541   : > { %v3960_v57 = vpop.f32.mrf.mxu0  ;;  %v3870_v42 = vadd.f32 %v3869_v62, %v3748_v27  ;;  %v4292_v27 = vld [vmem:[%s5709_s26 + $0x78] sm:$0xff] }
 0x542   : > { %v3961_v51 = vadd.f32 %v3960_v57, %v3868_v23  ;;  %v4290_v57 = vld [vmem:[%s5709_s26 + $0x68] sm:$0xff] }
 0x543   : > { %v3962_v52 = vpop.f32.mrf.mxu0 }
 0x544   : > { %v3963_v28 = vadd.f32 %v3962_v52, %v3870_v42 }
 0x54a   : > { %v4044_v25 = vpop.f32.mrf.mxu1 }
 0x54b   : > { %v4045_v1 = vadd.f32 %v4044_v25, %v3961_v51 }
 0x54c   : > { %v4046_v58 = vpop.f32.mrf.mxu1 }
 0x54d   : > { %v4146_v9 = vpop.f32.mrf.mxu0  ;;  %v4047_v49 = vadd.f32 %v4046_v58, %v3963_v28 }
 0x54e   : > { %v4147_v24 = vadd.f32 %v4146_v9, %v4045_v1 }
 0x54f   : > { %v4148_v12 = vpop.f32.mrf.mxu0 }
 0x550   : > { %v4149_v2 = vadd.f32 %v4148_v12, %v4047_v49 }
 0x556   : > { %v4228_v36 = vpop.f32.mrf.mxu1 }
 0x557   : > { %v4229_v10 = vadd.f32 %v4228_v36, %v4147_v24 }
 0x558   : > { %v4230_v48 = vpop.f32.mrf.mxu1 }
 0x559   : > { %v4240_v45 = vrot.slane %v4229_v10, %v4239_v29  ;;  %v4256_v41 = vrot.slane %v4229_v10, %v4255_v21  ;;  %v4276_v26 = vrot.slane %v4229_v10, %v4275_v50  ;;  %v4296_v55 = vrot.slane %v4229_v10, %v4295_v61 }
 0x55a   : > { %v4231_v54 = vadd.f32 %v4230_v48, %v4149_v2 }
 0x55b   : > { %v4245_v59 = vmul.f32 %v4240_v45, %v4233_v16  ;;  %v4247_v13 = vmul.f32 %v4240_v45, %v4235_v30  ;;  %v4261_v56 = vmul.f32 %v4256_v41, %v4249_v38  ;;  %v4263_v18 = vmul.f32 %v4256_v41, %v4251_v44 }
 0x55c   : > { %v4281_v34 = vmul.f32 %v4276_v26, %v4269_v47  ;;  %v4283_v5 = vmul.f32 %v4276_v26, %v4271_v3  ;;  %v4244_v8 = vrot.slane %v4231_v54, %v4239_v29  ;;  %v4260_v14 = vrot.slane %v4231_v54, %v4255_v21 }
 0x55d   : > { %v4265_v60 = vadd.f32 %v4261_v56, %v4245_v59  ;;  %v4267_v46 = vadd.f32 %v4263_v18, %v4247_v13  ;;  %v4301_v37 = vmul.f32 %v4296_v55, %v4289_v17  ;;  %v4303_v7 = vmul.f32 %v4296_v55, %v4291_v19 }
 0x55e   : > { %v4280_v31 = vrot.slane %v4231_v54, %v4275_v50  ;;  %v4246_v35 = vmul.f32 %v4244_v8, %v4234_v32  ;;  %v4248_v39 = vmul.f32 %v4244_v8, %v4236_v11  ;;  %v4262_v63 = vmul.f32 %v4260_v14, %v4250_v43 }
 0x55f   : > { %v4285_v6 = vadd.f32 %v4281_v34, %v4265_v60  ;;  %v4287_v15 = vadd.f32 %v4283_v5, %v4267_v46  ;;  %v4264_v53 = vmul.f32 %v4260_v14, %v4252_v20  ;;  %v4300_v22 = vrot.slane %v4231_v54, %v4295_v61 }
 0x560   : > { %v4266_v25 = vadd.f32 %v4262_v63, %v4246_v35  ;;  %v4282_v42 = vmul.f32 %v4280_v31, %v4270_v40  ;;  %v4284_v51 = vmul.f32 %v4280_v31, %v4272_v33 }
 0x561   : > { %v4305_v23 = vadd.f32 %v4301_v37, %v4285_v6  ;;  %v4307_v62 = vadd.f32 %v4303_v7, %v4287_v15  ;;  %v4268_v4 = vadd.f32 %v4264_v53, %v4248_v39  ;;  %v4302_v58 = vmul.f32 %v4300_v22, %v4290_v57 }
 0x562   : > { %v4286_v52 = vadd.f32 %v4282_v42, %v4266_v25  ;;  %v4304_v9 = vmul.f32 %v4300_v22, %v4292_v27 }
 0x563   : > { %4309 = vst [vmem:[%s260_s12] sm:$0xff] %v4305_v23  ;;  %4311 = vst [vmem:[%s260_s12 + $0x10] sm:$0xff] %v4307_v62  ;;  %v4288_v1 = vadd.f32 %v4284_v51, %v4268_v4  ;;  %4319 = sbr.rel (!%p4554_p5) target bundleno = 1392 (0x570), region = 82 }
 0x564   : > { %v4306_v0 = vadd.f32 %v4302_v58, %v4286_v52 }
 0x565   : > { %v4308_v28 = vadd.f32 %v4304_v9, %v4288_v1 }
 0x566   : > { %4310 = vst [vmem:[%s260_s12 + $0x8] sm:$0xff] %v4306_v0 }
 0x567   : > { %4312 = vst [vmem:[%s260_s12 + $0x18] sm:$0xff] %v4308_v28 }
 0x56a   : > { %v4335_v49 = vld [vmem:[%s260_s12] sm:$0xff]  ;;  %v4339_v12 = vld [vmem:[%s260_s12 + $0x10] sm:$0xff] }
 0x56b   : > { %4336 = vst [vmem:[%s4322_s28] sm:$0xff] %v4335_v49  ;;  %4340 = vst [vmem:[%s4322_s28 + $0x20] sm:$0xff] %v4339_v12 }
 0x56d   : > { %v4337_v24 = vld [vmem:[%s260_s12 + $0x8] sm:$0xff] }
 0x56e   : > { %v4341_v29 = vld [vmem:[%s260_s12 + $0x18] sm:$0xff]  ;;  %4338 = vst [vmem:[%s4322_s28 + $0x8] sm:$0xff] %v4337_v24 }
 0x56f   : > { %4342 = vst [vmem:[%s4322_s28 + $0x28] sm:$0xff] %v4341_v29 }
 0x570 PF: > { %p10_p10 = scmp.ge.s32.totalorder %s4537_s16, 4   ;;  %s5797_s12 = smov %s4492_s13 }
 0x571   : > { %s5798_s13 = smov %s4548_s19  ;;  %s5799_s14 = smov %s4537_s16 }
 0x572   :  { %12 = sbr.rel (!%p10_p10) target bundleno = 2 (0x2), region = 144 }

</bundles_post_ra>
